<compile_context>
chip_gen: v7x
topology: tpu7x:2x2x1
jax: 0.10.0
libtpu: 0.0.40
codegen_flags: <defaults>
</compile_context>

<pallas_src>
import functools
import math

import numpy as np
import jax
import jax.numpy as jnp
from jax import lax
from jax.experimental import pallas as pl
from jax.experimental.pallas import tpu as pltpu  # noqa: F401  (TPU backend assumed)


# ---------------------------------------------------------------------------
# In-kernel helpers (pure jnp on VMEM-resident values)
# ---------------------------------------------------------------------------

def _split_heads(x3, num_heads):
    """(B, S, D) -> (H*B, S, depth).

    Static lane slices per head + concatenation along a NEW leading (major,
    untiled) axis — no lane shuffles, no 4-D transposes.
    """
    B, S, D = x3.shape
    depth = D // num_heads
    return jnp.concatenate(
        [x3[:, :, h * depth:(h + 1) * depth] for h in range(num_heads)], axis=0)


def _attention(qb, kb, vb, bias, w_dense, b_dense, batch, num_heads):
    """Batched scaled-dot-product attention + dense projection.

    qb: (H*B, Sq, depth); kb, vb: (H*B, Sk, depth); bias: (Sq, Sk) additive.
    Returns (B*Sq, D).  The head merge is folded into the dense matmul:
    concat(heads) @ W == sum_h head_h @ W[h*depth:(h+1)*depth, :], so no
    lane-level concatenate is emitted.
    """
    _, Sq, depth = qb.shape
    inv_scale = jnp.float32(1.0 / math.sqrt(depth))   # compile-time constant

    # scores: one batched contraction over the (head*batch) leading dim
    s = jnp.einsum('bqd,bkd->bqk', qb, kb,
                   preferred_element_type=jnp.float32) * inv_scale
    # Reference semantics: `scaled += mask * -1e-09` (bias already scaled).
    s = s + bias[None, :, :]

    # hand-rolled softmax; denominator reciprocal runs on the (idle) EUP
    m = jnp.max(s, axis=-1, keepdims=True)
    e = jnp.exp(s - m)
    p = e * pl.reciprocal(jnp.sum(e, axis=-1, keepdims=True), approx=True)

    ob = jnp.einsum('bqk,bkd->bqd', p, vb,
                    preferred_element_type=jnp.float32)      # (H*B, Sq, depth)

    d_out = w_dense.shape[1]
    acc = jnp.zeros((batch * Sq, d_out), jnp.float32)
    for h in range(num_heads):
        oh = ob[h * batch:(h + 1) * batch].reshape(batch * Sq, depth)
        acc = acc + jnp.dot(oh, w_dense[h * depth:(h + 1) * depth, :],
                            preferred_element_type=jnp.float32)
    return acc + b_dense


def _add_layernorm(a, r, gamma, beta):
    """LayerNorm(a + r) with PyTorch semantics (biased variance, eps=1e-5)."""
    x = a + r
    mu = jnp.mean(x, axis=-1, keepdims=True)
    var = jnp.mean(jnp.square(x - mu), axis=-1, keepdims=True)
    return (x - mu) * lax.rsqrt(var + 1e-5) * gamma + beta


# ---------------------------------------------------------------------------
# Single fused decoder kernel (embedding + pos-enc + all layers)
# ---------------------------------------------------------------------------

def _make_decoder_kernel(num_heads):
    def kernel(tok_ref, emb_ref, pos_ref, enc_ref, tgtm_ref, srcm_ref,
               a1w_ref, a1b_ref, a2w_ref, a2b_ref,
               f1w_ref, f1b_ref, f2w_ref, f2b_ref,
               g1_ref, b1_ref, g2_ref, b2_ref, g3_ref, b3_ref,
               o_ref):
        B, S_enc, D = enc_ref.shape
        S = tgtm_ref.shape[0]
        BS = B * S
        V = emb_ref.shape[0]
        L = a1w_ref.shape[0]
        H = num_heads

        # ---- embedding gather as a one-hot matmul (no dynamic gather) --------
        tok = tok_ref[...]                                        # (BS, 1) int32
        vocab_iota = lax.broadcasted_iota(jnp.int32, (BS, V), 1)
        one_hot = (vocab_iota == tok).astype(jnp.float32)         # (BS, V)
        x2 = jnp.dot(one_hot, emb_ref[...], preferred_element_type=jnp.float32)
        x2 = x2 * jnp.float32(math.sqrt(D))

        # ---- positional encoding add ------------------------------------------
        pe = pos_ref[0:S, :]                                      # static slice
        x2 = (x2.reshape(B, S, D) + pe[None, :, :]).reshape(BS, D)

        enc3 = enc_ref[...]
        # Faithful to the reference: `scaled += mask * -1e-09` (minus one NANO,
        # exactly as in the PyTorch source — effectively a numerical no-op).
        tgt_bias = tgtm_ref[...] * jnp.float32(-1e-09)
        src_bias = srcm_ref[...] * jnp.float32(-1e-09)

        # Encoder output head-split is layer-invariant: hoist it out of the loop.
        encb = _split_heads(enc3, H)                              # (H*B, S_enc, depth)

        # ---- unrolled decoder layers (weights are static-indexed VMEM loads) --
        for l in range(L):
            # masked self-attention + residual + LayerNorm
            xb = _split_heads(x2.reshape(B, S, D), H)
            a1 = _attention(xb, xb, xb, tgt_bias, a1w_ref[l], a1b_ref[l], B, H)
            x2 = _add_layernorm(a1, x2, g1_ref[l], b1_ref[l])

            # encoder-decoder attention + residual + LayerNorm
            xb = _split_heads(x2.reshape(B, S, D), H)
            a2 = _attention(xb, encb, encb, src_bias, a2w_ref[l], a2b_ref[l], B, H)
            x2 = _add_layernorm(a2, x2, g2_ref[l], b2_ref[l])

            # feed-forward + residual + LayerNorm
            hid = jnp.dot(x2, f1w_ref[l], preferred_element_type=jnp.float32) + f1b_ref[l]
            hid = jnp.maximum(hid, 0.0)                            # ReLU (f32 VPU)
            ffo = jnp.dot(hid, f2w_ref[l], preferred_element_type=jnp.float32) + f2b_ref[l]
            x2 = _add_layernorm(ffo, x2, g3_ref[l], b3_ref[l])

        o_ref[...] = x2.reshape(B, S, D)

    return kernel


def decoder_forward(params, tokens, enc_output, src_mask=None, tgt_mask=None,
                    num_heads=4):
    B, S = tokens.shape
    S_enc = enc_output.shape[1]
    D = params["embedding"].shape[1]

    tgt_m = (tgt_mask.astype(jnp.float32) if tgt_mask is not None
             else jnp.zeros((S, S), jnp.float32))
    src_m = (src_mask.astype(jnp.float32) if src_mask is not None
             else jnp.zeros((S, S_enc), jnp.float32))
    tok_col = tokens.reshape(B * S, 1).astype(jnp.int32)

    return pl.pallas_call(
        _make_decoder_kernel(num_heads),
        out_shape=jax.ShapeDtypeStruct((B, S, D), jnp.float32),
    )(tok_col, params["embedding"], params["pos_enc"], enc_output, tgt_m, src_m,
      params["mha1_w"], params["mha1_b"], params["mha2_w"], params["mha2_b"],
      params["ffn_w1"], params["ffn_b1"], params["ffn_w2"], params["ffn_b2"],
      params["ln1_g"], params["ln1_b"], params["ln2_g"], params["ln2_b"],
      params["ln3_g"], params["ln3_b"])


# ---------------------------------------------------------------------------
# Deterministic parameter construction (stacked per-layer weights)
# ---------------------------------------------------------------------------

def positional_encoding(max_length, d_model):
    # Exact reference formula (i steps by 2 and is used directly in the
    # exponent; d_model must be even, as in the reference).
    pos_enc = np.zeros((max_length, d_model))
    for pos in range(max_length):
        for i in range(0, d_model, 2):
            pos_enc[pos, i] = np.sin(pos / 10000 ** (2 * i / d_model))
            pos_enc[pos, i + 1] = np.cos(pos / 10000 ** (2 * i / d_model))
    return jnp.asarray(pos_enc, dtype=jnp.float32)


def init_params(key, num_layers, d_model, max_length, d_ff, num_heads, vocab):
    assert d_model % num_heads == 0

    def lin(k, d_in, d_out):
        kw, kb = jax.random.split(k)
        return (jax.random.normal(kw, (d_in, d_out), jnp.float32) * 0.02,
                jax.random.normal(kb, (1, d_out), jnp.float32) * 0.02)

    key, ke = jax.random.split(key)
    params = {
        "embedding": jax.random.normal(ke, (vocab, d_model), jnp.float32),
        "pos_enc": positional_encoding(max_length, d_model),
    }

    # NOTE: the reference MultiHeadAttention defines wq/wk/wv but its forward()
    # never applies them, so only the `dense` output projection is materialized.
    a1w, a1b, a2w, a2b, f1w, f1b, f2w, f2b = ([] for _ in range(8))
    for _ in range(num_layers):
        key, k1, k2, k3, k4 = jax.random.split(key, 5)
        w, b = lin(k1, d_model, d_model); a1w.append(w); a1b.append(b)
        w, b = lin(k2, d_model, d_model); a2w.append(w); a2b.append(b)
        w, b = lin(k3, d_model, d_ff);    f1w.append(w); f1b.append(b)
        w, b = lin(k4, d_ff, d_model);    f2w.append(w); f2b.append(b)

    params.update(
        mha1_w=jnp.stack(a1w), mha1_b=jnp.stack(a1b),
        mha2_w=jnp.stack(a2w), mha2_b=jnp.stack(a2b),
        ffn_w1=jnp.stack(f1w), ffn_b1=jnp.stack(f1b),
        ffn_w2=jnp.stack(f2w), ffn_b2=jnp.stack(f2b),
        ln1_g=jnp.ones((num_layers, 1, d_model), jnp.float32),
        ln1_b=jnp.zeros((num_layers, 1, d_model), jnp.float32),
        ln2_g=jnp.ones((num_layers, 1, d_model), jnp.float32),
        ln2_b=jnp.zeros((num_layers, 1, d_model), jnp.float32),
        ln3_g=jnp.ones((num_layers, 1, d_model), jnp.float32),
        ln3_b=jnp.zeros((num_layers, 1, d_model), jnp.float32),
    )
    return params


# ---------------------------------------------------------------------------
# Main
# ---------------------------------------------------------------------------

if __name__ == "__main__":
    num_layers = 2
    d_model = 32
    max_length = 16
    d_ff = 64
    num_heads = 4
    vocab = 50
    batch, seq = 2, 8

    root = jax.random.PRNGKey(0)
    k_params, k_tok, k_enc = jax.random.split(root, 3)

    params = init_params(k_params, num_layers, d_model, max_length, d_ff,
                         num_heads, vocab)

    tokens = jax.random.randint(k_tok, (batch, seq), 0, vocab, dtype=jnp.int32)
    enc_output = jax.random.normal(k_enc, (batch, seq, d_model), jnp.float32)

    # causal target mask (1 = blocked position), src_mask = None
    tgt_mask = jnp.triu(jnp.ones((seq, seq), jnp.float32), k=1)
    src_mask = None

    fwd = jax.jit(functools.partial(decoder_forward, num_heads=num_heads))
    out = jax.block_until_ready(fwd(params, tokens, enc_output, src_mask, tgt_mask))

    assert out.shape == (batch, seq, d_model)
    assert bool(jnp.all(jnp.isfinite(out)))
    print("KERNEL_OK")
</pallas_src>

<mosaic_0001>
module attributes {stable_mosaic.version = 11 : i64} {
  func.func @kernel(%arg0: memref<16x1xi32, #tpu.memory_space<vmem>>, %arg1: memref<50x32xf32, #tpu.memory_space<vmem>>, %arg2: memref<16x32xf32, #tpu.memory_space<vmem>>, %arg3: memref<2x8x32xf32, #tpu.memory_space<vmem>>, %arg4: memref<8x8xf32, #tpu.memory_space<vmem>>, %arg5: memref<8x8xf32, #tpu.memory_space<vmem>>, %arg6: memref<2x32x32xf32, #tpu.memory_space<vmem>>, %arg7: memref<2x1x32xf32, #tpu.memory_space<vmem>>, %arg8: memref<2x32x32xf32, #tpu.memory_space<vmem>>, %arg9: memref<2x1x32xf32, #tpu.memory_space<vmem>>, %arg10: memref<2x32x64xf32, #tpu.memory_space<vmem>>, %arg11: memref<2x1x64xf32, #tpu.memory_space<vmem>>, %arg12: memref<2x64x32xf32, #tpu.memory_space<vmem>>, %arg13: memref<2x1x32xf32, #tpu.memory_space<vmem>>, %arg14: memref<2x1x32xf32, #tpu.memory_space<vmem>>, %arg15: memref<2x1x32xf32, #tpu.memory_space<vmem>>, %arg16: memref<2x1x32xf32, #tpu.memory_space<vmem>>, %arg17: memref<2x1x32xf32, #tpu.memory_space<vmem>>, %arg18: memref<2x1x32xf32, #tpu.memory_space<vmem>>, %arg19: memref<2x1x32xf32, #tpu.memory_space<vmem>>, %arg20: memref<2x8x32xf32, #tpu.memory_space<vmem>>) attributes {dimension_semantics = [], scalar_prefetch = 0 : i64, scratch_operands = 0 : i64, tpu.core_type = #tpu.core_type<tc>} {
    %c0 = arith.constant 0 : index
    %c0_0 = arith.constant 0 : index
    %0 = vector.load %arg0[%c0, %c0_0] : memref<16x1xi32, #tpu.memory_space<vmem>>, vector<16x1xi32>
    %1 = tpu.iota {dimensions = array<i32: 1>} : vector<16x50xi32>
    %2 = vector.broadcast %0 : vector<16x1xi32> to vector<16x50xi32>
    %3 = arith.cmpi eq, %1, %2 : vector<16x50xi32>
    %4 = arith.extui %3 : vector<16x50xi1> to vector<16x50xi32>
    %5 = arith.sitofp %4 : vector<16x50xi32> to vector<16x50xf32>
    %c0_1 = arith.constant 0 : index
    %c0_2 = arith.constant 0 : index
    %6 = vector.load %arg1[%c0_1, %c0_2] : memref<50x32xf32, #tpu.memory_space<vmem>>, vector<50x32xf32>
    %cst = arith.constant dense<0.000000e+00> : vector<16x32xf32>
    %7 = tpu.matmul %5, %6, %cst {dimension_numbers = #tpu.dot_dimension_numbers<[1], [0], [0], [1], [0, 0, 1, 1], [], []>} : vector<16x50xf32>, vector<50x32xf32>, vector<16x32xf32> -> vector<16x32xf32>
    %cst_3 = arith.constant 5.65685415 : f32
    %8 = vector.broadcast %cst_3 : f32 to vector<16x32xf32>
    %9 = arith.mulf %7, %8 : vector<16x32xf32>
    %c0_4 = arith.constant 0 : index
    %c0_5 = arith.constant 0 : index
    %10 = vector.load %arg2[%c0_4, %c0_5] : memref<16x32xf32, #tpu.memory_space<vmem>>, vector<8x32xf32>
    %11 = vector.shape_cast %9 : vector<16x32xf32> to vector<2x8x32xf32>
    %12 = vector.shape_cast %10 : vector<8x32xf32> to vector<1x8x32xf32>
    %13 = vector.broadcast %12 : vector<1x8x32xf32> to vector<2x8x32xf32>
    %14 = arith.addf %11, %13 : vector<2x8x32xf32>
    %15 = vector.shape_cast %14 : vector<2x8x32xf32> to vector<16x32xf32>
    %c0_6 = arith.constant 0 : index
    %c0_7 = arith.constant 0 : index
    %c0_8 = arith.constant 0 : index
    %16 = vector.load %arg3[%c0_6, %c0_7, %c0_8] : memref<2x8x32xf32, #tpu.memory_space<vmem>>, vector<2x8x32xf32>
    %c0_9 = arith.constant 0 : index
    %c0_10 = arith.constant 0 : index
    %17 = vector.load %arg4[%c0_9, %c0_10] : memref<8x8xf32, #tpu.memory_space<vmem>>, vector<8x8xf32>
    %cst_11 = arith.constant -9.99999971E-10 : f32
    %18 = vector.broadcast %cst_11 : f32 to vector<8x8xf32>
    %19 = arith.mulf %17, %18 : vector<8x8xf32>
    %c0_12 = arith.constant 0 : index
    %c0_13 = arith.constant 0 : index
    %20 = vector.load %arg5[%c0_12, %c0_13] : memref<8x8xf32, #tpu.memory_space<vmem>>, vector<8x8xf32>
    %cst_14 = arith.constant -9.99999971E-10 : f32
    %21 = vector.broadcast %cst_14 : f32 to vector<8x8xf32>
    %22 = arith.mulf %20, %21 : vector<8x8xf32>
    %23 = vector.extract_strided_slice %16 {offsets = [0, 0, 0], sizes = [2, 8, 8], strides = [1, 1, 1]} : vector<2x8x32xf32> to vector<2x8x8xf32>
    %24 = vector.extract_strided_slice %16 {offsets = [0, 0, 8], sizes = [2, 8, 8], strides = [1, 1, 1]} : vector<2x8x32xf32> to vector<2x8x8xf32>
    %25 = vector.extract_strided_slice %16 {offsets = [0, 0, 16], sizes = [2, 8, 8], strides = [1, 1, 1]} : vector<2x8x32xf32> to vector<2x8x8xf32>
    %26 = vector.extract_strided_slice %16 {offsets = [0, 0, 24], sizes = [2, 8, 8], strides = [1, 1, 1]} : vector<2x8x32xf32> to vector<2x8x8xf32>
    %27 = tpu.concatenate %23, %24, %25, %26 in 0 : vector<2x8x8xf32>, vector<2x8x8xf32>, vector<2x8x8xf32>, vector<2x8x8xf32> -> vector<8x8x8xf32>
    %28 = vector.shape_cast %15 : vector<16x32xf32> to vector<2x8x32xf32>
    %29 = vector.extract_strided_slice %28 {offsets = [0, 0, 0], sizes = [2, 8, 8], strides = [1, 1, 1]} : vector<2x8x32xf32> to vector<2x8x8xf32>
    %30 = vector.extract_strided_slice %28 {offsets = [0, 0, 8], sizes = [2, 8, 8], strides = [1, 1, 1]} : vector<2x8x32xf32> to vector<2x8x8xf32>
    %31 = vector.extract_strided_slice %28 {offsets = [0, 0, 16], sizes = [2, 8, 8], strides = [1, 1, 1]} : vector<2x8x32xf32> to vector<2x8x8xf32>
    %32 = vector.extract_strided_slice %28 {offsets = [0, 0, 24], sizes = [2, 8, 8], strides = [1, 1, 1]} : vector<2x8x32xf32> to vector<2x8x8xf32>
    %33 = tpu.concatenate %29, %30, %31, %32 in 0 : vector<2x8x8xf32>, vector<2x8x8xf32>, vector<2x8x8xf32>, vector<2x8x8xf32> -> vector<8x8x8xf32>
    %c0_15 = arith.constant 0 : index
    %c0_16 = arith.constant 0 : index
    %c0_17 = arith.constant 0 : index
    %34 = vector.load %arg6[%c0_15, %c0_16, %c0_17] : memref<2x32x32xf32, #tpu.memory_space<vmem>>, vector<1x32x32xf32>
    %35 = vector.shape_cast %34 : vector<1x32x32xf32> to vector<32x32xf32>
    %c0_18 = arith.constant 0 : index
    %c0_19 = arith.constant 0 : index
    %c0_20 = arith.constant 0 : index
    %36 = vector.load %arg7[%c0_18, %c0_19, %c0_20] : memref<2x1x32xf32, #tpu.memory_space<vmem>>, vector<1x1x32xf32>
    %37 = vector.shape_cast %36 : vector<1x1x32xf32> to vector<1x32xf32>
    "tpu.trace_start"() <{level = 10 : i32, message = "bqd,bkd->bqk"}> : () -> ()
    %cst_21 = arith.constant dense<0.000000e+00> : vector<8x8x8xf32>
    %38 = tpu.matmul %33, %33, %cst_21 {dimension_numbers = #tpu.dot_dimension_numbers<[2], [2], [1], [1], [0, 0, 0, 1, 1, 1], [0], [0]>} : vector<8x8x8xf32>, vector<8x8x8xf32>, vector<8x8x8xf32> -> vector<8x8x8xf32>
    "tpu.trace_stop"() : () -> ()
    %cst_22 = arith.constant 0.353553385 : f32
    %39 = vector.broadcast %cst_22 : f32 to vector<8x8x8xf32>
    %40 = arith.mulf %38, %39 : vector<8x8x8xf32>
    %41 = vector.shape_cast %19 : vector<8x8xf32> to vector<1x8x8xf32>
    %42 = vector.broadcast %41 : vector<1x8x8xf32> to vector<8x8x8xf32>
    %43 = arith.addf %40, %42 : vector<8x8x8xf32>
    %cst_23 = arith.constant dense<0xFF800000> : vector<8x8xf32>
    %44 = vector.multi_reduction <maximumf>, %43, %cst_23 [2] : vector<8x8x8xf32> to vector<8x8xf32>
    %45 = vector.shape_cast %44 : vector<8x8xf32> to vector<8x8x1xf32>
    %46 = vector.broadcast %45 : vector<8x8x1xf32> to vector<8x8x8xf32>
    %47 = arith.subf %43, %46 : vector<8x8x8xf32>
    %48 = math.exp %47 : vector<8x8x8xf32>
    %cst_24 = arith.constant dense<0.000000e+00> : vector<8x8xf32>
    %49 = vector.multi_reduction <add>, %48, %cst_24 [2] : vector<8x8x8xf32> to vector<8x8xf32>
    %50 = vector.shape_cast %49 : vector<8x8xf32> to vector<8x8x1xf32>
    %51 = tpu.reciprocal %50 {approx = true} : vector<8x8x1xf32> -> vector<8x8x1xf32>
    %52 = vector.broadcast %51 : vector<8x8x1xf32> to vector<8x8x8xf32>
    %53 = arith.mulf %48, %52 : vector<8x8x8xf32>
    "tpu.trace_start"() <{level = 10 : i32, message = "bqk,bkd->bqd"}> : () -> ()
    %cst_25 = arith.constant dense<0.000000e+00> : vector<8x8x8xf32>
    %54 = tpu.matmul %53, %33, %cst_25 {dimension_numbers = #tpu.dot_dimension_numbers<[2], [1], [1], [2], [0, 0, 0, 1, 1, 2], [0], [0]>} : vector<8x8x8xf32>, vector<8x8x8xf32>, vector<8x8x8xf32> -> vector<8x8x8xf32>
    %cst_26 = arith.constant 0.000000e+00 : f32
    "tpu.trace_stop"() : () -> ()
    %55 = vector.broadcast %cst_26 : f32 to vector<16x32xf32>
    %56 = vector.extract_strided_slice %54 {offsets = [0, 0, 0], sizes = [2, 8, 8], strides = [1, 1, 1]} : vector<8x8x8xf32> to vector<2x8x8xf32>
    %57 = vector.shape_cast %56 : vector<2x8x8xf32> to vector<16x8xf32>
    %58 = vector.extract_strided_slice %35 {offsets = [0, 0], sizes = [8, 32], strides = [1, 1]} : vector<32x32xf32> to vector<8x32xf32>
    %cst_27 = arith.constant dense<0.000000e+00> : vector<16x32xf32>
    %59 = tpu.matmul %57, %58, %cst_27 {dimension_numbers = #tpu.dot_dimension_numbers<[1], [0], [0], [1], [0, 0, 1, 1], [], []>} : vector<16x8xf32>, vector<8x32xf32>, vector<16x32xf32> -> vector<16x32xf32>
    %60 = arith.addf %55, %59 : vector<16x32xf32>
    %61 = vector.extract_strided_slice %54 {offsets = [2, 0, 0], sizes = [2, 8, 8], strides = [1, 1, 1]} : vector<8x8x8xf32> to vector<2x8x8xf32>
    %62 = vector.shape_cast %61 : vector<2x8x8xf32> to vector<16x8xf32>
    %63 = vector.extract_strided_slice %35 {offsets = [8, 0], sizes = [8, 32], strides = [1, 1]} : vector<32x32xf32> to vector<8x32xf32>
    %cst_28 = arith.constant dense<0.000000e+00> : vector<16x32xf32>
    %64 = tpu.matmul %62, %63, %cst_28 {dimension_numbers = #tpu.dot_dimension_numbers<[1], [0], [0], [1], [0, 0, 1, 1], [], []>} : vector<16x8xf32>, vector<8x32xf32>, vector<16x32xf32> -> vector<16x32xf32>
    %65 = arith.addf %60, %64 : vector<16x32xf32>
    %66 = vector.extract_strided_slice %54 {offsets = [4, 0, 0], sizes = [2, 8, 8], strides = [1, 1, 1]} : vector<8x8x8xf32> to vector<2x8x8xf32>
    %67 = vector.shape_cast %66 : vector<2x8x8xf32> to vector<16x8xf32>
    %68 = vector.extract_strided_slice %35 {offsets = [16, 0], sizes = [8, 32], strides = [1, 1]} : vector<32x32xf32> to vector<8x32xf32>
    %cst_29 = arith.constant dense<0.000000e+00> : vector<16x32xf32>
    %69 = tpu.matmul %67, %68, %cst_29 {dimension_numbers = #tpu.dot_dimension_numbers<[1], [0], [0], [1], [0, 0, 1, 1], [], []>} : vector<16x8xf32>, vector<8x32xf32>, vector<16x32xf32> -> vector<16x32xf32>
    %70 = arith.addf %65, %69 : vector<16x32xf32>
    %71 = vector.extract_strided_slice %54 {offsets = [6, 0, 0], sizes = [2, 8, 8], strides = [1, 1, 1]} : vector<8x8x8xf32> to vector<2x8x8xf32>
    %72 = vector.shape_cast %71 : vector<2x8x8xf32> to vector<16x8xf32>
    %73 = vector.extract_strided_slice %35 {offsets = [24, 0], sizes = [8, 32], strides = [1, 1]} : vector<32x32xf32> to vector<8x32xf32>
    %cst_30 = arith.constant dense<0.000000e+00> : vector<16x32xf32>
    %74 = tpu.matmul %72, %73, %cst_30 {dimension_numbers = #tpu.dot_dimension_numbers<[1], [0], [0], [1], [0, 0, 1, 1], [], []>} : vector<16x8xf32>, vector<8x32xf32>, vector<16x32xf32> -> vector<16x32xf32>
    %75 = arith.addf %70, %74 : vector<16x32xf32>
    %76 = vector.broadcast %37 : vector<1x32xf32> to vector<16x32xf32>
    %77 = arith.addf %75, %76 : vector<16x32xf32>
    %c0_31 = arith.constant 0 : index
    %c0_32 = arith.constant 0 : index
    %c0_33 = arith.constant 0 : index
    %78 = vector.load %arg14[%c0_31, %c0_32, %c0_33] : memref<2x1x32xf32, #tpu.memory_space<vmem>>, vector<1x1x32xf32>
    %79 = vector.shape_cast %78 : vector<1x1x32xf32> to vector<1x32xf32>
    %c0_34 = arith.constant 0 : index
    %c0_35 = arith.constant 0 : index
    %c0_36 = arith.constant 0 : index
    %80 = vector.load %arg15[%c0_34, %c0_35, %c0_36] : memref<2x1x32xf32, #tpu.memory_space<vmem>>, vector<1x1x32xf32>
    %81 = vector.shape_cast %80 : vector<1x1x32xf32> to vector<1x32xf32>
    %82 = arith.addf %77, %15 : vector<16x32xf32>
    %cst_37 = arith.constant dense<0.000000e+00> : vector<16xf32>
    %83 = vector.multi_reduction <add>, %82, %cst_37 [1] : vector<16x32xf32> to vector<16xf32>
    %84 = vector.shape_cast %83 : vector<16xf32> to vector<16x1xf32>
    %cst_38 = arith.constant 3.200000e+01 : f32
    %85 = vector.broadcast %cst_38 : f32 to vector<16x1xf32>
    %86 = arith.divf %84, %85 : vector<16x1xf32>
    %87 = vector.broadcast %86 : vector<16x1xf32> to vector<16x32xf32>
    %88 = arith.subf %82, %87 : vector<16x32xf32>
    %89 = arith.mulf %88, %88 : vector<16x32xf32>
    %cst_39 = arith.constant dense<0.000000e+00> : vector<16xf32>
    %90 = vector.multi_reduction <add>, %89, %cst_39 [1] : vector<16x32xf32> to vector<16xf32>
    %91 = vector.shape_cast %90 : vector<16xf32> to vector<16x1xf32>
    %cst_40 = arith.constant 3.200000e+01 : f32
    %92 = vector.broadcast %cst_40 : f32 to vector<16x1xf32>
    %93 = arith.divf %91, %92 : vector<16x1xf32>
    %94 = vector.broadcast %86 : vector<16x1xf32> to vector<16x32xf32>
    %95 = arith.subf %82, %94 : vector<16x32xf32>
    %cst_41 = arith.constant 9.99999974E-6 : f32
    %96 = vector.broadcast %cst_41 : f32 to vector<16x1xf32>
    %97 = arith.addf %93, %96 : vector<16x1xf32>
    %98 = math.rsqrt %97 : vector<16x1xf32>
    %99 = vector.broadcast %98 : vector<16x1xf32> to vector<16x32xf32>
    %100 = arith.mulf %95, %99 : vector<16x32xf32>
    %101 = vector.broadcast %79 : vector<1x32xf32> to vector<16x32xf32>
    %102 = arith.mulf %100, %101 : vector<16x32xf32>
    %103 = vector.broadcast %81 : vector<1x32xf32> to vector<16x32xf32>
    %104 = arith.addf %102, %103 : vector<16x32xf32>
    %105 = vector.shape_cast %104 : vector<16x32xf32> to vector<2x8x32xf32>
    %106 = vector.extract_strided_slice %105 {offsets = [0, 0, 0], sizes = [2, 8, 8], strides = [1, 1, 1]} : vector<2x8x32xf32> to vector<2x8x8xf32>
    %107 = vector.extract_strided_slice %105 {offsets = [0, 0, 8], sizes = [2, 8, 8], strides = [1, 1, 1]} : vector<2x8x32xf32> to vector<2x8x8xf32>
    %108 = vector.extract_strided_slice %105 {offsets = [0, 0, 16], sizes = [2, 8, 8], strides = [1, 1, 1]} : vector<2x8x32xf32> to vector<2x8x8xf32>
    %109 = vector.extract_strided_slice %105 {offsets = [0, 0, 24], sizes = [2, 8, 8], strides = [1, 1, 1]} : vector<2x8x32xf32> to vector<2x8x8xf32>
    %110 = tpu.concatenate %106, %107, %108, %109 in 0 : vector<2x8x8xf32>, vector<2x8x8xf32>, vector<2x8x8xf32>, vector<2x8x8xf32> -> vector<8x8x8xf32>
    %c0_42 = arith.constant 0 : index
    %c0_43 = arith.constant 0 : index
    %c0_44 = arith.constant 0 : index
    %111 = vector.load %arg8[%c0_42, %c0_43, %c0_44] : memref<2x32x32xf32, #tpu.memory_space<vmem>>, vector<1x32x32xf32>
    %112 = vector.shape_cast %111 : vector<1x32x32xf32> to vector<32x32xf32>
    %c0_45 = arith.constant 0 : index
    %c0_46 = arith.constant 0 : index
    %c0_47 = arith.constant 0 : index
    %113 = vector.load %arg9[%c0_45, %c0_46, %c0_47] : memref<2x1x32xf32, #tpu.memory_space<vmem>>, vector<1x1x32xf32>
    %114 = vector.shape_cast %113 : vector<1x1x32xf32> to vector<1x32xf32>
    "tpu.trace_start"() <{level = 10 : i32, message = "bqd,bkd->bqk"}> : () -> ()
    %cst_48 = arith.constant dense<0.000000e+00> : vector<8x8x8xf32>
    %115 = tpu.matmul %110, %27, %cst_48 {dimension_numbers = #tpu.dot_dimension_numbers<[2], [2], [1], [1], [0, 0, 0, 1, 1, 1], [0], [0]>} : vector<8x8x8xf32>, vector<8x8x8xf32>, vector<8x8x8xf32> -> vector<8x8x8xf32>
    "tpu.trace_stop"() : () -> ()
    %cst_49 = arith.constant 0.353553385 : f32
    %116 = vector.broadcast %cst_49 : f32 to vector<8x8x8xf32>
    %117 = arith.mulf %115, %116 : vector<8x8x8xf32>
    %118 = vector.shape_cast %22 : vector<8x8xf32> to vector<1x8x8xf32>
    %119 = vector.broadcast %118 : vector<1x8x8xf32> to vector<8x8x8xf32>
    %120 = arith.addf %117, %119 : vector<8x8x8xf32>
    %cst_50 = arith.constant dense<0xFF800000> : vector<8x8xf32>
    %121 = vector.multi_reduction <maximumf>, %120, %cst_50 [2] : vector<8x8x8xf32> to vector<8x8xf32>
    %122 = vector.shape_cast %121 : vector<8x8xf32> to vector<8x8x1xf32>
    %123 = vector.broadcast %122 : vector<8x8x1xf32> to vector<8x8x8xf32>
    %124 = arith.subf %120, %123 : vector<8x8x8xf32>
    %125 = math.exp %124 : vector<8x8x8xf32>
    %cst_51 = arith.constant dense<0.000000e+00> : vector<8x8xf32>
    %126 = vector.multi_reduction <add>, %125, %cst_51 [2] : vector<8x8x8xf32> to vector<8x8xf32>
    %127 = vector.shape_cast %126 : vector<8x8xf32> to vector<8x8x1xf32>
    %128 = tpu.reciprocal %127 {approx = true} : vector<8x8x1xf32> -> vector<8x8x1xf32>
    %129 = vector.broadcast %128 : vector<8x8x1xf32> to vector<8x8x8xf32>
    %130 = arith.mulf %125, %129 : vector<8x8x8xf32>
    "tpu.trace_start"() <{level = 10 : i32, message = "bqk,bkd->bqd"}> : () -> ()
    %cst_52 = arith.constant dense<0.000000e+00> : vector<8x8x8xf32>
    %131 = tpu.matmul %130, %27, %cst_52 {dimension_numbers = #tpu.dot_dimension_numbers<[2], [1], [1], [2], [0, 0, 0, 1, 1, 2], [0], [0]>} : vector<8x8x8xf32>, vector<8x8x8xf32>, vector<8x8x8xf32> -> vector<8x8x8xf32>
    %cst_53 = arith.constant 0.000000e+00 : f32
    "tpu.trace_stop"() : () -> ()
    %132 = vector.broadcast %cst_53 : f32 to vector<16x32xf32>
    %133 = vector.extract_strided_slice %131 {offsets = [0, 0, 0], sizes = [2, 8, 8], strides = [1, 1, 1]} : vector<8x8x8xf32> to vector<2x8x8xf32>
    %134 = vector.shape_cast %133 : vector<2x8x8xf32> to vector<16x8xf32>
    %135 = vector.extract_strided_slice %112 {offsets = [0, 0], sizes = [8, 32], strides = [1, 1]} : vector<32x32xf32> to vector<8x32xf32>
    %cst_54 = arith.constant dense<0.000000e+00> : vector<16x32xf32>
    %136 = tpu.matmul %134, %135, %cst_54 {dimension_numbers = #tpu.dot_dimension_numbers<[1], [0], [0], [1], [0, 0, 1, 1], [], []>} : vector<16x8xf32>, vector<8x32xf32>, vector<16x32xf32> -> vector<16x32xf32>
    %137 = arith.addf %132, %136 : vector<16x32xf32>
    %138 = vector.extract_strided_slice %131 {offsets = [2, 0, 0], sizes = [2, 8, 8], strides = [1, 1, 1]} : vector<8x8x8xf32> to vector<2x8x8xf32>
    %139 = vector.shape_cast %138 : vector<2x8x8xf32> to vector<16x8xf32>
    %140 = vector.extract_strided_slice %112 {offsets = [8, 0], sizes = [8, 32], strides = [1, 1]} : vector<32x32xf32> to vector<8x32xf32>
    %cst_55 = arith.constant dense<0.000000e+00> : vector<16x32xf32>
    %141 = tpu.matmul %139, %140, %cst_55 {dimension_numbers = #tpu.dot_dimension_numbers<[1], [0], [0], [1], [0, 0, 1, 1], [], []>} : vector<16x8xf32>, vector<8x32xf32>, vector<16x32xf32> -> vector<16x32xf32>
    %142 = arith.addf %137, %141 : vector<16x32xf32>
    %143 = vector.extract_strided_slice %131 {offsets = [4, 0, 0], sizes = [2, 8, 8], strides = [1, 1, 1]} : vector<8x8x8xf32> to vector<2x8x8xf32>
    %144 = vector.shape_cast %143 : vector<2x8x8xf32> to vector<16x8xf32>
    %145 = vector.extract_strided_slice %112 {offsets = [16, 0], sizes = [8, 32], strides = [1, 1]} : vector<32x32xf32> to vector<8x32xf32>
    %cst_56 = arith.constant dense<0.000000e+00> : vector<16x32xf32>
    %146 = tpu.matmul %144, %145, %cst_56 {dimension_numbers = #tpu.dot_dimension_numbers<[1], [0], [0], [1], [0, 0, 1, 1], [], []>} : vector<16x8xf32>, vector<8x32xf32>, vector<16x32xf32> -> vector<16x32xf32>
    %147 = arith.addf %142, %146 : vector<16x32xf32>
    %148 = vector.extract_strided_slice %131 {offsets = [6, 0, 0], sizes = [2, 8, 8], strides = [1, 1, 1]} : vector<8x8x8xf32> to vector<2x8x8xf32>
    %149 = vector.shape_cast %148 : vector<2x8x8xf32> to vector<16x8xf32>
    %150 = vector.extract_strided_slice %112 {offsets = [24, 0], sizes = [8, 32], strides = [1, 1]} : vector<32x32xf32> to vector<8x32xf32>
    %cst_57 = arith.constant dense<0.000000e+00> : vector<16x32xf32>
    %151 = tpu.matmul %149, %150, %cst_57 {dimension_numbers = #tpu.dot_dimension_numbers<[1], [0], [0], [1], [0, 0, 1, 1], [], []>} : vector<16x8xf32>, vector<8x32xf32>, vector<16x32xf32> -> vector<16x32xf32>
    %152 = arith.addf %147, %151 : vector<16x32xf32>
    %153 = vector.broadcast %114 : vector<1x32xf32> to vector<16x32xf32>
    %154 = arith.addf %152, %153 : vector<16x32xf32>
    %c0_58 = arith.constant 0 : index
    %c0_59 = arith.constant 0 : index
    %c0_60 = arith.constant 0 : index
    %155 = vector.load %arg16[%c0_58, %c0_59, %c0_60] : memref<2x1x32xf32, #tpu.memory_space<vmem>>, vector<1x1x32xf32>
    %156 = vector.shape_cast %155 : vector<1x1x32xf32> to vector<1x32xf32>
    %c0_61 = arith.constant 0 : index
    %c0_62 = arith.constant 0 : index
    %c0_63 = arith.constant 0 : index
    %157 = vector.load %arg17[%c0_61, %c0_62, %c0_63] : memref<2x1x32xf32, #tpu.memory_space<vmem>>, vector<1x1x32xf32>
    %158 = vector.shape_cast %157 : vector<1x1x32xf32> to vector<1x32xf32>
    %159 = arith.addf %154, %104 : vector<16x32xf32>
    %cst_64 = arith.constant dense<0.000000e+00> : vector<16xf32>
    %160 = vector.multi_reduction <add>, %159, %cst_64 [1] : vector<16x32xf32> to vector<16xf32>
    %161 = vector.shape_cast %160 : vector<16xf32> to vector<16x1xf32>
    %cst_65 = arith.constant 3.200000e+01 : f32
    %162 = vector.broadcast %cst_65 : f32 to vector<16x1xf32>
    %163 = arith.divf %161, %162 : vector<16x1xf32>
    %164 = vector.broadcast %163 : vector<16x1xf32> to vector<16x32xf32>
    %165 = arith.subf %159, %164 : vector<16x32xf32>
    %166 = arith.mulf %165, %165 : vector<16x32xf32>
    %cst_66 = arith.constant dense<0.000000e+00> : vector<16xf32>
    %167 = vector.multi_reduction <add>, %166, %cst_66 [1] : vector<16x32xf32> to vector<16xf32>
    %168 = vector.shape_cast %167 : vector<16xf32> to vector<16x1xf32>
    %cst_67 = arith.constant 3.200000e+01 : f32
    %169 = vector.broadcast %cst_67 : f32 to vector<16x1xf32>
    %170 = arith.divf %168, %169 : vector<16x1xf32>
    %171 = vector.broadcast %163 : vector<16x1xf32> to vector<16x32xf32>
    %172 = arith.subf %159, %171 : vector<16x32xf32>
    %cst_68 = arith.constant 9.99999974E-6 : f32
    %173 = vector.broadcast %cst_68 : f32 to vector<16x1xf32>
    %174 = arith.addf %170, %173 : vector<16x1xf32>
    %175 = math.rsqrt %174 : vector<16x1xf32>
    %176 = vector.broadcast %175 : vector<16x1xf32> to vector<16x32xf32>
    %177 = arith.mulf %172, %176 : vector<16x32xf32>
    %178 = vector.broadcast %156 : vector<1x32xf32> to vector<16x32xf32>
    %179 = arith.mulf %177, %178 : vector<16x32xf32>
    %180 = vector.broadcast %158 : vector<1x32xf32> to vector<16x32xf32>
    %181 = arith.addf %179, %180 : vector<16x32xf32>
    %c0_69 = arith.constant 0 : index
    %c0_70 = arith.constant 0 : index
    %c0_71 = arith.constant 0 : index
    %182 = vector.load %arg10[%c0_69, %c0_70, %c0_71] : memref<2x32x64xf32, #tpu.memory_space<vmem>>, vector<1x32x64xf32>
    %183 = vector.shape_cast %182 : vector<1x32x64xf32> to vector<32x64xf32>
    %cst_72 = arith.constant dense<0.000000e+00> : vector<16x64xf32>
    %184 = tpu.matmul %181, %183, %cst_72 {dimension_numbers = #tpu.dot_dimension_numbers<[1], [0], [0], [1], [0, 0, 1, 1], [], []>} : vector<16x32xf32>, vector<32x64xf32>, vector<16x64xf32> -> vector<16x64xf32>
    %c0_73 = arith.constant 0 : index
    %c0_74 = arith.constant 0 : index
    %c0_75 = arith.constant 0 : index
    %185 = vector.load %arg11[%c0_73, %c0_74, %c0_75] : memref<2x1x64xf32, #tpu.memory_space<vmem>>, vector<1x1x64xf32>
    %186 = vector.shape_cast %185 : vector<1x1x64xf32> to vector<1x64xf32>
    %187 = vector.broadcast %186 : vector<1x64xf32> to vector<16x64xf32>
    %188 = arith.addf %184, %187 : vector<16x64xf32>
    %cst_76 = arith.constant 0.000000e+00 : f32
    %189 = vector.broadcast %cst_76 : f32 to vector<16x64xf32>
    %190 = arith.maximumf %188, %189 : vector<16x64xf32>
    %c0_77 = arith.constant 0 : index
    %c0_78 = arith.constant 0 : index
    %c0_79 = arith.constant 0 : index
    %191 = vector.load %arg12[%c0_77, %c0_78, %c0_79] : memref<2x64x32xf32, #tpu.memory_space<vmem>>, vector<1x64x32xf32>
    %192 = vector.shape_cast %191 : vector<1x64x32xf32> to vector<64x32xf32>
    %cst_80 = arith.constant dense<0.000000e+00> : vector<16x32xf32>
    %193 = tpu.matmul %190, %192, %cst_80 {dimension_numbers = #tpu.dot_dimension_numbers<[1], [0], [0], [1], [0, 0, 1, 1], [], []>} : vector<16x64xf32>, vector<64x32xf32>, vector<16x32xf32> -> vector<16x32xf32>
    %c0_81 = arith.constant 0 : index
    %c0_82 = arith.constant 0 : index
    %c0_83 = arith.constant 0 : index
    %194 = vector.load %arg13[%c0_81, %c0_82, %c0_83] : memref<2x1x32xf32, #tpu.memory_space<vmem>>, vector<1x1x32xf32>
    %195 = vector.shape_cast %194 : vector<1x1x32xf32> to vector<1x32xf32>
    %196 = vector.broadcast %195 : vector<1x32xf32> to vector<16x32xf32>
    %197 = arith.addf %193, %196 : vector<16x32xf32>
    %c0_84 = arith.constant 0 : index
    %c0_85 = arith.constant 0 : index
    %c0_86 = arith.constant 0 : index
    %198 = vector.load %arg18[%c0_84, %c0_85, %c0_86] : memref<2x1x32xf32, #tpu.memory_space<vmem>>, vector<1x1x32xf32>
    %199 = vector.shape_cast %198 : vector<1x1x32xf32> to vector<1x32xf32>
    %c0_87 = arith.constant 0 : index
    %c0_88 = arith.constant 0 : index
    %c0_89 = arith.constant 0 : index
    %200 = vector.load %arg19[%c0_87, %c0_88, %c0_89] : memref<2x1x32xf32, #tpu.memory_space<vmem>>, vector<1x1x32xf32>
    %201 = vector.shape_cast %200 : vector<1x1x32xf32> to vector<1x32xf32>
    %202 = arith.addf %197, %181 : vector<16x32xf32>
    %cst_90 = arith.constant dense<0.000000e+00> : vector<16xf32>
    %203 = vector.multi_reduction <add>, %202, %cst_90 [1] : vector<16x32xf32> to vector<16xf32>
    %204 = vector.shape_cast %203 : vector<16xf32> to vector<16x1xf32>
    %cst_91 = arith.constant 3.200000e+01 : f32
    %205 = vector.broadcast %cst_91 : f32 to vector<16x1xf32>
    %206 = arith.divf %204, %205 : vector<16x1xf32>
    %207 = vector.broadcast %206 : vector<16x1xf32> to vector<16x32xf32>
    %208 = arith.subf %202, %207 : vector<16x32xf32>
    %209 = arith.mulf %208, %208 : vector<16x32xf32>
    %cst_92 = arith.constant dense<0.000000e+00> : vector<16xf32>
    %210 = vector.multi_reduction <add>, %209, %cst_92 [1] : vector<16x32xf32> to vector<16xf32>
    %211 = vector.shape_cast %210 : vector<16xf32> to vector<16x1xf32>
    %cst_93 = arith.constant 3.200000e+01 : f32
    %212 = vector.broadcast %cst_93 : f32 to vector<16x1xf32>
    %213 = arith.divf %211, %212 : vector<16x1xf32>
    %214 = vector.broadcast %206 : vector<16x1xf32> to vector<16x32xf32>
    %215 = arith.subf %202, %214 : vector<16x32xf32>
    %cst_94 = arith.constant 9.99999974E-6 : f32
    %216 = vector.broadcast %cst_94 : f32 to vector<16x1xf32>
    %217 = arith.addf %213, %216 : vector<16x1xf32>
    %218 = math.rsqrt %217 : vector<16x1xf32>
    %219 = vector.broadcast %218 : vector<16x1xf32> to vector<16x32xf32>
    %220 = arith.mulf %215, %219 : vector<16x32xf32>
    %221 = vector.broadcast %199 : vector<1x32xf32> to vector<16x32xf32>
    %222 = arith.mulf %220, %221 : vector<16x32xf32>
    %223 = vector.broadcast %201 : vector<1x32xf32> to vector<16x32xf32>
    %224 = arith.addf %222, %223 : vector<16x32xf32>
    %225 = vector.shape_cast %224 : vector<16x32xf32> to vector<2x8x32xf32>
    %226 = vector.extract_strided_slice %225 {offsets = [0, 0, 0], sizes = [2, 8, 8], strides = [1, 1, 1]} : vector<2x8x32xf32> to vector<2x8x8xf32>
    %227 = vector.extract_strided_slice %225 {offsets = [0, 0, 8], sizes = [2, 8, 8], strides = [1, 1, 1]} : vector<2x8x32xf32> to vector<2x8x8xf32>
    %228 = vector.extract_strided_slice %225 {offsets = [0, 0, 16], sizes = [2, 8, 8], strides = [1, 1, 1]} : vector<2x8x32xf32> to vector<2x8x8xf32>
    %229 = vector.extract_strided_slice %225 {offsets = [0, 0, 24], sizes = [2, 8, 8], strides = [1, 1, 1]} : vector<2x8x32xf32> to vector<2x8x8xf32>
    %230 = tpu.concatenate %226, %227, %228, %229 in 0 : vector<2x8x8xf32>, vector<2x8x8xf32>, vector<2x8x8xf32>, vector<2x8x8xf32> -> vector<8x8x8xf32>
    %c1 = arith.constant 1 : index
    %c0_95 = arith.constant 0 : index
    %c0_96 = arith.constant 0 : index
    %231 = vector.load %arg6[%c1, %c0_95, %c0_96] : memref<2x32x32xf32, #tpu.memory_space<vmem>>, vector<1x32x32xf32>
    %232 = vector.shape_cast %231 : vector<1x32x32xf32> to vector<32x32xf32>
    %c1_97 = arith.constant 1 : index
    %c0_98 = arith.constant 0 : index
    %c0_99 = arith.constant 0 : index
    %233 = vector.load %arg7[%c1_97, %c0_98, %c0_99] : memref<2x1x32xf32, #tpu.memory_space<vmem>>, vector<1x1x32xf32>
    %234 = vector.shape_cast %233 : vector<1x1x32xf32> to vector<1x32xf32>
    "tpu.trace_start"() <{level = 10 : i32, message = "bqd,bkd->bqk"}> : () -> ()
    %cst_100 = arith.constant dense<0.000000e+00> : vector<8x8x8xf32>
    %235 = tpu.matmul %230, %230, %cst_100 {dimension_numbers = #tpu.dot_dimension_numbers<[2], [2], [1], [1], [0, 0, 0, 1, 1, 1], [0], [0]>} : vector<8x8x8xf32>, vector<8x8x8xf32>, vector<8x8x8xf32> -> vector<8x8x8xf32>
    "tpu.trace_stop"() : () -> ()
    %cst_101 = arith.constant 0.353553385 : f32
    %236 = vector.broadcast %cst_101 : f32 to vector<8x8x8xf32>
    %237 = arith.mulf %235, %236 : vector<8x8x8xf32>
    %238 = vector.shape_cast %19 : vector<8x8xf32> to vector<1x8x8xf32>
    %239 = vector.broadcast %238 : vector<1x8x8xf32> to vector<8x8x8xf32>
    %240 = arith.addf %237, %239 : vector<8x8x8xf32>
    %cst_102 = arith.constant dense<0xFF800000> : vector<8x8xf32>
    %241 = vector.multi_reduction <maximumf>, %240, %cst_102 [2] : vector<8x8x8xf32> to vector<8x8xf32>
    %242 = vector.shape_cast %241 : vector<8x8xf32> to vector<8x8x1xf32>
    %243 = vector.broadcast %242 : vector<8x8x1xf32> to vector<8x8x8xf32>
    %244 = arith.subf %240, %243 : vector<8x8x8xf32>
    %245 = math.exp %244 : vector<8x8x8xf32>
    %cst_103 = arith.constant dense<0.000000e+00> : vector<8x8xf32>
    %246 = vector.multi_reduction <add>, %245, %cst_103 [2] : vector<8x8x8xf32> to vector<8x8xf32>
    %247 = vector.shape_cast %246 : vector<8x8xf32> to vector<8x8x1xf32>
    %248 = tpu.reciprocal %247 {approx = true} : vector<8x8x1xf32> -> vector<8x8x1xf32>
    %249 = vector.broadcast %248 : vector<8x8x1xf32> to vector<8x8x8xf32>
    %250 = arith.mulf %245, %249 : vector<8x8x8xf32>
    "tpu.trace_start"() <{level = 10 : i32, message = "bqk,bkd->bqd"}> : () -> ()
    %cst_104 = arith.constant dense<0.000000e+00> : vector<8x8x8xf32>
    %251 = tpu.matmul %250, %230, %cst_104 {dimension_numbers = #tpu.dot_dimension_numbers<[2], [1], [1], [2], [0, 0, 0, 1, 1, 2], [0], [0]>} : vector<8x8x8xf32>, vector<8x8x8xf32>, vector<8x8x8xf32> -> vector<8x8x8xf32>
    %cst_105 = arith.constant 0.000000e+00 : f32
    "tpu.trace_stop"() : () -> ()
    %252 = vector.broadcast %cst_105 : f32 to vector<16x32xf32>
    %253 = vector.extract_strided_slice %251 {offsets = [0, 0, 0], sizes = [2, 8, 8], strides = [1, 1, 1]} : vector<8x8x8xf32> to vector<2x8x8xf32>
    %254 = vector.shape_cast %253 : vector<2x8x8xf32> to vector<16x8xf32>
    %255 = vector.extract_strided_slice %232 {offsets = [0, 0], sizes = [8, 32], strides = [1, 1]} : vector<32x32xf32> to vector<8x32xf32>
    %cst_106 = arith.constant dense<0.000000e+00> : vector<16x32xf32>
    %256 = tpu.matmul %254, %255, %cst_106 {dimension_numbers = #tpu.dot_dimension_numbers<[1], [0], [0], [1], [0, 0, 1, 1], [], []>} : vector<16x8xf32>, vector<8x32xf32>, vector<16x32xf32> -> vector<16x32xf32>
    %257 = arith.addf %252, %256 : vector<16x32xf32>
    %258 = vector.extract_strided_slice %251 {offsets = [2, 0, 0], sizes = [2, 8, 8], strides = [1, 1, 1]} : vector<8x8x8xf32> to vector<2x8x8xf32>
    %259 = vector.shape_cast %258 : vector<2x8x8xf32> to vector<16x8xf32>
    %260 = vector.extract_strided_slice %232 {offsets = [8, 0], sizes = [8, 32], strides = [1, 1]} : vector<32x32xf32> to vector<8x32xf32>
    %cst_107 = arith.constant dense<0.000000e+00> : vector<16x32xf32>
    %261 = tpu.matmul %259, %260, %cst_107 {dimension_numbers = #tpu.dot_dimension_numbers<[1], [0], [0], [1], [0, 0, 1, 1], [], []>} : vector<16x8xf32>, vector<8x32xf32>, vector<16x32xf32> -> vector<16x32xf32>
    %262 = arith.addf %257, %261 : vector<16x32xf32>
    %263 = vector.extract_strided_slice %251 {offsets = [4, 0, 0], sizes = [2, 8, 8], strides = [1, 1, 1]} : vector<8x8x8xf32> to vector<2x8x8xf32>
    %264 = vector.shape_cast %263 : vector<2x8x8xf32> to vector<16x8xf32>
    %265 = vector.extract_strided_slice %232 {offsets = [16, 0], sizes = [8, 32], strides = [1, 1]} : vector<32x32xf32> to vector<8x32xf32>
    %cst_108 = arith.constant dense<0.000000e+00> : vector<16x32xf32>
    %266 = tpu.matmul %264, %265, %cst_108 {dimension_numbers = #tpu.dot_dimension_numbers<[1], [0], [0], [1], [0, 0, 1, 1], [], []>} : vector<16x8xf32>, vector<8x32xf32>, vector<16x32xf32> -> vector<16x32xf32>
    %267 = arith.addf %262, %266 : vector<16x32xf32>
    %268 = vector.extract_strided_slice %251 {offsets = [6, 0, 0], sizes = [2, 8, 8], strides = [1, 1, 1]} : vector<8x8x8xf32> to vector<2x8x8xf32>
    %269 = vector.shape_cast %268 : vector<2x8x8xf32> to vector<16x8xf32>
    %270 = vector.extract_strided_slice %232 {offsets = [24, 0], sizes = [8, 32], strides = [1, 1]} : vector<32x32xf32> to vector<8x32xf32>
    %cst_109 = arith.constant dense<0.000000e+00> : vector<16x32xf32>
    %271 = tpu.matmul %269, %270, %cst_109 {dimension_numbers = #tpu.dot_dimension_numbers<[1], [0], [0], [1], [0, 0, 1, 1], [], []>} : vector<16x8xf32>, vector<8x32xf32>, vector<16x32xf32> -> vector<16x32xf32>
    %272 = arith.addf %267, %271 : vector<16x32xf32>
    %273 = vector.broadcast %234 : vector<1x32xf32> to vector<16x32xf32>
    %274 = arith.addf %272, %273 : vector<16x32xf32>
    %c1_110 = arith.constant 1 : index
    %c0_111 = arith.constant 0 : index
    %c0_112 = arith.constant 0 : index
    %275 = vector.load %arg14[%c1_110, %c0_111, %c0_112] : memref<2x1x32xf32, #tpu.memory_space<vmem>>, vector<1x1x32xf32>
    %276 = vector.shape_cast %275 : vector<1x1x32xf32> to vector<1x32xf32>
    %c1_113 = arith.constant 1 : index
    %c0_114 = arith.constant 0 : index
    %c0_115 = arith.constant 0 : index
    %277 = vector.load %arg15[%c1_113, %c0_114, %c0_115] : memref<2x1x32xf32, #tpu.memory_space<vmem>>, vector<1x1x32xf32>
    %278 = vector.shape_cast %277 : vector<1x1x32xf32> to vector<1x32xf32>
    %279 = arith.addf %274, %224 : vector<16x32xf32>
    %cst_116 = arith.constant dense<0.000000e+00> : vector<16xf32>
    %280 = vector.multi_reduction <add>, %279, %cst_116 [1] : vector<16x32xf32> to vector<16xf32>
    %281 = vector.shape_cast %280 : vector<16xf32> to vector<16x1xf32>
    %cst_117 = arith.constant 3.200000e+01 : f32
    %282 = vector.broadcast %cst_117 : f32 to vector<16x1xf32>
    %283 = arith.divf %281, %282 : vector<16x1xf32>
    %284 = vector.broadcast %283 : vector<16x1xf32> to vector<16x32xf32>
    %285 = arith.subf %279, %284 : vector<16x32xf32>
    %286 = arith.mulf %285, %285 : vector<16x32xf32>
    %cst_118 = arith.constant dense<0.000000e+00> : vector<16xf32>
    %287 = vector.multi_reduction <add>, %286, %cst_118 [1] : vector<16x32xf32> to vector<16xf32>
    %288 = vector.shape_cast %287 : vector<16xf32> to vector<16x1xf32>
    %cst_119 = arith.constant 3.200000e+01 : f32
    %289 = vector.broadcast %cst_119 : f32 to vector<16x1xf32>
    %290 = arith.divf %288, %289 : vector<16x1xf32>
    %291 = vector.broadcast %283 : vector<16x1xf32> to vector<16x32xf32>
    %292 = arith.subf %279, %291 : vector<16x32xf32>
    %cst_120 = arith.constant 9.99999974E-6 : f32
    %293 = vector.broadcast %cst_120 : f32 to vector<16x1xf32>
    %294 = arith.addf %290, %293 : vector<16x1xf32>
    %295 = math.rsqrt %294 : vector<16x1xf32>
    %296 = vector.broadcast %295 : vector<16x1xf32> to vector<16x32xf32>
    %297 = arith.mulf %292, %296 : vector<16x32xf32>
    %298 = vector.broadcast %276 : vector<1x32xf32> to vector<16x32xf32>
    %299 = arith.mulf %297, %298 : vector<16x32xf32>
    %300 = vector.broadcast %278 : vector<1x32xf32> to vector<16x32xf32>
    %301 = arith.addf %299, %300 : vector<16x32xf32>
    %302 = vector.shape_cast %301 : vector<16x32xf32> to vector<2x8x32xf32>
    %303 = vector.extract_strided_slice %302 {offsets = [0, 0, 0], sizes = [2, 8, 8], strides = [1, 1, 1]} : vector<2x8x32xf32> to vector<2x8x8xf32>
    %304 = vector.extract_strided_slice %302 {offsets = [0, 0, 8], sizes = [2, 8, 8], strides = [1, 1, 1]} : vector<2x8x32xf32> to vector<2x8x8xf32>
    %305 = vector.extract_strided_slice %302 {offsets = [0, 0, 16], sizes = [2, 8, 8], strides = [1, 1, 1]} : vector<2x8x32xf32> to vector<2x8x8xf32>
    %306 = vector.extract_strided_slice %302 {offsets = [0, 0, 24], sizes = [2, 8, 8], strides = [1, 1, 1]} : vector<2x8x32xf32> to vector<2x8x8xf32>
    %307 = tpu.concatenate %303, %304, %305, %306 in 0 : vector<2x8x8xf32>, vector<2x8x8xf32>, vector<2x8x8xf32>, vector<2x8x8xf32> -> vector<8x8x8xf32>
    %c1_121 = arith.constant 1 : index
    %c0_122 = arith.constant 0 : index
    %c0_123 = arith.constant 0 : index
    %308 = vector.load %arg8[%c1_121, %c0_122, %c0_123] : memref<2x32x32xf32, #tpu.memory_space<vmem>>, vector<1x32x32xf32>
    %309 = vector.shape_cast %308 : vector<1x32x32xf32> to vector<32x32xf32>
    %c1_124 = arith.constant 1 : index
    %c0_125 = arith.constant 0 : index
    %c0_126 = arith.constant 0 : index
    %310 = vector.load %arg9[%c1_124, %c0_125, %c0_126] : memref<2x1x32xf32, #tpu.memory_space<vmem>>, vector<1x1x32xf32>
    %311 = vector.shape_cast %310 : vector<1x1x32xf32> to vector<1x32xf32>
    "tpu.trace_start"() <{level = 10 : i32, message = "bqd,bkd->bqk"}> : () -> ()
    %cst_127 = arith.constant dense<0.000000e+00> : vector<8x8x8xf32>
    %312 = tpu.matmul %307, %27, %cst_127 {dimension_numbers = #tpu.dot_dimension_numbers<[2], [2], [1], [1], [0, 0, 0, 1, 1, 1], [0], [0]>} : vector<8x8x8xf32>, vector<8x8x8xf32>, vector<8x8x8xf32> -> vector<8x8x8xf32>
    "tpu.trace_stop"() : () -> ()
    %cst_128 = arith.constant 0.353553385 : f32
    %313 = vector.broadcast %cst_128 : f32 to vector<8x8x8xf32>
    %314 = arith.mulf %312, %313 : vector<8x8x8xf32>
    %315 = vector.shape_cast %22 : vector<8x8xf32> to vector<1x8x8xf32>
    %316 = vector.broadcast %315 : vector<1x8x8xf32> to vector<8x8x8xf32>
    %317 = arith.addf %314, %316 : vector<8x8x8xf32>
    %cst_129 = arith.constant dense<0xFF800000> : vector<8x8xf32>
    %318 = vector.multi_reduction <maximumf>, %317, %cst_129 [2] : vector<8x8x8xf32> to vector<8x8xf32>
    %319 = vector.shape_cast %318 : vector<8x8xf32> to vector<8x8x1xf32>
    %320 = vector.broadcast %319 : vector<8x8x1xf32> to vector<8x8x8xf32>
    %321 = arith.subf %317, %320 : vector<8x8x8xf32>
    %322 = math.exp %321 : vector<8x8x8xf32>
    %cst_130 = arith.constant dense<0.000000e+00> : vector<8x8xf32>
    %323 = vector.multi_reduction <add>, %322, %cst_130 [2] : vector<8x8x8xf32> to vector<8x8xf32>
    %324 = vector.shape_cast %323 : vector<8x8xf32> to vector<8x8x1xf32>
    %325 = tpu.reciprocal %324 {approx = true} : vector<8x8x1xf32> -> vector<8x8x1xf32>
    %326 = vector.broadcast %325 : vector<8x8x1xf32> to vector<8x8x8xf32>
    %327 = arith.mulf %322, %326 : vector<8x8x8xf32>
    "tpu.trace_start"() <{level = 10 : i32, message = "bqk,bkd->bqd"}> : () -> ()
    %cst_131 = arith.constant dense<0.000000e+00> : vector<8x8x8xf32>
    %328 = tpu.matmul %327, %27, %cst_131 {dimension_numbers = #tpu.dot_dimension_numbers<[2], [1], [1], [2], [0, 0, 0, 1, 1, 2], [0], [0]>} : vector<8x8x8xf32>, vector<8x8x8xf32>, vector<8x8x8xf32> -> vector<8x8x8xf32>
    %cst_132 = arith.constant 0.000000e+00 : f32
    "tpu.trace_stop"() : () -> ()
    %329 = vector.broadcast %cst_132 : f32 to vector<16x32xf32>
    %330 = vector.extract_strided_slice %328 {offsets = [0, 0, 0], sizes = [2, 8, 8], strides = [1, 1, 1]} : vector<8x8x8xf32> to vector<2x8x8xf32>
    %331 = vector.shape_cast %330 : vector<2x8x8xf32> to vector<16x8xf32>
    %332 = vector.extract_strided_slice %309 {offsets = [0, 0], sizes = [8, 32], strides = [1, 1]} : vector<32x32xf32> to vector<8x32xf32>
    %cst_133 = arith.constant dense<0.000000e+00> : vector<16x32xf32>
    %333 = tpu.matmul %331, %332, %cst_133 {dimension_numbers = #tpu.dot_dimension_numbers<[1], [0], [0], [1], [0, 0, 1, 1], [], []>} : vector<16x8xf32>, vector<8x32xf32>, vector<16x32xf32> -> vector<16x32xf32>
    %334 = arith.addf %329, %333 : vector<16x32xf32>
    %335 = vector.extract_strided_slice %328 {offsets = [2, 0, 0], sizes = [2, 8, 8], strides = [1, 1, 1]} : vector<8x8x8xf32> to vector<2x8x8xf32>
    %336 = vector.shape_cast %335 : vector<2x8x8xf32> to vector<16x8xf32>
    %337 = vector.extract_strided_slice %309 {offsets = [8, 0], sizes = [8, 32], strides = [1, 1]} : vector<32x32xf32> to vector<8x32xf32>
    %cst_134 = arith.constant dense<0.000000e+00> : vector<16x32xf32>
    %338 = tpu.matmul %336, %337, %cst_134 {dimension_numbers = #tpu.dot_dimension_numbers<[1], [0], [0], [1], [0, 0, 1, 1], [], []>} : vector<16x8xf32>, vector<8x32xf32>, vector<16x32xf32> -> vector<16x32xf32>
    %339 = arith.addf %334, %338 : vector<16x32xf32>
    %340 = vector.extract_strided_slice %328 {offsets = [4, 0, 0], sizes = [2, 8, 8], strides = [1, 1, 1]} : vector<8x8x8xf32> to vector<2x8x8xf32>
    %341 = vector.shape_cast %340 : vector<2x8x8xf32> to vector<16x8xf32>
    %342 = vector.extract_strided_slice %309 {offsets = [16, 0], sizes = [8, 32], strides = [1, 1]} : vector<32x32xf32> to vector<8x32xf32>
    %cst_135 = arith.constant dense<0.000000e+00> : vector<16x32xf32>
    %343 = tpu.matmul %341, %342, %cst_135 {dimension_numbers = #tpu.dot_dimension_numbers<[1], [0], [0], [1], [0, 0, 1, 1], [], []>} : vector<16x8xf32>, vector<8x32xf32>, vector<16x32xf32> -> vector<16x32xf32>
    %344 = arith.addf %339, %343 : vector<16x32xf32>
    %345 = vector.extract_strided_slice %328 {offsets = [6, 0, 0], sizes = [2, 8, 8], strides = [1, 1, 1]} : vector<8x8x8xf32> to vector<2x8x8xf32>
    %346 = vector.shape_cast %345 : vector<2x8x8xf32> to vector<16x8xf32>
    %347 = vector.extract_strided_slice %309 {offsets = [24, 0], sizes = [8, 32], strides = [1, 1]} : vector<32x32xf32> to vector<8x32xf32>
    %cst_136 = arith.constant dense<0.000000e+00> : vector<16x32xf32>
    %348 = tpu.matmul %346, %347, %cst_136 {dimension_numbers = #tpu.dot_dimension_numbers<[1], [0], [0], [1], [0, 0, 1, 1], [], []>} : vector<16x8xf32>, vector<8x32xf32>, vector<16x32xf32> -> vector<16x32xf32>
    %349 = arith.addf %344, %348 : vector<16x32xf32>
    %350 = vector.broadcast %311 : vector<1x32xf32> to vector<16x32xf32>
    %351 = arith.addf %349, %350 : vector<16x32xf32>
    %c1_137 = arith.constant 1 : index
    %c0_138 = arith.constant 0 : index
    %c0_139 = arith.constant 0 : index
    %352 = vector.load %arg16[%c1_137, %c0_138, %c0_139] : memref<2x1x32xf32, #tpu.memory_space<vmem>>, vector<1x1x32xf32>
    %353 = vector.shape_cast %352 : vector<1x1x32xf32> to vector<1x32xf32>
    %c1_140 = arith.constant 1 : index
    %c0_141 = arith.constant 0 : index
    %c0_142 = arith.constant 0 : index
    %354 = vector.load %arg17[%c1_140, %c0_141, %c0_142] : memref<2x1x32xf32, #tpu.memory_space<vmem>>, vector<1x1x32xf32>
    %355 = vector.shape_cast %354 : vector<1x1x32xf32> to vector<1x32xf32>
    %356 = arith.addf %351, %301 : vector<16x32xf32>
    %cst_143 = arith.constant dense<0.000000e+00> : vector<16xf32>
    %357 = vector.multi_reduction <add>, %356, %cst_143 [1] : vector<16x32xf32> to vector<16xf32>
    %358 = vector.shape_cast %357 : vector<16xf32> to vector<16x1xf32>
    %cst_144 = arith.constant 3.200000e+01 : f32
    %359 = vector.broadcast %cst_144 : f32 to vector<16x1xf32>
    %360 = arith.divf %358, %359 : vector<16x1xf32>
    %361 = vector.broadcast %360 : vector<16x1xf32> to vector<16x32xf32>
    %362 = arith.subf %356, %361 : vector<16x32xf32>
    %363 = arith.mulf %362, %362 : vector<16x32xf32>
    %cst_145 = arith.constant dense<0.000000e+00> : vector<16xf32>
    %364 = vector.multi_reduction <add>, %363, %cst_145 [1] : vector<16x32xf32> to vector<16xf32>
    %365 = vector.shape_cast %364 : vector<16xf32> to vector<16x1xf32>
    %cst_146 = arith.constant 3.200000e+01 : f32
    %366 = vector.broadcast %cst_146 : f32 to vector<16x1xf32>
    %367 = arith.divf %365, %366 : vector<16x1xf32>
    %368 = vector.broadcast %360 : vector<16x1xf32> to vector<16x32xf32>
    %369 = arith.subf %356, %368 : vector<16x32xf32>
    %cst_147 = arith.constant 9.99999974E-6 : f32
    %370 = vector.broadcast %cst_147 : f32 to vector<16x1xf32>
    %371 = arith.addf %367, %370 : vector<16x1xf32>
    %372 = math.rsqrt %371 : vector<16x1xf32>
    %373 = vector.broadcast %372 : vector<16x1xf32> to vector<16x32xf32>
    %374 = arith.mulf %369, %373 : vector<16x32xf32>
    %375 = vector.broadcast %353 : vector<1x32xf32> to vector<16x32xf32>
    %376 = arith.mulf %374, %375 : vector<16x32xf32>
    %377 = vector.broadcast %355 : vector<1x32xf32> to vector<16x32xf32>
    %378 = arith.addf %376, %377 : vector<16x32xf32>
    %c1_148 = arith.constant 1 : index
    %c0_149 = arith.constant 0 : index
    %c0_150 = arith.constant 0 : index
    %379 = vector.load %arg10[%c1_148, %c0_149, %c0_150] : memref<2x32x64xf32, #tpu.memory_space<vmem>>, vector<1x32x64xf32>
    %380 = vector.shape_cast %379 : vector<1x32x64xf32> to vector<32x64xf32>
    %cst_151 = arith.constant dense<0.000000e+00> : vector<16x64xf32>
    %381 = tpu.matmul %378, %380, %cst_151 {dimension_numbers = #tpu.dot_dimension_numbers<[1], [0], [0], [1], [0, 0, 1, 1], [], []>} : vector<16x32xf32>, vector<32x64xf32>, vector<16x64xf32> -> vector<16x64xf32>
    %c1_152 = arith.constant 1 : index
    %c0_153 = arith.constant 0 : index
    %c0_154 = arith.constant 0 : index
    %382 = vector.load %arg11[%c1_152, %c0_153, %c0_154] : memref<2x1x64xf32, #tpu.memory_space<vmem>>, vector<1x1x64xf32>
    %383 = vector.shape_cast %382 : vector<1x1x64xf32> to vector<1x64xf32>
    %384 = vector.broadcast %383 : vector<1x64xf32> to vector<16x64xf32>
    %385 = arith.addf %381, %384 : vector<16x64xf32>
    %cst_155 = arith.constant 0.000000e+00 : f32
    %386 = vector.broadcast %cst_155 : f32 to vector<16x64xf32>
    %387 = arith.maximumf %385, %386 : vector<16x64xf32>
    %c1_156 = arith.constant 1 : index
    %c0_157 = arith.constant 0 : index
    %c0_158 = arith.constant 0 : index
    %388 = vector.load %arg12[%c1_156, %c0_157, %c0_158] : memref<2x64x32xf32, #tpu.memory_space<vmem>>, vector<1x64x32xf32>
    %389 = vector.shape_cast %388 : vector<1x64x32xf32> to vector<64x32xf32>
    %cst_159 = arith.constant dense<0.000000e+00> : vector<16x32xf32>
    %390 = tpu.matmul %387, %389, %cst_159 {dimension_numbers = #tpu.dot_dimension_numbers<[1], [0], [0], [1], [0, 0, 1, 1], [], []>} : vector<16x64xf32>, vector<64x32xf32>, vector<16x32xf32> -> vector<16x32xf32>
    %c1_160 = arith.constant 1 : index
    %c0_161 = arith.constant 0 : index
    %c0_162 = arith.constant 0 : index
    %391 = vector.load %arg13[%c1_160, %c0_161, %c0_162] : memref<2x1x32xf32, #tpu.memory_space<vmem>>, vector<1x1x32xf32>
    %392 = vector.shape_cast %391 : vector<1x1x32xf32> to vector<1x32xf32>
    %393 = vector.broadcast %392 : vector<1x32xf32> to vector<16x32xf32>
    %394 = arith.addf %390, %393 : vector<16x32xf32>
    %c1_163 = arith.constant 1 : index
    %c0_164 = arith.constant 0 : index
    %c0_165 = arith.constant 0 : index
    %395 = vector.load %arg18[%c1_163, %c0_164, %c0_165] : memref<2x1x32xf32, #tpu.memory_space<vmem>>, vector<1x1x32xf32>
    %396 = vector.shape_cast %395 : vector<1x1x32xf32> to vector<1x32xf32>
    %c1_166 = arith.constant 1 : index
    %c0_167 = arith.constant 0 : index
    %c0_168 = arith.constant 0 : index
    %397 = vector.load %arg19[%c1_166, %c0_167, %c0_168] : memref<2x1x32xf32, #tpu.memory_space<vmem>>, vector<1x1x32xf32>
    %398 = vector.shape_cast %397 : vector<1x1x32xf32> to vector<1x32xf32>
    %399 = arith.addf %394, %378 : vector<16x32xf32>
    %cst_169 = arith.constant dense<0.000000e+00> : vector<16xf32>
    %400 = vector.multi_reduction <add>, %399, %cst_169 [1] : vector<16x32xf32> to vector<16xf32>
    %401 = vector.shape_cast %400 : vector<16xf32> to vector<16x1xf32>
    %cst_170 = arith.constant 3.200000e+01 : f32
    %402 = vector.broadcast %cst_170 : f32 to vector<16x1xf32>
    %403 = arith.divf %401, %402 : vector<16x1xf32>
    %404 = vector.broadcast %403 : vector<16x1xf32> to vector<16x32xf32>
    %405 = arith.subf %399, %404 : vector<16x32xf32>
    %406 = arith.mulf %405, %405 : vector<16x32xf32>
    %cst_171 = arith.constant dense<0.000000e+00> : vector<16xf32>
    %407 = vector.multi_reduction <add>, %406, %cst_171 [1] : vector<16x32xf32> to vector<16xf32>
    %408 = vector.shape_cast %407 : vector<16xf32> to vector<16x1xf32>
    %cst_172 = arith.constant 3.200000e+01 : f32
    %409 = vector.broadcast %cst_172 : f32 to vector<16x1xf32>
    %410 = arith.divf %408, %409 : vector<16x1xf32>
    %411 = vector.broadcast %403 : vector<16x1xf32> to vector<16x32xf32>
    %412 = arith.subf %399, %411 : vector<16x32xf32>
    %cst_173 = arith.constant 9.99999974E-6 : f32
    %413 = vector.broadcast %cst_173 : f32 to vector<16x1xf32>
    %414 = arith.addf %410, %413 : vector<16x1xf32>
    %415 = math.rsqrt %414 : vector<16x1xf32>
    %416 = vector.broadcast %415 : vector<16x1xf32> to vector<16x32xf32>
    %417 = arith.mulf %412, %416 : vector<16x32xf32>
    %418 = vector.broadcast %396 : vector<1x32xf32> to vector<16x32xf32>
    %419 = arith.mulf %417, %418 : vector<16x32xf32>
    %420 = vector.broadcast %398 : vector<1x32xf32> to vector<16x32xf32>
    %421 = arith.addf %419, %420 : vector<16x32xf32>
    %422 = vector.shape_cast %421 : vector<16x32xf32> to vector<2x8x32xf32>
    %c0_174 = arith.constant 0 : index
    %c0_175 = arith.constant 0 : index
    %c0_176 = arith.constant 0 : index
    %423 = vector.load %arg20[%c0_174, %c0_175, %c0_176] : memref<2x8x32xf32, #tpu.memory_space<vmem>>, vector<2x8x32xf32>
    tpu.vector_store %arg20[%c0_174, %c0_175, %c0_176], %422 {strides = array<i32>} : memref<2x8x32xf32, #tpu.memory_space<vmem>>, vector<2x8x32xf32>,
    return
  }
}

</mosaic_0001>

<bundles_post_ra>
// kernel: decoder_forward.1
= control target key start
LH: loop header
LB: loop body
LE: loop exit
PB: predicated region body
PF: predicated region fallthrough
CT: control target
= control target key end

     0   :  { %s9577_s0 = inlined_call_operand.vmem [shape: s32[16,1], index: 0, kind: input, shape index: {}]   ;;  %s9578_s1 = inlined_call_operand.vmem [shape: f32[50,32], index: 1, kind: input, shape index: {}]   ;;  %s9579_s2 = inlined_call_operand.vmem [shape: f32[16,32], index: 2, kind: input, shape index: {}]   ;;  %s9580_s3 = inlined_call_operand.vmem [shape: f32[2,8,32], index: 3, kind: input, shape index: {}]   ;;  %s9581_s4 = inlined_call_operand.vmem [shape: f32[8,8], index: 4, kind: input, shape index: {}]   ;;  %s9582_s5 = inlined_call_operand.vmem [shape: f32[8,8], index: 5, kind: input, shape index: {}]   ;;  %s9583_s6 = inlined_call_operand.vmem [shape: f32[2,32,32], index: 6, kind: input, shape index: {}]   ;;  %s9584_s7 = inlined_call_operand.vmem [shape: f32[2,1,32], index: 7, kind: input, shape index: {}]   ;;  %s9585_s8 = inlined_call_operand.vmem [shape: f32[2,32,32], index: 8, kind: input, shape index: {}]   ;;  %s9586_s9 = inlined_call_operand.vmem [shape: f32[2,1,32], index: 9, kind: input, shape index: {}]   ;;  %s9587_s10 = inlined_call_operand.vmem [shape: f32[2,32,64], index: 10, kind: input, shape index: {}]   ;;  %s9588_s11 = inlined_call_operand.vmem [shape: f32[2,1,64], index: 11, kind: input, shape index: {}]   ;;  %s9589_s12 = inlined_call_operand.vmem [shape: f32[2,64,32], index: 12, kind: input, shape index: {}]   ;;  %s9590_s13 = inlined_call_operand.vmem [shape: f32[2,1,32], index: 13, kind: input, shape index: {}]   ;;  %s9591_s14 = inlined_call_operand.vmem [shape: f32[2,1,32], index: 14, kind: input, shape index: {}]   ;;  %s9592_s15 = inlined_call_operand.vmem [shape: f32[2,1,32], index: 15, kind: input, shape index: {}]   ;;  %s9593_s16 = inlined_call_operand.vmem [shape: f32[2,1,32], index: 16, kind: input, shape index: {}]   ;;  %s9594_s17 = inlined_call_operand.vmem [shape: f32[2,1,32], index: 17, kind: input, shape index: {}]   ;;  %s9595_s18 = inlined_call_operand.vmem [shape: f32[2,1,32], index: 18, kind: input, shape index: {}]   ;;  %s9596_s19 = inlined_call_operand.vmem [shape: f32[2,1,32], index: 19, kind: input, shape index: {}]   ;;  %s9597_s20 = inlined_call_operand.hbm [shape: f32[2,8,32], index: 20, kind: output, shape index: {}]  }
   0x1   :  { %9602 = sst [smem:[#allocation5_spill]] %s9577_s0 }
   0x2   :  { %9603 = sst [smem:[#allocation6_spill]] %s9578_s1 }
   0x3   :  { %9604 = sst [smem:[#allocation7_spill]] %s9579_s2 }
   0x4   :  { %9605 = sst [smem:[#allocation8_spill]] %s9580_s3 }
   0x5   :  { %9606 = sst [smem:[#allocation9_spill]] %s9581_s4 }
   0x6   :  { %9607 = sst [smem:[#allocation10_spill]] %s9590_s13 }
   0x7   :  { %s9608_s23 = sld [smem:[#allocation5_spill]]  ;;  %s9609_s13 = sld [smem:[#allocation6_spill]]  ;;  %v8559_v2 = vmov 0  }
   0x8   :  { %8380 = vset.pattern.permute.xlu0 %v8559_v2 }
   0xd   :  { %v66_v0 = vld [vmem:[%s9608_s23] sm:$0xff]  ;;  %v83_v3 = vld [vmem:[%s9609_s13 + $0x8] sm:$0xff]  ;;  %v84_v4 = vld [vmem:[%s9609_s13 + $0x10] sm:$0xff] }
   0xe   :  { %v82_v1 = vld [vmem:[%s9609_s13] sm:$0xff]  ;;  %v85_v5 = vld [vmem:[%s9609_s13 + $0x18] sm:$0xff]  ;;  %71 = vperm.xlu0 %8380, %v66_v0  }
   0xf   :  { %v8287_v6 = vpack.c.bf16 %v83_v3, %v82_v1  ;;  %v8291_v7 = vpack.c.bf16 %v85_v5, %v84_v4 }
  0x10   :  { %25 = vsyncpa [#allocation3], 0  ;;  %v67_v8 = vld [vmem:[%s9608_s23 + $0x8] sm:$0xff]  ;;  %v86_v9 = vld [vmem:[%s9609_s13 + $0x20] sm:$0xff]  ;;  %v8560_v11 = vmov 0.0   ;;  %vm96_vm0 = vcmask 1041408   ;;  %v68_v14 = vlaneseq }
  0x11   :  { %v87_v10 = vld [vmem:[%s9609_s13 + $0x28] sm:$0xff]  ;;  %7832 = vmatprep.subr.mxu1 %v8560_v11  ;;  %8288 = vmatprep.subr.bf16.mxu0 %v8287_v6  ;;  %v88_v13 = vld [vmem:[%s9609_s13 + $0x30] sm:$0x3]  ;;  %vm89_vm1 = vcmask 408576   ;;  %vm8561_vm4 = vmmov 0   ;;  %s9610_s25 = sld [smem:[#allocation7_spill]] }
  0x12   :  { %8290 = vmatpush3.bf16.msra.mxu0 %v8287_v6  ;;  %74 = vperm.xlu0 %8380, %v67_v8   ;;  %v8295_v12 = vpack.c.bf16 %v87_v10, %v86_v9  ;;  %v69_v15 = vand.u32 127, %v68_v14  ;;  %vm231_vm5 = vcmask 64512   ;;  %s8562_s3 = smov 112   ;;  %s8563_s26 = smov 120   ;;  %vm1836_vm6 = vcmask 261120  }
  0x13   :  { %8292 = vmatprep.subr.bf16.mxu0 %v8291_v7  ;;  %7834 = vmatprep.mubr.msk.f32.mxu1 %vm8561_vm4, %v8560_v11  ;;  %s8564_s27 = smov 104   ;;  %s9611_s29 = sld [smem:[#allocation9_spill]]  ;;  %vm3670_vm7 = vcmask 523264  }
  0x14   :  { %s9613_s28 = sld [smem:[#allocation10_spill]]  ;;  %s8565_s1 = smov [#allocation2]  }
  0x15   :  { %s7391_s22 = sshll.u32 %s8565_s1, 4  ;;  %s7392_s22 = int_to_ptr.vmem [resolvable:$true] %s7391_s22 }
  0x16   :  { %8294 = vmatpush3.bf16.msra.mxu0 %v8291_v7  ;;  %p8540_p1 = scmp.lt.s32.totalorder %s7392_s22, %s7392_s22 }
  0x17   :  { %8296 = vmatprep.subr.bf16.mxu0 %v8295_v12  ;;  %v177_v21 = vld [vmem:[%s9610_s25] sm:$0xff] }
  0x19   :  { %v182_v33 = vld [vmem:[%s9611_s29] sm:$0xff]  ;;  %s9612_s29 = sld [smem:[#allocation8_spill]] }
  0x1a   :  { %8298 = vmatpush3.bf16.msra.mxu0 %v8295_v12  ;;  %v8802_v34 = vmul.f32 -1e-09, %v182_v33 }
  0x1b   :  { %7822 = vmatprep.subr.msk.mxu0 %vm96_vm0, %v88_v13 }
  0x1e   :  { %7823 = vmatpush3.msk.msra.mxu0 %vm96_vm0, %v88_v13 }
  0x1f   :  { %7827 = vmatprep.subr.mxu0 %v8560_v11 }
  0x8d   :  { %v72_v16 = vpop.permute.xlu0 %71 }
  0x8e   :  { %vm76_vm2 = vcmp.eq.s32.totalorder %v69_v15, %v72_v16 }
  0x8f   :  { %v7402_v17 = vsel %vm76_vm2, 1.0, %v8560_v11 }
  0x90   :  { %7824 = vmatprep.mubr.msk.f32.mxu0 %vm89_vm1, %v7402_v17 }
  0x91   :  { %v75_v18 = vpop.permute.xlu0 %74 }
  0x92   :  { %vm77_vm3 = vcmp.eq.s32.totalorder %v69_v15, %v75_v18 }
  0x93   :  { %v7403_v19 = vsel %vm77_vm3, 1.0, %v8560_v11 }
  0x94   :  { %7825 = vmatmul.mubr.msk.f32.vlgmr.msra.gmra.mrb[0].mxu0 %vm89_vm1, %v7403_v19 }
  0x95   :  { %7829 = vmatprep.mubr.msk.f32.mxu0 %vm8561_vm4, %v8560_v11 }
 0x167   :  { %v7826_v20 = vpop.f32.mrb[0].mxu0 }
 0x168   :  { %v176_v22 = vmul.f32 5.656854, %v7826_v20  ;;  %v166_v23 = vpop.f32.mrb[1].mxu0 }
 0x169   :  { %v175_v24 = vmul.f32 5.656854, %v166_v23 }
 0x16a   :  { %v8711_v25 = vadd.f32 %v177_v21, %v176_v22 }
 0x16b   :  { %v8713_v26 = vadd.f32 %v177_v21, %v175_v24 }
 0x16c   :  { %7833 = vmatpush3.xpose.msk.msra.mxu1 %vm231_vm5, %v8711_v25 }
 0x16d   :  { %214 = vrot.lane.b32.xlu0 %v8713_v26, %s8562_s3  ;;  %208 = vrot.lane.b32.xlu1 %v8713_v26, %s8563_s26 }
 0x16e   :  { %7828 = vmatpush3.xpose.msk.msra.mxu0 %vm231_vm5, %v8713_v26  ;;  %7837 = vmatprep.subr.mxu1 %v8560_v11 }
 0x16f   :  { %7835 = vmatmul.mubr.msk.f32.vlgmr.msra.gmra.mrb[0].mxu1 %vm231_vm5, %v8711_v25  ;;  %7847 = vmatprep.subr.mxu0 %v8560_v11 }
 0x170   :  { %7839 = vmatprep.mubr.msk.f32.mxu1 %vm8561_vm4, %v8560_v11 }
 0x171   :  { %7830 = vmatmul.mubr.msk.f32.vlgmr.msra.gmra.mrb[2].mxu0 %vm231_vm5, %v8713_v26  ;;  %220 = vrot.lane.b32.xlu0 %v8713_v26, %s8564_s27 }
 0x172   :  { %210 = vrot.lane.b32.xlu1 %v8711_v25, %s8563_s26  ;;  %7849 = vmatprep.mubr.msk.f32.mxu0 %vm8561_vm4, %v8560_v11 }
 0x176   :  { %216 = vrot.lane.b32.xlu1 %v8711_v25, %s8562_s3 }
 0x17a   :  { %222 = vrot.lane.b32.xlu1 %v8711_v25, %s8564_s27 }
 0x1df   :  { %v8741_v27 = vpop.permute.xlu0 %214  ;;  %v8743_v28 = vpop.permute.xlu1 %208 }
 0x1e0   :  { %7838 = vmatpush3.xpose.msk.msra.mxu1 %vm231_vm5, %v8743_v28  ;;  %7848 = vmatpush3.xpose.msk.msra.mxu0 %vm231_vm5, %v8741_v27 }
 0x1e1   :  { %7842 = vmatprep.subr.mxu1 %v8560_v11  ;;  %7857 = vmatprep.subr.mxu0 %v8560_v11 }
 0x1e3   :  { %v8751_v29 = vpop.permute.xlu0 %220  ;;  %7840 = vmatmul.mubr.msk.f32.vlgmr.msra.gmra.mrb[2].mxu1 %vm231_vm5, %v8743_v28  ;;  %7850 = vmatmul.mubr.msk.f32.vlgmr.msra.gmra.mrb[4].mxu0 %vm231_vm5, %v8741_v27 }
 0x1e4   :  { %v8757_v30 = vpop.permute.xlu1 %210  ;;  %7858 = vmatpush3.xpose.msk.msra.mxu0 %vm231_vm5, %v8751_v29  ;;  %7844 = vmatprep.mubr.msk.f32.mxu1 %vm8561_vm4, %v8560_v11 }
 0x1e5   :  { %7843 = vmatpush3.xpose.msk.msra.mxu1 %vm231_vm5, %v8757_v30  ;;  %7859 = vmatprep.mubr.msk.f32.mxu0 %vm8561_vm4, %v8560_v11 }
 0x1e6   :  { %7852 = vmatprep.subr.mxu1 %v8560_v11  ;;  %7867 = vmatprep.subr.mxu0 %v8560_v11 }
 0x1e7   :  { %7860 = vmatmul.mubr.msk.f32.vlgmr.msra.gmra.mrb[6].mxu0 %vm231_vm5, %v8751_v29 }
 0x1e8   :  { %7845 = vmatmul.mubr.msk.f32.vlgmr.msra.gmra.mrb[4].mxu1 %vm231_vm5, %v8757_v30  ;;  %v8773_v31 = vpop.permute.xlu1 %216  ;;  %7868 = vmatpush3.msra.mxu0 %v8713_v26 }
 0x1e9   :  { %7853 = vmatpush3.xpose.msk.msra.mxu1 %vm231_vm5, %v8773_v31  ;;  %7854 = vmatprep.mubr.msk.f32.mxu1 %vm8561_vm4, %v8560_v11 }
 0x1ea   :  { %7862 = vmatprep.subr.mxu1 %v8560_v11  ;;  %7869 = vmatprep.mubr.msk.f32.mxu0 %vm8561_vm4, %v8560_v11 }
 0x1eb   :  { %7877 = vmatprep.subr.mxu0 %v8560_v11 }
 0x1ec   :  { %7855 = vmatmul.mubr.msk.f32.vlgmr.msra.gmra.mrb[6].mxu1 %vm231_vm5, %v8773_v31  ;;  %v8786_v32 = vpop.permute.xlu1 %222 }
 0x1ed   :  { %7863 = vmatpush3.xpose.msk.msra.mxu1 %vm231_vm5, %v8786_v32  ;;  %7864 = vmatprep.mubr.msk.f32.mxu1 %vm8561_vm4, %v8560_v11 }
 0x1ee   :  { %7872 = vmatprep.subr.mxu1 %v8560_v11 }
 0x1f0   :  { %7865 = vmatmul.mubr.msk.f32.vlgmr.msra.gmra.mrb[8].mxu1 %vm231_vm5, %v8786_v32 }
 0x1f1   :  { %7873 = vmatpush3.msra.mxu1 %v8711_v25  ;;  %7874 = vmatprep.mubr.msk.f32.mxu1 %vm8561_vm4, %v8560_v11 }
 0x1f2   :  { %7882 = vmatprep.subr.mxu1 %v8560_v11 }
 0x242   :  { %v372_v35 = vpop.f32.mrb[0].mxu1 }
 0x243   :  { %v809_v36 = vmul.f32 0.35355338, %v372_v35  ;;  %v7836_v37 = vpop.f32.mrb[1].mxu1 }
 0x244   :  { %v300_v38 = vpop.f32.mrb[2].mxu0 }
 0x245   :  { %v808_v39 = vmul.f32 0.35355338, %v300_v38  ;;  %v7831_v40 = vpop.f32.mrb[3].mxu0  ;;  %v817_v41 = vadd.f32 %v809_v36, %v8802_v34 }
 0x247   :  { %v827_v42 = vsel %vm231_vm5, %v817_v41, -inf  ;;  %v816_v43 = vadd.f32 %v808_v39, %v8802_v34 }
 0x248   :  { %828 = vmax.xlane.f32.xlu1 %v827_v42 }
 0x249   :  { %v824_v44 = vsel %vm231_vm5, %v816_v43, -inf }
 0x24a   :  { %825 = vmax.xlane.f32.xlu0 %v824_v44 }
 0x2b6   :  { %v444_v45 = vpop.f32.mrb[2].mxu1  ;;  %v588_v46 = vpop.f32.mrb[4].mxu0 }
 0x2b7   :  { %v810_v47 = vmul.f32 0.35355338, %v444_v45  ;;  %v812_v48 = vmul.f32 0.35355338, %v588_v46  ;;  %v7841_v49 = vpop.f32.mrb[3].mxu1  ;;  %v7851_v50 = vpop.f32.mrb[5].mxu0 }
 0x2b9   :  { %v818_v51 = vadd.f32 %v810_v47, %v8802_v34  ;;  %v820_v52 = vadd.f32 %v812_v48, %v8802_v34 }
 0x2ba   :  { %v732_v53 = vpop.f32.mrb[6].mxu0 }
 0x2bb   :  { %v516_v54 = vpop.f32.mrb[4].mxu1  ;;  %v814_v55 = vmul.f32 0.35355338, %v732_v53  ;;  %v7861_v56 = vpop.f32.mrb[7].mxu0  ;;  %v830_v57 = vsel %vm231_vm5, %v818_v51, -inf  ;;  %v836_v58 = vsel %vm231_vm5, %v820_v52, -inf }
 0x2bc   :  { %v811_v59 = vmul.f32 0.35355338, %v516_v54  ;;  %v7846_v60 = vpop.f32.mrb[5].mxu1  ;;  %831 = vmax.xlane.f32.xlu0 %v830_v57  ;;  %837 = vmax.xlane.f32.xlu1 %v836_v58 }
 0x2bd   :  { %v822_v61 = vadd.f32 %v814_v55, %v8802_v34 }
 0x2be   :  { %v819_v62 = vadd.f32 %v811_v59, %v8802_v34 }
 0x2bf   :  { %v660_v63 = vpop.f32.mrb[6].mxu1  ;;  %v842_v0 = vsel %vm231_vm5, %v822_v61, -inf }
 0x2c0   :  { %v813_v1 = vmul.f32 0.35355338, %v660_v63  ;;  %v7856_v2 = vpop.f32.mrb[7].mxu1  ;;  %v833_v3 = vsel %vm231_vm5, %v819_v62, -inf  ;;  %843 = vmax.xlane.f32.xlu1 %v842_v0 }
 0x2c1   :  { %834 = vmax.xlane.f32.xlu0 %v833_v3 }
 0x2c2   :  { %v821_v4 = vadd.f32 %v813_v1, %v8802_v34 }
 0x2c3   :  { %v804_v5 = vpop.f32.mrb[8].mxu1 }
 0x2c4   :  { %v815_v6 = vmul.f32 0.35355338, %v804_v5  ;;  %v7866_v7 = vpop.f32.mrb[9].mxu1  ;;  %v839_v8 = vsel %vm231_vm5, %v821_v4, -inf }
 0x2c5   :  { %840 = vmax.xlane.f32.xlu0 %v839_v8 }
 0x2c6   :  { %v823_v9 = vadd.f32 %v815_v6, %v8802_v34 }
 0x2c8   :  { %v845_v10 = vsel %vm231_vm5, %v823_v9, -inf }
 0x2c9   :  { %846 = vmax.xlane.f32.xlu0 %v845_v10 }
 0x2d5   :  { %v829_v12 = vpop.xlane.xlu1 %828 }
 0x2d6   :  { %v849_v13 = vsub.f32 %v817_v41, %v829_v12 }
 0x2d7   :  { %v826_v14 = vpop.xlane.xlu0 %825 }
 0x2d8   :  { %v858_v15 = vmul.f32 1.442695, %v849_v13  ;;  %v848_v16 = vsub.f32 %v816_v43, %v826_v14 }
 0x2da   :  { %8381 = vpow2.f32 %v858_v15  ;;  %v856_v17 = vmul.f32 1.442695, %v848_v16 }
 0x2dc   :  { %8383 = vpow2.f32 %v856_v17 }
 0x2e4   :  { %v8382_v18 = vpop.eup %8381 }
 0x2e5   :  { %v875_v19 = vsel %vm231_vm5, %v8382_v18, 0.0 }
 0x2e6   :  { %v8384_v20 = vpop.eup %8383  ;;  %876 = vadd.xlane.f32.xlu0 %v875_v19 }
 0x2e7   :  { %v872_v21 = vsel %vm231_vm5, %v8384_v20, 0.0 }
 0x2e8   :  { %873 = vadd.xlane.f32.xlu1 %v872_v21 }
 0x349   :  { %v832_v22 = vpop.xlane.xlu0 %831  ;;  %v838_v23 = vpop.xlane.xlu1 %837 }
 0x34a   :  { %v850_v24 = vsub.f32 %v818_v51, %v832_v22  ;;  %v852_v33 = vsub.f32 %v820_v52, %v838_v23 }
 0x34c   :  { %v860_v35 = vmul.f32 1.442695, %v850_v24  ;;  %v864_v36 = vmul.f32 1.442695, %v852_v33 }
 0x34d   :  { %v844_v37 = vpop.xlane.xlu1 %843 }
 0x34e   :  { %8385 = vpow2.f32 %v860_v35  ;;  %v835_v38 = vpop.xlane.xlu0 %834  ;;  %v854_v39 = vsub.f32 %v822_v61, %v844_v37 }
 0x34f   :  { %v851_v40 = vsub.f32 %v819_v62, %v835_v38  ;;  %8387 = vpow2.f32 %v864_v36  ;;  %v228_v36 = vld [vmem:[%s9583_s6 + $0x10] sm:$0xff] }
 0x350   :  { %v868_v41 = vmul.f32 1.442695, %v854_v39 }
 0x351   :  { %v862_v42 = vmul.f32 1.442695, %v851_v40 }
 0x352   :  { %v841_v43 = vpop.xlane.xlu0 %840 }
 0x353   :  { %8389 = vpow2.f32 %v862_v42  ;;  %v853_v44 = vsub.f32 %v821_v4, %v841_v43  ;;  %v229_v43 = vld [vmem:[%s9583_s6 + $0x18] sm:$0xff] }
 0x354   :  { %8391 = vpow2.f32 %v868_v41 }
 0x355   :  { %v866_v45 = vmul.f32 1.442695, %v853_v44 }
 0x356   :  { %v847_v46 = vpop.xlane.xlu0 %846 }
 0x357   :  { %8393 = vpow2.f32 %v866_v45  ;;  %v855_v47 = vsub.f32 %v823_v9, %v847_v46  ;;  %v7439_v45 = vld [vmem:[%s9584_s7] ss:$0 sm:$0xff] }
 0x358   :  { %v8386_v48 = vpop.eup %8385 }
 0x359   :  { %v870_v49 = vmul.f32 1.442695, %v855_v47  ;;  %v878_v50 = vsel %vm231_vm5, %v8386_v48, 0.0  ;;  %v8388_v51 = vpop.eup %8387 }
 0x35a   :  { %879 = vadd.xlane.f32.xlu1 %v878_v50  ;;  %v884_v53 = vsel %vm231_vm5, %v8388_v51, 0.0 }
 0x35b   :  { %8395 = vpow2.f32 %v870_v49 }
 0x35d   :  { %v8390_v52 = vpop.eup %8389 }
 0x35e   :  { %v8392_v54 = vpop.eup %8391  ;;  %v881_v55 = vsel %vm231_vm5, %v8390_v52, 0.0  ;;  %885 = vadd.xlane.f32.xlu1 %v884_v53 }
 0x35f   :  { %882 = vadd.xlane.f32.xlu0 %v881_v55  ;;  %v890_v57 = vsel %vm231_vm5, %v8392_v54, 0.0 }
 0x361   :  { %v8394_v56 = vpop.eup %8393 }
 0x362   :  { %v887_v58 = vsel %vm231_vm5, %v8394_v56, 0.0  ;;  %891 = vadd.xlane.f32.xlu1 %v890_v57 }
 0x363   :  { %888 = vadd.xlane.f32.xlu0 %v887_v58 }
 0x365   :  { %v8396_v59 = vpop.eup %8395 }
 0x366   :  { %v893_v60 = vsel %vm231_vm5, %v8396_v59, 0.0 }
 0x367   :  { %894 = vadd.xlane.f32.xlu0 %v893_v60 }
 0x373   :  { %v877_v61 = vpop.xlane.xlu0 %876 }
 0x374   :  { %8397 = vrcp.f32 %v877_v61 }
 0x375   :  { %v874_v62 = vpop.xlane.xlu1 %873 }
 0x376   :  { %8399 = vrcp.f32 %v874_v62 }
 0x37e   :  { %v8398_v63 = vpop.eup %8397 }
 0x37f   :  { %v905_v0 = vmul.f32 %v8398_v63, %v8382_v18  ;;  %v8906_v63 = vld [vmem:[%s9612_s29 + $0x8] sm:$0xff] }
 0x380   :  { %v8400_v1 = vpop.eup %8399 }
 0x381   :  { %7875 = vmatmul.mubr.msk.f32.vlgmr.msra.gmra.mrb[10].mxu1 %vm231_vm5, %v905_v0  ;;  %v904_v2 = vmul.f32 %v8400_v1, %v8384_v20 }
 0x382   :  { %7883 = vmatpush3.msra.mxu1 %v8757_v30  ;;  %7884 = vmatprep.mubr.msk.f32.mxu1 %vm8561_vm4, %v8560_v11 }
 0x383   :  { %7870 = vmatmul.mubr.msk.f32.vlgmr.msra.gmra.mrb[8].mxu0 %vm231_vm5, %v904_v2  ;;  %7892 = vmatprep.subr.mxu1 %v8560_v11 }
 0x384   :  { %7878 = vmatpush3.msra.mxu0 %v8743_v28  ;;  %7879 = vmatprep.mubr.msk.f32.mxu0 %vm8561_vm4, %v8560_v11 }
 0x385   :  { %7887 = vmatprep.subr.mxu0 %v8560_v11 }
 0x3e7   :  { %v880_v3 = vpop.xlane.xlu1 %879 }
 0x3e8   :  { %8401 = vrcp.f32 %v880_v3 }
 0x3eb   :  { %v886_v4 = vpop.xlane.xlu1 %885 }
 0x3ec   :  { %v883_v5 = vpop.xlane.xlu0 %882  ;;  %8403 = vrcp.f32 %v886_v4 }
 0x3ed   :  { %8405 = vrcp.f32 %v883_v5 }
 0x3ef   :  { %v892_v30 = vpop.xlane.xlu1 %891 }
 0x3f0   :  { %v889_v6 = vpop.xlane.xlu0 %888  ;;  %8407 = vrcp.f32 %v892_v30 }
 0x3f1   :  { %8409 = vrcp.f32 %v889_v6  ;;  %v7440_v6 = vld [vmem:[%s9591_s14] ss:$0 sm:$0xff] }
 0x3f2   :  { %v8402_v7 = vpop.eup %8401 }
 0x3f3   :  { %v906_v8 = vmul.f32 %v8402_v7, %v8386_v48 }
 0x3f4   :  { %v895_v9 = vpop.xlane.xlu0 %894 }
 0x3f5   :  { %8411 = vrcp.f32 %v895_v9  ;;  %7880 = vmatmul.mubr.msk.f32.vlgmr.msra.gmra.mrb[10].mxu0 %vm231_vm5, %v906_v8 }
 0x3f6   :  { %v8404_v28 = vpop.eup %8403  ;;  %7888 = vmatpush3.msra.mxu0 %v8741_v27  ;;  %7889 = vmatprep.mubr.msk.f32.mxu0 %vm8561_vm4, %v8560_v11 }
 0x3f7   :  { %v8406_v10 = vpop.eup %8405  ;;  %7897 = vmatprep.subr.mxu0 %v8560_v11  ;;  %v908_v12 = vmul.f32 %v8404_v28, %v8388_v51  ;;  %v7441_v28 = vld [vmem:[%s9592_s15] ss:$0 sm:$0xff] }
 0x3f8   :  { %v907_v13 = vmul.f32 %v8406_v10, %v8390_v52 }
 0x3f9   :  { %7890 = vmatmul.mubr.msk.f32.vlgmr.msra.gmra.mrb[12].mxu0 %vm231_vm5, %v908_v12 }
 0x3fa   :  { %v8408_v14 = vpop.eup %8407  ;;  %7885 = vmatmul.mubr.msk.f32.vlgmr.msra.gmra.mrb[12].mxu1 %vm231_vm5, %v907_v13  ;;  %7898 = vmatpush3.msra.mxu0 %v8751_v29 }
 0x3fb   :  { %v8410_v15 = vpop.eup %8409  ;;  %v910_v16 = vmul.f32 %v8408_v14, %v8392_v54  ;;  %7893 = vmatpush3.msra.mxu1 %v8773_v31  ;;  %7894 = vmatprep.mubr.msk.f32.mxu1 %vm8561_vm4, %v8560_v11  ;;  %v227_v31 = vld [vmem:[%s9583_s6 + $0x8] sm:$0xff] }
 0x3fc   :  { %7899 = vmatprep.mubr.msk.f32.mxu0 %vm8561_vm4, %v8560_v11  ;;  %7902 = vmatprep.subr.mxu1 %v8560_v11  ;;  %v909_v27 = vmul.f32 %v8410_v15, %v8394_v56 }
 0x3fd   :  { %7900 = vmatmul.mubr.msk.f32.vlgmr.msra.gmra.mrb[14].mxu0 %vm231_vm5, %v910_v16  ;;  %7907 = vmatprep.subr.mxu0 %v227_v31 }
 0x3fe   :  { %7895 = vmatmul.mubr.msk.f32.vlgmr.msra.gmra.mrb[14].mxu1 %vm231_vm5, %v909_v27  ;;  %7908 = vmatpush3.msra.mxu0 %v227_v31 }
 0x3ff   :  { %v8412_v17 = vpop.eup %8411  ;;  %7903 = vmatpush3.msra.mxu1 %v8786_v32  ;;  %7904 = vmatprep.mubr.msk.f32.mxu1 %vm8561_vm4, %v8560_v11  ;;  %v226_v32 = vld [vmem:[%s9583_s6] sm:$0xff] }
 0x400   :  { %v911_v29 = vmul.f32 %v8412_v17, %v8396_v59  ;;  %7927 = vmatprep.subr.mxu1 %v8560_v11  ;;  %7912 = vmatprep.subr.mxu0 %v226_v32 }
 0x402   :  { %7905 = vmatmul.mubr.msk.f32.vlgmr.msra.gmra.mrb[16].mxu1 %vm231_vm5, %v911_v29 }
 0x403   :  { %7929 = vmatprep.mubr.msk.f32.mxu1 %vm8561_vm4, %v8560_v11 }
 0x454   :  { %v1054_v18 = vpop.f32.mrb[10].mxu1 }
 0x455   :  { %v7876_v19 = vpop.f32.mrb[11].mxu1 }
 0x456   :  { %v981_v20 = vpop.f32.mrb[8].mxu0 }
 0x457   :  { %v7871_v21 = vpop.f32.mrb[9].mxu0 }
 0x4c8   :  { %v1127_v22 = vpop.f32.mrb[10].mxu0 }
 0x4c9   :  { %v7881_v23 = vpop.f32.mrb[11].mxu0  ;;  %7909 = vmatprep.mubr.msk.f32.mxu0 %vm231_vm5, %v1127_v22 }
 0x4ca   :  { %v184_v23 = vld [vmem:[%s9582_s5] sm:$0xff] }
 0x4cc   :  { %v1273_v24 = vpop.f32.mrb[12].mxu0 }
 0x4cd   :  { %v1200_v33 = vpop.f32.mrb[12].mxu1  ;;  %v7891_v35 = vpop.f32.mrb[13].mxu0 }
 0x4ce   :  { %v7886_v37 = vpop.f32.mrb[13].mxu1  ;;  %7910 = vmatmul.mubr.msk.f32.vlgmr.msra.gmra.mrb[16].mxu0 %vm231_vm5, %v1200_v33 }
 0x4cf   :  { %7913 = vmatpush3.msra.mxu0 %v226_v32  ;;  %7914 = vmatprep.mubr.msk.f32.mxu0 %vm231_vm5, %v981_v20 }
 0x4d0   :  { %v1419_v38 = vpop.f32.mrb[14].mxu0  ;;  %7917 = vmatprep.subr.mxu0 %v228_v36 }
 0x4d1   :  { %v1346_v39 = vpop.f32.mrb[14].mxu1  ;;  %v7901_v40 = vpop.f32.mrb[15].mxu0 }
 0x4d2   :  { %v7896_v41 = vpop.f32.mrb[15].mxu1 }
 0x4d5   :  { %v1492_v42 = vpop.f32.mrb[16].mxu1 }
 0x4d6   :  { %v7906_v44 = vpop.f32.mrb[17].mxu1  ;;  %7915 = vmatmul.mubr.msk.f32.vlgmr.msra.gmra.mrb[16].mxu0 %vm231_vm5, %v1054_v18 }
 0x4d7   :  { %7918 = vmatpush3.msra.mxu0 %v228_v36  ;;  %7919 = vmatprep.mubr.msk.f32.mxu0 %vm231_vm5, %v1273_v24  ;;  %v9006_v24 = vmul.f32 -1e-09, %v184_v23 }
 0x4d8   :  { %7922 = vmatprep.subr.mxu0 %v229_v43 }
 0x4de   :  { %7920 = vmatmul.mubr.msk.f32.vlgmr.msra.gmra.mrb[16].mxu0 %vm231_vm5, %v1346_v39 }
 0x4df   :  { %7923 = vmatpush3.msra.mxu0 %v229_v43  ;;  %7924 = vmatprep.mubr.msk.f32.mxu0 %vm231_vm5, %v1419_v38 }
 0x4e0   :  { %7947 = vmatprep.subr.mxu0 %v8560_v11 }
 0x4e6   :  { %7925 = vmatmul.mubr.msk.f32.vlgmr.msra.gmra.mrb[16].mxu0 %vm231_vm5, %v1492_v42 }
 0x4e7   :  { %7949 = vmatprep.mubr.msk.f32.mxu0 %vm8561_vm4, %v8560_v11 }
 0x5b9   :  { %v7926_v46 = vpop.f32.mrb[16].mxu0 }
 0x5ba   :  { %v1831_v47 = vadd.f32 %v7926_v46, %v7439_v45  ;;  %v1813_v48 = vpop.f32.mrb[17].mxu0 }
 0x5bb   :  { %v1830_v49 = vadd.f32 %v7439_v45, %v1813_v48 }
 0x5bc   :  { %v1835_v50 = vadd.f32 %v1831_v47, %v8711_v25 }
 0x5bd   :  { %v1834_v51 = vadd.f32 %v1830_v49, %v8713_v26  ;;  %v8896_v26 = vld [vmem:[%s9612_s29] sm:$0xff] }
 0x5be   :  { %v1840_v52 = vsel %vm1836_vm6, %v1835_v50, 0.0  ;;  %7928 = vmatpush3.xpose.msk.msra.mxu1 %vm231_vm5, %v8896_v26 }
 0x5bf   :  { %1841 = vadd.xlane.f32.xlu0 %v1840_v52  ;;  %v1837_v53 = vsel %vm1836_vm6, %v1834_v51, 0.0  ;;  %7932 = vmatprep.subr.mxu1 %v8560_v11 }
 0x5c0   :  { %1838 = vadd.xlane.f32.xlu1 %v1837_v53 }
 0x64c   :  { %v1842_v54 = vpop.xlane.xlu0 %1841 }
 0x64d   :  { %v1845_v55 = vmul.f32 0.03125, %v1842_v54  ;;  %v1839_v56 = vpop.xlane.xlu1 %1838 }
 0x64e   :  { %v1844_v57 = vmul.f32 0.03125, %v1839_v56 }
 0x64f   :  { %v1847_v58 = vsub.f32 %v1835_v50, %v1845_v55 }
 0x650   :  { %v1846_v59 = vsub.f32 %v1834_v51, %v1844_v57 }
 0x651   :  { %v1849_v60 = vmul.f32 %v1847_v58, %v1847_v58 }
 0x652   :  { %v1848_v61 = vmul.f32 %v1846_v59, %v1846_v59 }
 0x653   :  { %v1853_v62 = vsel %vm1836_vm6, %v1849_v60, 0.0 }
 0x654   :  { %1854 = vadd.xlane.f32.xlu0 %v1853_v62  ;;  %v1850_v25 = vsel %vm1836_vm6, %v1848_v61, 0.0 }
 0x655   :  { %1851 = vadd.xlane.f32.xlu1 %v1850_v25 }
 0x666   :  { %188 = vrot.lane.b32.xlu1 %v8896_v26, %s8563_s26 }
 0x66a   :  { %190 = vrot.lane.b32.xlu1 %v8906_v63, %s8563_s26 }
 0x6e1   :  { %v1855_v0 = vpop.xlane.xlu0 %1854 }
 0x6e2   :  { %v1857_v1 = vmul.f32 0.03125, %v1855_v0  ;;  %v1852_v2 = vpop.xlane.xlu1 %1851 }
 0x6e3   :  { %v1856_v3 = vmul.f32 0.03125, %v1852_v2 }
 0x6e4   :  { %v1859_v4 = vadd.f32 1e-05, %v1857_v1 }
 0x6e5   :  { %v1858_v5 = vadd.f32 1e-05, %v1856_v3 }
 0x6e6   :  { %8413 = vrsqrt.f32 %v1859_v4  ;;  %v8937_v15 = vpop.permute.xlu1 %188 }
 0x6e7   :  { %8415 = vrsqrt.f32 %v1858_v5 }
 0x6ea   :  { %v8956_v16 = vpop.permute.xlu1 %190 }
 0x6f0   :  { %v8414_v30 = vpop.eup %8413 }
 0x6f1   :  { %v8416_v7 = vpop.eup %8415  ;;  %v1863_v8 = vmul.f32 %v8414_v30, %v1847_v58 }
 0x6f2   :  { %v1862_v9 = vmul.f32 %v8416_v7, %v1846_v59 }
 0x6f3   :  { %v1871_v10 = vmul.f32 %v7440_v6, %v1863_v8 }
 0x6f4   :  { %v1870_v12 = vmul.f32 %v7440_v6, %v1862_v9 }
 0x6f5   :  { %v8916_v13 = vadd.f32 %v7441_v28, %v1871_v10 }
 0x6f6   :  { %v8918_v14 = vadd.f32 %v7441_v28, %v1870_v12 }
 0x6f7   :  { %1884 = vrot.lane.b32.xlu1 %v8916_v13, %s8563_s26 }
 0x6f8   :  { %1882 = vrot.lane.b32.xlu0 %v8918_v14, %s8563_s26  ;;  %7930 = vmatmul.mubr.msk.f32.vlgmr.msra.gmra.mrb[18].mxu1 %vm231_vm5, %v8918_v14 }
 0x6f9   :  { %7933 = vmatpush3.xpose.msk.msra.mxu1 %vm231_vm5, %v8906_v63  ;;  %7934 = vmatprep.mubr.msk.f32.mxu1 %vm8561_vm4, %v8560_v11 }
 0x6fa   :  { %7937 = vmatprep.subr.mxu1 %v8560_v11 }
 0x6fb   :  { %196 = vrot.lane.b32.xlu1 %v8906_v63, %s8562_s3 }
 0x6fc   :  { %194 = vrot.lane.b32.xlu0 %v8896_v26, %s8562_s3  ;;  %7935 = vmatmul.mubr.msk.f32.vlgmr.msra.gmra.mrb[20].mxu1 %vm231_vm5, %v8916_v13 }
 0x6fd   :  { %7938 = vmatpush3.xpose.msk.msra.mxu1 %vm231_vm5, %v8937_v15  ;;  %7939 = vmatprep.mubr.msk.f32.mxu1 %vm8561_vm4, %v8560_v11 }
 0x6fe   :  { %7942 = vmatprep.subr.mxu1 %v8560_v11 }
 0x6ff   :  { %1888 = vrot.lane.b32.xlu1 %v8916_v13, %s8562_s3 }
 0x700   :  { %1886 = vrot.lane.b32.xlu0 %v8918_v14, %s8562_s3 }
 0x703   :  { %202 = vrot.lane.b32.xlu1 %v8906_v63, %s8564_s27 }
 0x704   :  { %200 = vrot.lane.b32.xlu0 %v8896_v26, %s8564_s27 }
 0x707   :  { %1892 = vrot.lane.b32.xlu1 %v8916_v13, %s8564_s27 }
 0x708   :  { %1890 = vrot.lane.b32.xlu0 %v8918_v14, %s8564_s27 }
 0x769   :  { %v1885_v27 = vpop.permute.xlu1 %1884 }
 0x76a   :  { %v1883_v17 = vpop.permute.xlu0 %1882 }
 0x76b   :  { %7940 = vmatmul.mubr.msk.f32.vlgmr.msra.gmra.mrb[22].mxu1 %vm231_vm5, %v1883_v17 }
 0x76c   :  { %7943 = vmatpush3.xpose.msk.msra.mxu1 %vm231_vm5, %v8956_v16  ;;  %7944 = vmatprep.mubr.msk.f32.mxu1 %vm8561_vm4, %v8560_v11 }
 0x76d   :  { %v8963_v29 = vpop.permute.xlu1 %196  ;;  %7952 = vmatprep.subr.mxu1 %v8560_v11 }
 0x76e   :  { %v8966_v31 = vpop.permute.xlu0 %194 }
 0x76f   :  { %7945 = vmatmul.mubr.msk.f32.vlgmr.msra.gmra.mrb[24].mxu1 %vm231_vm5, %v1885_v27  ;;  %7948 = vmatpush3.xpose.msk.msra.mxu0 %vm231_vm5, %v8966_v31 }
 0x770   :  { %7953 = vmatpush3.xpose.msk.msra.mxu1 %vm231_vm5, %v8963_v29  ;;  %7954 = vmatprep.mubr.msk.f32.mxu1 %vm8561_vm4, %v8560_v11 }
 0x771   :  { %v1889_v32 = vpop.permute.xlu1 %1888  ;;  %7962 = vmatprep.subr.mxu1 %v8560_v11  ;;  %7957 = vmatprep.subr.mxu0 %v8560_v11 }
 0x772   :  { %v1887_v18 = vpop.permute.xlu0 %1886 }
 0x773   :  { %7950 = vmatmul.mubr.msk.f32.vlgmr.msra.gmra.mrb[18].mxu0 %vm231_vm5, %v1887_v18  ;;  %7955 = vmatmul.mubr.msk.f32.vlgmr.msra.gmra.mrb[26].mxu1 %vm231_vm5, %v1889_v32 }
 0x774   :  { %7964 = vmatprep.mubr.msk.f32.mxu1 %vm8561_vm4, %v8560_v11  ;;  %7959 = vmatprep.mubr.msk.f32.mxu0 %vm8561_vm4, %v8560_v11 }
 0x775   :  { %v8983_v19 = vpop.permute.xlu1 %202 }
 0x776   :  { %v8985_v20 = vpop.permute.xlu0 %200  ;;  %7963 = vmatpush3.xpose.msk.msra.mxu1 %vm231_vm5, %v8983_v19 }
 0x777   :  { %7958 = vmatpush3.xpose.msk.msra.mxu0 %vm231_vm5, %v8985_v20  ;;  %7972 = vmatprep.subr.mxu1 %v8560_v11 }
 0x778   :  { %7967 = vmatprep.subr.mxu0 %v8560_v11 }
 0x779   :  { %v1893_v21 = vpop.permute.xlu1 %1892 }
 0x77a   :  { %v1891_v22 = vpop.permute.xlu0 %1890  ;;  %7965 = vmatmul.mubr.msk.f32.vlgmr.msra.gmra.mrb[28].mxu1 %vm231_vm5, %v1893_v21 }
 0x77b   :  { %7960 = vmatmul.mubr.msk.f32.vlgmr.msra.gmra.mrb[20].mxu0 %vm231_vm5, %v1891_v22  ;;  %7973 = vmatpush3.msra.mxu1 %v8906_v63 }
 0x77c   :  { %7968 = vmatpush3.msra.mxu0 %v8896_v26  ;;  %7969 = vmatprep.mubr.msk.f32.mxu0 %vm8561_vm4, %v8560_v11 }
 0x77d   :  { %7977 = vmatprep.subr.mxu0 %v8560_v11  ;;  %7974 = vmatprep.mubr.msk.f32.mxu1 %vm8561_vm4, %v8560_v11 }
 0x77e   :  { %7982 = vmatprep.subr.mxu1 %v8560_v11 }
 0x7cb   :  { %v1969_v33 = vpop.f32.mrb[18].mxu1 }
 0x7cc   :  { %v2491_v35 = vmul.f32 0.35355338, %v1969_v33  ;;  %v7931_v36 = vpop.f32.mrb[19].mxu1 }
 0x7ce   :  { %v2499_v37 = vadd.f32 %v2491_v35, %v9006_v24 }
 0x7cf   :  { %v2043_v38 = vpop.f32.mrb[20].mxu1 }
 0x7d0   :  { %v2492_v39 = vmul.f32 0.35355338, %v2043_v38  ;;  %v7936_v40 = vpop.f32.mrb[21].mxu1  ;;  %v2507_v41 = vsel %vm231_vm5, %v2499_v37, -inf }
 0x7d1   :  { %2508 = vmax.xlane.f32.xlu0 %v2507_v41 }
 0x7d2   :  { %v2500_v42 = vadd.f32 %v2492_v39, %v9006_v24 }
 0x7d4   :  { %v2510_v43 = vsel %vm231_vm5, %v2500_v42, -inf }
 0x7d5   :  { %2511 = vmax.xlane.f32.xlu1 %v2510_v43 }
 0x83e   :  { %v2117_v44 = vpop.f32.mrb[22].mxu1 }
 0x83f   :  { %v2493_v45 = vmul.f32 0.35355338, %v2117_v44  ;;  %v7941_v46 = vpop.f32.mrb[23].mxu1 }
 0x841   :  { %v2501_v47 = vadd.f32 %v2493_v45, %v9006_v24 }
 0x842   :  { %v2191_v48 = vpop.f32.mrb[24].mxu1 }
 0x843   :  { %v2494_v49 = vmul.f32 0.35355338, %v2191_v48  ;;  %v7946_v50 = vpop.f32.mrb[25].mxu1  ;;  %v2513_v51 = vsel %vm231_vm5, %v2501_v47, -inf }
 0x844   :  { %2514 = vmax.xlane.f32.xlu0 %v2513_v51 }
 0x845   :  { %v2502_v52 = vadd.f32 %v2494_v49, %v9006_v24 }
 0x846   :  { %v2265_v53 = vpop.f32.mrb[18].mxu0  ;;  %v2339_v54 = vpop.f32.mrb[26].mxu1 }
 0x847   :  { %v2495_v55 = vmul.f32 0.35355338, %v2265_v53  ;;  %v2496_v56 = vmul.f32 0.35355338, %v2339_v54  ;;  %v7951_v57 = vpop.f32.mrb[19].mxu0  ;;  %v7956_v58 = vpop.f32.mrb[27].mxu1 }
 0x848   :  { %v2516_v59 = vsel %vm231_vm5, %v2502_v52, -inf }
 0x849   :  { %2517 = vmax.xlane.f32.xlu0 %v2516_v59  ;;  %v2503_v60 = vadd.f32 %v2495_v55, %v9006_v24  ;;  %v2504_v61 = vadd.f32 %v2496_v56, %v9006_v24 }
 0x84b   :  { %v2519_v62 = vsel %vm231_vm5, %v2503_v60, -inf  ;;  %v2522_v25 = vsel %vm231_vm5, %v2504_v61, -inf }
 0x84c   :  { %2520 = vmax.xlane.f32.xlu1 %v2519_v62 }
 0x84d   :  { %2523 = vmax.xlane.f32.xlu0 %v2522_v25  ;;  %v2487_v26 = vpop.f32.mrb[28].mxu1 }
 0x84e   :  { %v2498_v63 = vmul.f32 0.35355338, %v2487_v26  ;;  %v2413_v0 = vpop.f32.mrb[20].mxu0  ;;  %v7966_v1 = vpop.f32.mrb[29].mxu1 }
 0x84f   :  { %v2497_v2 = vmul.f32 0.35355338, %v2413_v0  ;;  %v7961_v3 = vpop.f32.mrb[21].mxu0 }
 0x850   :  { %v2506_v4 = vadd.f32 %v2498_v63, %v9006_v24 }
 0x851   :  { %v2505_v5 = vadd.f32 %v2497_v2, %v9006_v24 }
 0x852   :  { %v2528_v30 = vsel %vm231_vm5, %v2506_v4, -inf }
 0x853   :  { %2529 = vmax.xlane.f32.xlu0 %v2528_v30  ;;  %v2525_v6 = vsel %vm231_vm5, %v2505_v5, -inf }
 0x854   :  { %2526 = vmax.xlane.f32.xlu1 %v2525_v6 }
 0x85e   :  { %v2509_v7 = vpop.xlane.xlu0 %2508 }
 0x85f   :  { %v2531_v8 = vsub.f32 %v2499_v37, %v2509_v7 }
 0x861   :  { %v2539_v9 = vmul.f32 1.442695, %v2531_v8 }
 0x862   :  { %v2512_v28 = vpop.xlane.xlu1 %2511 }
 0x863   :  { %8417 = vpow2.f32 %v2539_v9  ;;  %v2532_v10 = vsub.f32 %v2500_v42, %v2512_v28 }
 0x865   :  { %v2541_v12 = vmul.f32 1.442695, %v2532_v10 }
 0x867   :  { %8419 = vpow2.f32 %v2541_v12 }
 0x86d   :  { %v8418_v27 = vpop.eup %8417 }
 0x86e   :  { %v2555_v17 = vsel %vm231_vm5, %v8418_v27, 0.0 }
 0x86f   :  { %2556 = vadd.xlane.f32.xlu1 %v2555_v17 }
 0x871   :  { %v8420_v32 = vpop.eup %8419 }
 0x872   :  { %v2558_v18 = vsel %vm231_vm5, %v8420_v32, 0.0 }
 0x873   :  { %2559 = vadd.xlane.f32.xlu0 %v2558_v18 }
 0x8d1   :  { %v2515_v21 = vpop.xlane.xlu0 %2514 }
 0x8d2   :  { %v2533_v22 = vsub.f32 %v2501_v47, %v2515_v21 }
 0x8d4   :  { %v2543_v23 = vmul.f32 1.442695, %v2533_v22  ;;  %v1895_v22 = vld [vmem:[%s9585_s8 + $0x8] sm:$0xff] }
 0x8d6   :  { %8421 = vpow2.f32 %v2543_v23  ;;  %v2518_v33 = vpop.xlane.xlu0 %2517  ;;  %v1894_v23 = vld [vmem:[%s9585_s8] sm:$0xff] }
 0x8d7   :  { %v2534_v35 = vsub.f32 %v2502_v52, %v2518_v33 }
 0x8d9   :  { %v2545_v36 = vmul.f32 1.442695, %v2534_v35  ;;  %v2521_v37 = vpop.xlane.xlu1 %2520 }
 0x8da   :  { %v2524_v38 = vpop.xlane.xlu0 %2523  ;;  %v2535_v39 = vsub.f32 %v2503_v60, %v2521_v37 }
 0x8db   :  { %8423 = vpow2.f32 %v2545_v36  ;;  %v2536_v40 = vsub.f32 %v2504_v61, %v2524_v38 }
 0x8dc   :  { %v2547_v41 = vmul.f32 1.442695, %v2535_v39 }
 0x8dd   :  { %v2549_v42 = vmul.f32 1.442695, %v2536_v40 }
 0x8de   :  { %8425 = vpow2.f32 %v2547_v41  ;;  %v1896_v41 = vld [vmem:[%s9585_s8 + $0x10] sm:$0xff] }
 0x8df   :  { %8427 = vpow2.f32 %v2549_v42 }
 0x8e0   :  { %v8422_v43 = vpop.eup %8421  ;;  %v2530_v44 = vpop.xlane.xlu0 %2529 }
 0x8e1   :  { %v2538_v45 = vsub.f32 %v2506_v4, %v2530_v44  ;;  %v2527_v46 = vpop.xlane.xlu1 %2526  ;;  %v2561_v47 = vsel %vm231_vm5, %v8422_v43, 0.0 }
 0x8e2   :  { %v2537_v48 = vsub.f32 %v2505_v5, %v2527_v46  ;;  %2562 = vadd.xlane.f32.xlu1 %v2561_v47  ;;  %v1897_v47 = vld [vmem:[%s9585_s8 + $0x18] sm:$0xff] }
 0x8e3   :  { %v2553_v49 = vmul.f32 1.442695, %v2538_v45 }
 0x8e4   :  { %v2551_v50 = vmul.f32 1.442695, %v2537_v48 }
 0x8e5   :  { %v8424_v51 = vpop.eup %8423  ;;  %8429 = vpow2.f32 %v2553_v49 }
 0x8e6   :  { %8431 = vpow2.f32 %v2551_v50  ;;  %v2564_v52 = vsel %vm231_vm5, %v8424_v51, 0.0 }
 0x8e7   :  { %2565 = vadd.xlane.f32.xlu0 %v2564_v52  ;;  %v7474_v52 = vld [vmem:[%s9586_s9] ss:$0 sm:$0xff] }
 0x8e8   :  { %v8426_v53 = vpop.eup %8425 }
 0x8e9   :  { %v8428_v54 = vpop.eup %8427  ;;  %v2567_v55 = vsel %vm231_vm5, %v8426_v53, 0.0 }
 0x8ea   :  { %v2570_v56 = vsel %vm231_vm5, %v8428_v54, 0.0  ;;  %2568 = vadd.xlane.f32.xlu1 %v2567_v55 }
 0x8eb   :  { %2571 = vadd.xlane.f32.xlu0 %v2570_v56 }
 0x8ef   :  { %v8430_v57 = vpop.eup %8429 }
 0x8f0   :  { %v8432_v58 = vpop.eup %8431  ;;  %v2576_v59 = vsel %vm231_vm5, %v8430_v57, 0.0 }
 0x8f1   :  { %2577 = vadd.xlane.f32.xlu0 %v2576_v59  ;;  %v2573_v60 = vsel %vm231_vm5, %v8432_v58, 0.0 }
 0x8f2   :  { %2574 = vadd.xlane.f32.xlu1 %v2573_v60 }
 0x8fc   :  { %v2557_v61 = vpop.xlane.xlu1 %2556 }
 0x8fd   :  { %8433 = vrcp.f32 %v2557_v61 }
 0x900   :  { %v2560_v62 = vpop.xlane.xlu0 %2559 }
 0x901   :  { %8435 = vrcp.f32 %v2560_v62 }
 0x907   :  { %v8434_v25 = vpop.eup %8433 }
 0x908   :  { %v2587_v26 = vmul.f32 %v8434_v25, %v8418_v27 }
 0x90a   :  { %7970 = vmatmul.mubr.msk.f32.vlgmr.msra.gmra.mrb[22].mxu0 %vm231_vm5, %v2587_v26 }
 0x90b   :  { %v8436_v63 = vpop.eup %8435  ;;  %7978 = vmatpush3.msra.mxu0 %v8937_v15  ;;  %7979 = vmatprep.mubr.msk.f32.mxu0 %vm8561_vm4, %v8560_v11 }
 0x90c   :  { %v2588_v0 = vmul.f32 %v8436_v63, %v8420_v32  ;;  %7987 = vmatprep.subr.mxu0 %v8560_v11 }
 0x90e   :  { %7975 = vmatmul.mubr.msk.f32.vlgmr.msra.gmra.mrb[30].mxu1 %vm231_vm5, %v2588_v0 }
 0x90f   :  { %7983 = vmatpush3.msra.mxu1 %v8956_v16  ;;  %7984 = vmatprep.mubr.msk.f32.mxu1 %vm8561_vm4, %v8560_v11 }
 0x910   :  { %7992 = vmatprep.subr.mxu1 %v8560_v11 }
 0x96f   :  { %v2563_v1 = vpop.xlane.xlu1 %2562 }
 0x970   :  { %8437 = vrcp.f32 %v2563_v1 }
 0x974   :  { %v2566_v2 = vpop.xlane.xlu0 %2565 }
 0x975   :  { %8439 = vrcp.f32 %v2566_v2 }
 0x977   :  { %v2569_v3 = vpop.xlane.xlu1 %2568 }
 0x978   :  { %v2572_v4 = vpop.xlane.xlu0 %2571  ;;  %8441 = vrcp.f32 %v2569_v3 }
 0x979   :  { %8443 = vrcp.f32 %v2572_v4  ;;  %v3562_v4 = vld [vmem:[%s9587_s10 + $0x8] sm:$0xff] }
 0x97a   :  { %v8438_v5 = vpop.eup %8437 }
 0x97b   :  { %v2589_v30 = vmul.f32 %v8438_v5, %v8422_v43 }
 0x97d   :  { %7980 = vmatmul.mubr.msk.f32.vlgmr.msra.gmra.mrb[24].mxu0 %vm231_vm5, %v2589_v30  ;;  %v3563_v30 = vld [vmem:[%s9587_s10 + $0x10] sm:$0xff] }
 0x97e   :  { %7988 = vmatpush3.msra.mxu0 %v8966_v31  ;;  %v2578_v6 = vpop.xlane.xlu0 %2577  ;;  %7989 = vmatprep.mubr.msk.f32.mxu0 %vm8561_vm4, %v8560_v11 }
 0x97f   :  { %v8440_v7 = vpop.eup %8439  ;;  %8445 = vrcp.f32 %v2578_v6  ;;  %v2575_v8 = vpop.xlane.xlu1 %2574  ;;  %7997 = vmatprep.subr.mxu0 %v8560_v11  ;;  %v3564_v6 = vld [vmem:[%s9587_s10 + $0x18] sm:$0xff] }
 0x980   :  { %v2590_v9 = vmul.f32 %v8440_v7, %v8424_v51  ;;  %8447 = vrcp.f32 %v2575_v8  ;;  %v8303_v7 = vpack.c.bf16 %v3564_v6, %v3563_v30  ;;  %v3655_v8 = vld [vmem:[%s9589_s12] sm:$0xff] }
 0x982   :  { %v8442_v28 = vpop.eup %8441  ;;  %7985 = vmatmul.mubr.msk.f32.vlgmr.msra.gmra.mrb[32].mxu1 %vm231_vm5, %v2590_v9  ;;  %v3656_v9 = vld [vmem:[%s9589_s12 + $0x8] sm:$0xff] }
 0x983   :  { %v8444_v10 = vpop.eup %8443  ;;  %v2591_v12 = vmul.f32 %v8442_v28, %v8426_v53  ;;  %7993 = vmatpush3.msra.mxu1 %v8963_v29  ;;  %7994 = vmatprep.mubr.msk.f32.mxu1 %vm8561_vm4, %v8560_v11  ;;  %v8307_v28 = vpack.c.bf16 %v3656_v9, %v3655_v8 }
 0x984   :  { %v2592_v27 = vmul.f32 %v8444_v10, %v8428_v54  ;;  %8002 = vmatprep.subr.mxu1 %v8560_v11 }
 0x985   :  { %7990 = vmatmul.mubr.msk.f32.vlgmr.msra.gmra.mrb[26].mxu0 %vm231_vm5, %v2591_v12 }
 0x986   :  { %7995 = vmatmul.mubr.msk.f32.vlgmr.msra.gmra.mrb[34].mxu1 %vm231_vm5, %v2592_v27  ;;  %7998 = vmatpush3.msra.mxu0 %v8985_v20 }
 0x987   :  { %8003 = vmatpush3.msra.mxu1 %v8983_v19  ;;  %8004 = vmatprep.mubr.msk.f32.mxu1 %vm8561_vm4, %v8560_v11 }
 0x988   :  { %7999 = vmatprep.mubr.msk.f32.mxu0 %vm8561_vm4, %v8560_v11  ;;  %8007 = vmatprep.subr.mxu0 %v1895_v22 }
 0x989   :  { %v8446_v17 = vpop.eup %8445 }
 0x98a   :  { %v8448_v32 = vpop.eup %8447  ;;  %v2594_v18 = vmul.f32 %v8446_v17, %v8430_v57 }
 0x98b   :  { %v2593_v21 = vmul.f32 %v8448_v32, %v8432_v58 }
 0x98c   :  { %8005 = vmatmul.mubr.msk.f32.vlgmr.msra.gmra.mrb[36].mxu1 %vm231_vm5, %v2594_v18 }
 0x98d   :  { %8000 = vmatmul.mubr.msk.f32.vlgmr.msra.gmra.mrb[28].mxu0 %vm231_vm5, %v2593_v21 }
 0x98e   :  { %8008 = vmatpush3.msra.mxu0 %v1895_v22  ;;  %v7475_v22 = vld [vmem:[%s9593_s16] ss:$0 sm:$0xff] }
 0x98f   :  { %8012 = vmatprep.subr.mxu0 %v1894_v23 }
 0x9dd   :  { %v2664_v33 = vpop.f32.mrb[22].mxu0 }
 0x9de   :  { %v7971_v35 = vpop.f32.mrb[23].mxu0 }
 0x9e1   :  { %v2737_v36 = vpop.f32.mrb[30].mxu1 }
 0x9e2   :  { %v7976_v37 = vpop.f32.mrb[31].mxu1 }
 0xa50   :  { %v2810_v38 = vpop.f32.mrb[24].mxu0 }
 0xa51   :  { %v7981_v39 = vpop.f32.mrb[25].mxu0  ;;  %8009 = vmatprep.mubr.msk.f32.mxu0 %vm231_vm5, %v2810_v38 }
 0xa52   :  { %v3657_v39 = vld [vmem:[%s9589_s12 + $0x10] sm:$0xff] }
 0xa55   :  { %v2883_v40 = vpop.f32.mrb[32].mxu1 }
 0xa56   :  { %v7986_v42 = vpop.f32.mrb[33].mxu1  ;;  %8010 = vmatmul.mubr.msk.f32.vlgmr.msra.gmra.mrb[30].mxu0 %vm231_vm5, %v2883_v40  ;;  %v3658_v40 = vld [vmem:[%s9589_s12 + $0x18] sm:$0xff] }
 0xa57   :  { %8013 = vmatpush3.msra.mxu0 %v1894_v23  ;;  %8014 = vmatprep.mubr.msk.f32.mxu0 %vm231_vm5, %v2664_v33 }
 0xa58   :  { %v2956_v43 = vpop.f32.mrb[26].mxu0  ;;  %8017 = vmatprep.subr.mxu0 %v1896_v41 }
 0xa59   :  { %v3029_v44 = vpop.f32.mrb[34].mxu1  ;;  %v7991_v45 = vpop.f32.mrb[27].mxu0 }
 0xa5a   :  { %v7996_v46 = vpop.f32.mrb[35].mxu1  ;;  %v3660_v45 = vld [vmem:[%s9589_s12 + $0x28] sm:$0xff] }
 0xa5e   :  { %8015 = vmatmul.mubr.msk.f32.vlgmr.msra.gmra.mrb[30].mxu0 %vm231_vm5, %v2737_v36  ;;  %v7476_v36 = vld [vmem:[%s9594_s17] ss:$0 sm:$0xff] }
 0xa5f   :  { %8018 = vmatpush3.msra.mxu0 %v1896_v41  ;;  %8019 = vmatprep.mubr.msk.f32.mxu0 %vm231_vm5, %v2956_v43  ;;  %v3175_v48 = vpop.f32.mrb[36].mxu1  ;;  %v8311_v43 = vpack.c.bf16 %v3658_v40, %v3657_v39 }
 0xa60   :  { %v3102_v49 = vpop.f32.mrb[28].mxu0  ;;  %v8006_v50 = vpop.f32.mrb[37].mxu1  ;;  %8022 = vmatprep.subr.mxu0 %v1897_v47 }
 0xa61   :  { %v8001_v51 = vpop.f32.mrb[29].mxu0  ;;  %v7477_v50 = vld [vmem:[%s9588_s11] ss:$0 sm:$0xff] }
 0xa66   :  { %8020 = vmatmul.mubr.msk.f32.vlgmr.msra.gmra.mrb[30].mxu0 %vm231_vm5, %v3029_v44  ;;  %v3659_v44 = vld [vmem:[%s9589_s12 + $0x20] sm:$0xff] }
 0xa67   :  { %8023 = vmatpush3.msra.mxu0 %v1897_v47  ;;  %8024 = vmatprep.mubr.msk.f32.mxu0 %vm231_vm5, %v3102_v49  ;;  %v8315_v46 = vpack.c.bf16 %v3660_v45, %v3659_v44  ;;  %v3661_v47 = vld [vmem:[%s9589_s12 + $0x30] sm:$0xff] }
 0xa68   :  { %8057 = vmatprep.subr.mxu0 %v8560_v11 }
 0xa6e   :  { %8025 = vmatmul.mubr.msk.f32.vlgmr.msra.gmra.mrb[30].mxu0 %vm231_vm5, %v3175_v48  ;;  %v3662_v48 = vld [vmem:[%s9589_s12 + $0x38] sm:$0xff] }
 0xa6f   :  { %8059 = vmatprep.mubr.msk.f32.mxu0 %vm8561_vm4, %v8560_v11  ;;  %v8319_v49 = vpack.c.bf16 %v3662_v48, %v3661_v47 }
 0xb41   :  { %v8026_v53 = vpop.f32.mrb[30].mxu0 }
 0xb42   :  { %v3514_v54 = vadd.f32 %v8026_v53, %v7474_v52  ;;  %v3496_v55 = vpop.f32.mrb[31].mxu0 }
 0xb43   :  { %v3513_v56 = vadd.f32 %v7474_v52, %v3496_v55 }
 0xb44   :  { %v3518_v57 = vadd.f32 %v3514_v54, %v8916_v13 }
 0xb45   :  { %v3517_v58 = vadd.f32 %v3513_v56, %v8918_v14  ;;  %v3561_v14 = vld [vmem:[%s9587_s10] sm:$0xff] }
 0xb46   :  { %v3522_v59 = vsel %vm1836_vm6, %v3518_v57, 0.0  ;;  %v8299_v5 = vpack.c.bf16 %v3562_v4, %v3561_v14 }
 0xb47   :  { %3523 = vadd.xlane.f32.xlu0 %v3522_v59  ;;  %v3519_v60 = vsel %vm1836_vm6, %v3517_v58, 0.0 }
 0xb48   :  { %3520 = vadd.xlane.f32.xlu1 %v3519_v60  ;;  %8300 = vmatprep.subr.bf16.mxu1 %v8299_v5 }
 0xb49   :  { %8302 = vmatpush3.bf16.msra.mxu1 %v8299_v5 }
 0xb4a   :  { %8304 = vmatprep.subr.bf16.mxu1 %v8303_v7 }
 0xb4d   :  { %8306 = vmatpush3.bf16.msra.mxu1 %v8303_v7 }
 0xb4e   :  { %8308 = vmatprep.subr.bf16.mxu1 %v8307_v28 }
 0xbd4   :  { %v3524_v61 = vpop.xlane.xlu0 %3523 }
 0xbd5   :  { %v3526_v62 = vmul.f32 0.03125, %v3524_v61  ;;  %v3521_v25 = vpop.xlane.xlu1 %3520 }
 0xbd6   :  { %v3525_v26 = vmul.f32 0.03125, %v3521_v25 }
 0xbd7   :  { %v3528_v63 = vsub.f32 %v3518_v57, %v3526_v62  ;;  %v7480_v57 = vld [vmem:[%s9613_s28] ss:$0 sm:$0xff] }
 0xbd8   :  { %v3527_v0 = vsub.f32 %v3517_v58, %v3525_v26 }
 0xbd9   :  { %v3530_v1 = vmul.f32 %v3528_v63, %v3528_v63 }
 0xbda   :  { %v3529_v2 = vmul.f32 %v3527_v0, %v3527_v0 }
 0xbdb   :  { %v3534_v3 = vsel %vm1836_vm6, %v3530_v1, 0.0 }
 0xbdc   :  { %3535 = vadd.xlane.f32.xlu0 %v3534_v3  ;;  %v3531_v13 = vsel %vm1836_vm6, %v3529_v2, 0.0 }
 0xbdd   :  { %3532 = vadd.xlane.f32.xlu1 %v3531_v13 }
 0xc69   :  { %v3536_v10 = vpop.xlane.xlu0 %3535 }
 0xc6a   :  { %v3538_v12 = vmul.f32 0.03125, %v3536_v10  ;;  %v3533_v27 = vpop.xlane.xlu1 %3532 }
 0xc6b   :  { %v3537_v17 = vmul.f32 0.03125, %v3533_v27 }
 0xc6c   :  { %v3540_v32 = vadd.f32 1e-05, %v3538_v12 }
 0xc6d   :  { %v3539_v18 = vadd.f32 1e-05, %v3537_v17  ;;  %v7483_v17 = vld [vmem:[%s9595_s18] ss:$0 sm:$0xff] }
 0xc6e   :  { %8449 = vrsqrt.f32 %v3540_v32 }
 0xc6f   :  { %8451 = vrsqrt.f32 %v3539_v18 }
 0xc78   :  { %v8450_v21 = vpop.eup %8449 }
 0xc79   :  { %v8452_v23 = vpop.eup %8451  ;;  %v3544_v33 = vmul.f32 %v8450_v21, %v3528_v63  ;;  %v7484_v21 = vld [vmem:[%s9596_s19] ss:$0 sm:$0xff] }
 0xc7a   :  { %v3543_v35 = vmul.f32 %v8452_v23, %v3527_v0 }
 0xc7b   :  { %v3552_v37 = vmul.f32 %v7475_v22, %v3544_v33 }
 0xc7c   :  { %v3551_v38 = vmul.f32 %v7475_v22, %v3543_v35 }
 0xc7d   :  { %v3560_v42 = vadd.f32 %v7476_v36, %v3552_v37 }
 0xc7e   :  { %v3559_v41 = vadd.f32 %v7476_v36, %v3551_v38 }
 0xc80   :  { %8035 = vmatprep.mubr.msk.f32.mxu1 %vm1836_vm6, %v3559_v41 }
 0xc81   :  { %8036 = vmatmul.mubr.msk.f32.vlgmr.msra.gmra.mrb[38].mxu1 %vm1836_vm6, %v3560_v42 }
 0xc82   :  { %8310 = vmatpush3.bf16.msra.mxu1 %v8307_v28 }
 0xc83   :  { %8312 = vmatprep.subr.bf16.mxu1 %v8311_v43 }
 0xc86   :  { %8314 = vmatpush3.bf16.msra.mxu1 %v8311_v43 }
 0xc87   :  { %8316 = vmatprep.subr.bf16.mxu1 %v8315_v46 }
 0xc8a   :  { %8318 = vmatpush3.bf16.msra.mxu1 %v8315_v46 }
 0xc8b   :  { %8320 = vmatprep.subr.bf16.mxu1 %v8319_v49 }
 0xc8e   :  { %8322 = vmatpush3.bf16.msra.mxu1 %v8319_v49 }
 0xc8f   :  { %8072 = vmatprep.subr.mxu1 %v8560_v11 }
 0xd54   :  { %v8037_v51 = vpop.f32.mrb[38].mxu1 }
 0xd55   :  { %v3650_v52 = vadd.f32 %v8037_v51, %v7477_v50  ;;  %v3644_v53 = vpop.f32.mrb[39].mxu1 }
 0xd56   :  { %v3645_v54 = vadd.f32 %v7477_v50, %v3644_v53 }
 0xd57   :  { %v3654_v56 = vmax.f32 %v3650_v52, 0.0 }
 0xd58   :  { %v3653_v55 = vmax.f32 %v3645_v54, 0.0 }
 0xd5a   :  { %8054 = vmatprep.mubr.msk.f32.mxu1 %vm3670_vm7, %v3653_v55 }
 0xd5b   :  { %8055 = vmatmul.mubr.msk.f32.vlgmr.msra.gmra.mrb[40].mxu1 %vm3670_vm7, %v3654_v56 }
 0xd5c   :  { %8074 = vmatprep.mubr.msk.f32.mxu1 %vm8561_vm4, %v8560_v11 }
 0xe2e   :  { %v8056_v58 = vpop.f32.mrb[40].mxu1 }
 0xe2f   :  { %v3749_v59 = vadd.f32 %v8056_v58, %v7480_v57  ;;  %v3743_v60 = vpop.f32.mrb[41].mxu1 }
 0xe30   :  { %v3744_v61 = vadd.f32 %v7480_v57, %v3743_v60 }
 0xe31   :  { %v3755_v62 = vadd.f32 %v3749_v59, %v3560_v42 }
 0xe32   :  { %v3754_v25 = vadd.f32 %v3744_v61, %v3559_v41 }
 0xe33   :  { %v3759_v26 = vsel %vm1836_vm6, %v3755_v62, 0.0 }
 0xe34   :  { %3760 = vadd.xlane.f32.xlu0 %v3759_v26  ;;  %v3756_v63 = vsel %vm1836_vm6, %v3754_v25, 0.0 }
 0xe35   :  { %3757 = vadd.xlane.f32.xlu1 %v3756_v63 }
 0xec1   :  { %v3761_v0 = vpop.xlane.xlu0 %3760 }
 0xec2   :  { %v3763_v1 = vmul.f32 0.03125, %v3761_v0  ;;  %v3758_v2 = vpop.xlane.xlu1 %3757 }
 0xec3   :  { %v3762_v3 = vmul.f32 0.03125, %v3758_v2 }
 0xec4   :  { %v3765_v13 = vsub.f32 %v3755_v62, %v3763_v1 }
 0xec5   :  { %v3764_v14 = vsub.f32 %v3754_v25, %v3762_v3 }
 0xec6   :  { %v3767_v4 = vmul.f32 %v3765_v13, %v3765_v13 }
 0xec7   :  { %v3766_v5 = vmul.f32 %v3764_v14, %v3764_v14 }
 0xec8   :  { %v3771_v30 = vsel %vm1836_vm6, %v3767_v4, 0.0 }
 0xec9   :  { %3772 = vadd.xlane.f32.xlu0 %v3771_v30  ;;  %v3768_v6 = vsel %vm1836_vm6, %v3766_v5, 0.0 }
 0xeca   :  { %3769 = vadd.xlane.f32.xlu1 %v3768_v6 }
 0xf56   :  { %v3773_v7 = vpop.xlane.xlu0 %3772 }
 0xf57   :  { %v3775_v8 = vmul.f32 0.03125, %v3773_v7  ;;  %v3770_v9 = vpop.xlane.xlu1 %3769 }
 0xf58   :  { %v3774_v28 = vmul.f32 0.03125, %v3770_v9 }
 0xf59   :  { %v3777_v10 = vadd.f32 1e-05, %v3775_v8 }
 0xf5a   :  { %v3776_v12 = vadd.f32 1e-05, %v3774_v28 }
 0xf5b   :  { %8453 = vrsqrt.f32 %v3777_v10 }
 0xf5c   :  { %8455 = vrsqrt.f32 %v3776_v12 }
 0xf65   :  { %v8454_v27 = vpop.eup %8453 }
 0xf66   :  { %v8456_v32 = vpop.eup %8455  ;;  %v3781_v18 = vmul.f32 %v8454_v27, %v3765_v13 }
 0xf67   :  { %v3780_v22 = vmul.f32 %v8456_v32, %v3764_v14 }
 0xf68   :  { %v3789_v23 = vmul.f32 %v7483_v17, %v3781_v18 }
 0xf69   :  { %v3788_v33 = vmul.f32 %v7483_v17, %v3780_v22 }
 0xf6a   :  { %v9159_v35 = vadd.f32 %v7484_v21, %v3789_v23 }
 0xf6b   :  { %v9161_v36 = vadd.f32 %v7484_v21, %v3788_v33 }
 0xf6c   :  { %3802 = vrot.lane.b32.xlu0 %v9159_v35, %s8563_s26 }
 0xf6d   :  { %3800 = vrot.lane.b32.xlu1 %v9161_v36, %s8563_s26  ;;  %8058 = vmatpush3.xpose.msk.msra.mxu0 %vm231_vm5, %v9161_v36 }
 0xf6e   :  { %8062 = vmatprep.subr.mxu0 %v8560_v11 }
 0xf70   :  { %3812 = vrot.lane.b32.xlu0 %v9161_v36, %s8564_s27  ;;  %8060 = vmatmul.mubr.msk.f32.vlgmr.msra.gmra.mrb[32].mxu0 %vm231_vm5, %v9161_v36 }
 0xf71   :  { %3806 = vrot.lane.b32.xlu1 %v9161_v36, %s8562_s3  ;;  %8063 = vmatpush3.xpose.msk.msra.mxu0 %vm231_vm5, %v9159_v35 }
 0xf72   :  { %8064 = vmatprep.mubr.msk.f32.mxu0 %vm8561_vm4, %v8560_v11  ;;  %8067 = vmatprep.subr.mxu0 %v8560_v11 }
 0xf74   :  { %8065 = vmatmul.mubr.msk.f32.vlgmr.msra.gmra.mrb[34].mxu0 %vm231_vm5, %v9159_v35 }
 0xf75   :  { %3808 = vrot.lane.b32.xlu1 %v9159_v35, %s8562_s3  ;;  %8069 = vmatprep.mubr.msk.f32.mxu0 %vm8561_vm4, %v8560_v11 }
 0xf79   :  { %3814 = vrot.lane.b32.xlu1 %v9159_v35, %s8564_s27 }
 0xfde   :  { %v9189_v37 = vpop.permute.xlu0 %3802 }
 0xfdf   :  { %8073 = vmatpush3.xpose.msk.msra.mxu1 %vm231_vm5, %v9189_v37  ;;  %v9193_v38 = vpop.permute.xlu1 %3800 }
 0xfe0   :  { %8068 = vmatpush3.xpose.msk.msra.mxu0 %vm231_vm5, %v9193_v38  ;;  %8082 = vmatprep.subr.mxu1 %v8560_v11 }
 0xfe1   :  { %8077 = vmatprep.subr.mxu0 %v8560_v11 }
 0xfe2   :  { %8075 = vmatmul.mubr.msk.f32.vlgmr.msra.gmra.mrb[42].mxu1 %vm231_vm5, %v9189_v37  ;;  %v9212_v40 = vpop.permute.xlu0 %3812 }
 0xfe3   :  { %v9201_v39 = vpop.permute.xlu1 %3806  ;;  %8070 = vmatmul.mubr.msk.f32.vlgmr.msra.gmra.mrb[36].mxu0 %vm231_vm5, %v9193_v38  ;;  %8084 = vmatprep.mubr.msk.f32.mxu1 %vm8561_vm4, %v8560_v11 }
 0xfe4   :  { %8078 = vmatpush3.xpose.msk.msra.mxu0 %vm231_vm5, %v9201_v39  ;;  %8079 = vmatprep.mubr.msk.f32.mxu0 %vm8561_vm4, %v8560_v11 }
 0xfe5   :  { %8087 = vmatprep.subr.mxu0 %v8560_v11 }
 0xfe7   :  { %v9214_v41 = vpop.permute.xlu1 %3808  ;;  %8080 = vmatmul.mubr.msk.f32.vlgmr.msra.gmra.mrb[38].mxu0 %vm231_vm5, %v9201_v39 }
 0xfe8   :  { %8083 = vmatpush3.xpose.msk.msra.mxu1 %vm231_vm5, %v9214_v41  ;;  %8088 = vmatpush3.xpose.msk.msra.mxu0 %vm231_vm5, %v9212_v40 }
 0xfe9   :  { %8089 = vmatprep.mubr.msk.f32.mxu0 %vm8561_vm4, %v8560_v11  ;;  %8092 = vmatprep.subr.mxu1 %v8560_v11 }
 0xfea   :  { %8097 = vmatprep.subr.mxu0 %v8560_v11 }
 0xfeb   :  { %8085 = vmatmul.mubr.msk.f32.vlgmr.msra.gmra.mrb[44].mxu1 %vm231_vm5, %v9214_v41  ;;  %v9228_v42 = vpop.permute.xlu1 %3814  ;;  %8090 = vmatmul.mubr.msk.f32.vlgmr.msra.gmra.mrb[40].mxu0 %vm231_vm5, %v9212_v40 }
 0xfec   :  { %8093 = vmatpush3.xpose.msk.msra.mxu1 %vm231_vm5, %v9228_v42  ;;  %8098 = vmatpush3.msra.mxu0 %v9161_v36 }
 0xfed   :  { %8094 = vmatprep.mubr.msk.f32.mxu1 %vm8561_vm4, %v8560_v11  ;;  %8102 = vmatprep.subr.mxu1 %v8560_v11 }
 0xfee   :  { %8099 = vmatprep.mubr.msk.f32.mxu0 %vm8561_vm4, %v8560_v11  ;;  %8107 = vmatprep.subr.mxu0 %v8560_v11 }
 0xfef   :  { %8095 = vmatmul.mubr.msk.f32.vlgmr.msra.gmra.mrb[46].mxu1 %vm231_vm5, %v9228_v42 }
 0xff0   :  { %8103 = vmatpush3.msra.mxu1 %v9159_v35  ;;  %8104 = vmatprep.mubr.msk.f32.mxu1 %vm8561_vm4, %v8560_v11 }
 0xff1   :  { %8112 = vmatprep.subr.mxu1 %v8560_v11 }
0x1043   :  { %v3893_v43 = vpop.f32.mrb[32].mxu0 }
0x1044   :  { %v4401_v44 = vmul.f32 0.35355338, %v3893_v43  ;;  %v8061_v45 = vpop.f32.mrb[33].mxu0 }
0x1046   :  { %v4409_v46 = vadd.f32 %v4401_v44, %v8802_v34 }
0x1047   :  { %v3965_v47 = vpop.f32.mrb[34].mxu0 }
0x1048   :  { %v4402_v48 = vmul.f32 0.35355338, %v3965_v47  ;;  %v8066_v49 = vpop.f32.mrb[35].mxu0  ;;  %v4417_v50 = vsel %vm231_vm5, %v4409_v46, -inf }
0x1049   :  { %4418 = vmax.xlane.f32.xlu0 %v4417_v50 }
0x104a   :  { %v4410_v51 = vadd.f32 %v4402_v48, %v8802_v34 }
0x104c   :  { %v4420_v52 = vsel %vm231_vm5, %v4410_v51, -inf }
0x104d   :  { %4421 = vmax.xlane.f32.xlu1 %v4420_v52 }
0x10b5   :  { %v4109_v53 = vpop.f32.mrb[42].mxu1 }
0x10b6   :  { %v4404_v54 = vmul.f32 0.35355338, %v4109_v53  ;;  %v4037_v55 = vpop.f32.mrb[36].mxu0  ;;  %v8076_v56 = vpop.f32.mrb[43].mxu1 }
0x10b7   :  { %v4403_v57 = vmul.f32 0.35355338, %v4037_v55  ;;  %v8071_v58 = vpop.f32.mrb[37].mxu0 }
0x10b8   :  { %v4412_v61 = vadd.f32 %v4404_v54, %v8802_v34 }
0x10b9   :  { %v4411_v59 = vadd.f32 %v4403_v57, %v8802_v34 }
0x10ba   :  { %v4181_v60 = vpop.f32.mrb[38].mxu0  ;;  %v4426_v2 = vsel %vm231_vm5, %v4412_v61, -inf }
0x10bb   :  { %v4405_v62 = vmul.f32 0.35355338, %v4181_v60  ;;  %v8081_v25 = vpop.f32.mrb[39].mxu0  ;;  %v4423_v26 = vsel %vm231_vm5, %v4411_v59, -inf }
0x10bc   :  { %4424 = vmax.xlane.f32.xlu0 %v4423_v26 }
0x10bd   :  { %v4413_v63 = vadd.f32 %v4405_v62, %v8802_v34 }
0x10be   :  { %v4253_v0 = vpop.f32.mrb[44].mxu1  ;;  %v4325_v1 = vpop.f32.mrb[40].mxu0 }
0x10bf   :  { %v4406_v3 = vmul.f32 0.35355338, %v4253_v0  ;;  %v4407_v13 = vmul.f32 0.35355338, %v4325_v1  ;;  %v8086_v14 = vpop.f32.mrb[45].mxu1  ;;  %v8091_v4 = vpop.f32.mrb[41].mxu0 }
0x10c0   :  { %4427 = vmax.xlane.f32.xlu0 %v4426_v2  ;;  %v4429_v5 = vsel %vm231_vm5, %v4413_v63, -inf }
0x10c1   :  { %4430 = vmax.xlane.f32.xlu1 %v4429_v5  ;;  %v4414_v30 = vadd.f32 %v4406_v3, %v8802_v34  ;;  %v4415_v6 = vadd.f32 %v4407_v13, %v8802_v34 }
0x10c2   :  { %v4397_v7 = vpop.f32.mrb[46].mxu1 }
0x10c3   :  { %v4408_v8 = vmul.f32 0.35355338, %v4397_v7  ;;  %v8096_v9 = vpop.f32.mrb[47].mxu1  ;;  %v4432_v28 = vsel %vm231_vm5, %v4414_v30, -inf  ;;  %v4435_v10 = vsel %vm231_vm5, %v4415_v6, -inf }
0x10c4   :  { %4433 = vmax.xlane.f32.xlu0 %v4432_v28 }
0x10c5   :  { %4436 = vmax.xlane.f32.xlu1 %v4435_v10  ;;  %v4416_v12 = vadd.f32 %v4408_v8, %v8802_v34 }
0x10c7   :  { %v4438_v27 = vsel %vm231_vm5, %v4416_v12, -inf }
0x10c8   :  { %4439 = vmax.xlane.f32.xlu0 %v4438_v27 }
0x10d6   :  { %v4419_v17 = vpop.xlane.xlu0 %4418 }
0x10d7   :  { %v4441_v32 = vsub.f32 %v4409_v46, %v4419_v17 }
0x10d9   :  { %v4449_v18 = vmul.f32 1.442695, %v4441_v32 }
0x10da   :  { %v4422_v21 = vpop.xlane.xlu1 %4421 }
0x10db   :  { %8457 = vpow2.f32 %v4449_v18  ;;  %v4442_v22 = vsub.f32 %v4410_v51, %v4422_v21 }
0x10dd   :  { %v4451_v23 = vmul.f32 1.442695, %v4442_v22 }
0x10df   :  { %8459 = vpow2.f32 %v4451_v23 }
0x10e5   :  { %v8458_v33 = vpop.eup %8457 }
0x10e6   :  { %v4465_v43 = vsel %vm231_vm5, %v8458_v33, 0.0 }
0x10e7   :  { %4466 = vadd.xlane.f32.xlu1 %v4465_v43 }
0x10e9   :  { %v8460_v44 = vpop.eup %8459 }
0x10ea   :  { %v4468_v45 = vsel %vm231_vm5, %v8460_v44, 0.0 }
0x10eb   :  { %4469 = vadd.xlane.f32.xlu0 %v4468_v45 }
0x1149   :  { %v4425_v34 = vpop.xlane.xlu0 %4424 }
0x114a   :  { %v4443_v47 = vsub.f32 %v4411_v59, %v4425_v34 }
0x114c   :  { %v4453_v48 = vmul.f32 1.442695, %v4443_v47 }
0x114d   :  { %v4428_v49 = vpop.xlane.xlu0 %4427 }
0x114e   :  { %8461 = vpow2.f32 %v4453_v48  ;;  %v4444_v46 = vsub.f32 %v4412_v61, %v4428_v49  ;;  %v4431_v50 = vpop.xlane.xlu1 %4430  ;;  %v7485_v48 = vld [vmem:[%s9583_s6 + $0x20] sm:$0xff] }
0x114f   :  { %v4445_v52 = vsub.f32 %v4413_v63, %v4431_v50 }
0x1150   :  { %v4455_v53 = vmul.f32 1.442695, %v4444_v46 }
0x1151   :  { %v4457_v51 = vmul.f32 1.442695, %v4445_v52  ;;  %v4434_v54 = vpop.xlane.xlu0 %4433 }
0x1152   :  { %8463 = vpow2.f32 %v4455_v53  ;;  %v4446_v55 = vsub.f32 %v4414_v30, %v4434_v54  ;;  %v4437_v56 = vpop.xlane.xlu1 %4436 }
0x1153   :  { %8465 = vpow2.f32 %v4457_v51  ;;  %v4447_v57 = vsub.f32 %v4415_v6, %v4437_v56 }
0x1154   :  { %v4459_v58 = vmul.f32 1.442695, %v4446_v55  ;;  %v7487_v55 = vld [vmem:[%s9583_s6 + $0x30] sm:$0xff] }
0x1155   :  { %v4461_v60 = vmul.f32 1.442695, %v4447_v57  ;;  %v4440_v62 = vpop.xlane.xlu0 %4439 }
0x1156   :  { %8467 = vpow2.f32 %v4459_v58  ;;  %v4448_v25 = vsub.f32 %v4416_v12, %v4440_v62 }
0x1157   :  { %8469 = vpow2.f32 %v4461_v60 }
0x1158   :  { %v8462_v59 = vpop.eup %8461  ;;  %v4463_v26 = vmul.f32 1.442695, %v4448_v25 }
0x1159   :  { %v4471_v61 = vsel %vm231_vm5, %v8462_v59, 0.0 }
0x115a   :  { %8471 = vpow2.f32 %v4463_v26  ;;  %4472 = vadd.xlane.f32.xlu1 %v4471_v61  ;;  %v7488_v61 = vld [vmem:[%s9583_s6 + $0x38] sm:$0xff] }
0x115c   :  { %v8464_v63 = vpop.eup %8463 }
0x115d   :  { %v8466_v0 = vpop.eup %8465  ;;  %v4474_v1 = vsel %vm231_vm5, %v8464_v63, 0.0 }
0x115e   :  { %4475 = vadd.xlane.f32.xlu0 %v4474_v1  ;;  %v4477_v2 = vsel %vm231_vm5, %v8466_v0, 0.0 }
0x115f   :  { %4478 = vadd.xlane.f32.xlu1 %v4477_v2 }
0x1160   :  { %v8468_v3 = vpop.eup %8467 }
0x1161   :  { %v8470_v13 = vpop.eup %8469  ;;  %v4480_v14 = vsel %vm231_vm5, %v8468_v3, 0.0 }
0x1162   :  { %4481 = vadd.xlane.f32.xlu0 %v4480_v14  ;;  %v4483_v4 = vsel %vm231_vm5, %v8470_v13, 0.0 }
0x1163   :  { %4484 = vadd.xlane.f32.xlu1 %v4483_v4 }
0x1164   :  { %v8472_v5 = vpop.eup %8471 }
0x1165   :  { %v4486_v30 = vsel %vm231_vm5, %v8472_v5, 0.0 }
0x1166   :  { %4487 = vadd.xlane.f32.xlu0 %v4486_v30 }
0x1174   :  { %v4467_v6 = vpop.xlane.xlu1 %4466 }
0x1175   :  { %8473 = vrcp.f32 %v4467_v6 }
0x1178   :  { %v4470_v7 = vpop.xlane.xlu0 %4469 }
0x1179   :  { %8475 = vrcp.f32 %v4470_v7 }
0x117f   :  { %v8474_v8 = vpop.eup %8473 }
0x1180   :  { %v4497_v9 = vmul.f32 %v8474_v8, %v8458_v33 }
0x1182   :  { %8100 = vmatmul.mubr.msk.f32.vlgmr.msra.gmra.mrb[42].mxu0 %vm231_vm5, %v4497_v9 }
0x1183   :  { %v8476_v28 = vpop.eup %8475  ;;  %8108 = vmatpush3.msra.mxu0 %v9193_v38  ;;  %8109 = vmatprep.mubr.msk.f32.mxu0 %vm8561_vm4, %v8560_v11 }
0x1184   :  { %v4498_v10 = vmul.f32 %v8476_v28, %v8460_v44  ;;  %8117 = vmatprep.subr.mxu0 %v8560_v11 }
0x1186   :  { %8105 = vmatmul.mubr.msk.f32.vlgmr.msra.gmra.mrb[48].mxu1 %vm231_vm5, %v4498_v10 }
0x1187   :  { %8113 = vmatpush3.msra.mxu1 %v9189_v37  ;;  %8114 = vmatprep.mubr.msk.f32.mxu1 %vm8561_vm4, %v8560_v11 }
0x1188   :  { %8122 = vmatprep.subr.mxu1 %v8560_v11 }
0x11e7   :  { %v4473_v12 = vpop.xlane.xlu1 %4472 }
0x11e8   :  { %8477 = vrcp.f32 %v4473_v12 }
0x11eb   :  { %v4476_v27 = vpop.xlane.xlu0 %4475 }
0x11ec   :  { %8479 = vrcp.f32 %v4476_v27  ;;  %v4479_v38 = vpop.xlane.xlu1 %4478 }
0x11ed   :  { %8481 = vrcp.f32 %v4479_v38 }
0x11ef   :  { %v4482_v17 = vpop.xlane.xlu0 %4481 }
0x11f0   :  { %8483 = vrcp.f32 %v4482_v17  ;;  %v4485_v32 = vpop.xlane.xlu1 %4484 }
0x11f1   :  { %8485 = vrcp.f32 %v4485_v32 }
0x11f2   :  { %v8478_v18 = vpop.eup %8477 }
0x11f3   :  { %v4499_v21 = vmul.f32 %v8478_v18, %v8462_v59  ;;  %v4488_v22 = vpop.xlane.xlu0 %4487 }
0x11f4   :  { %8487 = vrcp.f32 %v4488_v22 }
0x11f5   :  { %8110 = vmatmul.mubr.msk.f32.vlgmr.msra.gmra.mrb[44].mxu0 %vm231_vm5, %v4499_v21 }
0x11f6   :  { %v8480_v37 = vpop.eup %8479  ;;  %8118 = vmatpush3.msra.mxu0 %v9201_v39  ;;  %8119 = vmatprep.mubr.msk.f32.mxu0 %vm8561_vm4, %v8560_v11 }
0x11f7   :  { %v8482_v23 = vpop.eup %8481  ;;  %v4500_v33 = vmul.f32 %v8480_v37, %v8464_v63  ;;  %8127 = vmatprep.subr.mxu0 %v8560_v11 }
0x11f8   :  { %v4501_v43 = vmul.f32 %v8482_v23, %v8466_v0  ;;  %v7522_v0 = vld [vmem:[%s9584_s7 + $0x1] ss:$0 sm:$0xff] }
0x11f9   :  { %8115 = vmatmul.mubr.msk.f32.vlgmr.msra.gmra.mrb[50].mxu1 %vm231_vm5, %v4500_v33  ;;  %v7525_v23 = vld [vmem:[%s9591_s14 + $0x1] ss:$0 sm:$0xff]  ;;  %s8535_s14 = scalar_lea.vmem %s7392_s22, 256 }
0x11fa   :  { %v8484_v44 = vpop.eup %8483  ;;  %8120 = vmatmul.mubr.msk.f32.vlgmr.msra.gmra.mrb[46].mxu0 %vm231_vm5, %v4501_v43  ;;  %8123 = vmatpush3.msra.mxu1 %v9214_v41  ;;  %p8536_p0 = scmp.ne.s32.totalorder %s7392_s22, %s8535_s14  ;;  %p8541_p2 = scmp.lt.s32.totalorder %s8535_s14, %s8535_s14 }
0x11fb   :  { %v8486_v45 = vpop.eup %8485  ;;  %v4502_v34 = vmul.f32 %v8484_v44, %v8468_v3  ;;  %8128 = vmatpush3.msra.mxu0 %v9212_v40  ;;  %8124 = vmatprep.mubr.msk.f32.mxu1 %vm8561_vm4, %v8560_v11  ;;  %v9307_v40 = vld [vmem:[%s9612_s29] sm:$0xff] }
0x11fc   :  { %v4503_v39 = vmul.f32 %v8486_v45, %v8470_v13  ;;  %8129 = vmatprep.mubr.msk.f32.mxu0 %vm8561_vm4, %v8560_v11  ;;  %8132 = vmatprep.subr.mxu1 %v8560_v11  ;;  %v7526_v45 = vld [vmem:[%s9592_s15 + $0x1] ss:$0 sm:$0xff]  ;;  %p8542_p3 = por %p8541_p2, %p8540_p1 }
0x11fd   :  { %8125 = vmatmul.mubr.msk.f32.vlgmr.msra.gmra.mrb[52].mxu1 %vm231_vm5, %v4502_v34 }
0x11fe   :  { %v8488_v47 = vpop.eup %8487  ;;  %8130 = vmatmul.mubr.msk.f32.vlgmr.msra.gmra.mrb[48].mxu0 %vm231_vm5, %v4503_v39  ;;  %8133 = vmatpush3.msra.mxu1 %v9228_v42  ;;  %v7486_v42 = vld [vmem:[%s9583_s6 + $0x28] sm:$0xff]  ;;  %p8543_p4 = pnand %p8542_p3, %p8536_p0 }
0x11ff   :  { %v4504_v41 = vmul.f32 %v8488_v47, %v8472_v5  ;;  %8134 = vmatprep.mubr.msk.f32.mxu1 %vm8561_vm4, %v8560_v11  ;;  %8157 = vmatprep.subr.mxu1 %v8560_v11 }
0x1200   :  { %8137 = vmatprep.subr.mxu0 %v7486_v42 }
0x1201   :  { %8135 = vmatmul.mubr.msk.f32.vlgmr.msra.gmra.mrb[54].mxu1 %vm231_vm5, %v4504_v41  ;;  %8138 = vmatpush3.msra.mxu0 %v7486_v42  ;;  %v8534_v42 = vld [vmem:[%s9612_s29 + $0x8] sm:$0xff] }
0x1202   :  { %8159 = vmatprep.mubr.msk.f32.mxu1 %vm8561_vm4, %v8560_v11  ;;  %8142 = vmatprep.subr.mxu0 %v7485_v48 }
0x1205   :  { %8158 = vmatpush3.xpose.msk.msra.mxu1 %vm231_vm5, %v9307_v40 }
0x1206   :  { %8162 = vmatprep.subr.mxu1 %v8560_v11 }
0x1255   :  { %v4574_v49 = vpop.f32.mrb[42].mxu0 }
0x1256   :  { %v8101_v46 = vpop.f32.mrb[43].mxu0 }
0x1259   :  { %v4647_v50 = vpop.f32.mrb[48].mxu1 }
0x125a   :  { %v8106_v52 = vpop.f32.mrb[49].mxu1 }
0x12c8   :  { %v4720_v53 = vpop.f32.mrb[44].mxu0 }
0x12c9   :  { %v8111_v51 = vpop.f32.mrb[45].mxu0  ;;  %8139 = vmatprep.mubr.msk.f32.mxu0 %vm231_vm5, %v4720_v53 }
0x12cc   :  { %v4793_v54 = vpop.f32.mrb[50].mxu1 }
0x12cd   :  { %v4866_v56 = vpop.f32.mrb[46].mxu0  ;;  %v8116_v57 = vpop.f32.mrb[51].mxu1  ;;  %8140 = vmatmul.mubr.msk.f32.vlgmr.msra.gmra.mrb[50].mxu0 %vm231_vm5, %v4793_v54 }
0x12ce   :  { %v8121_v58 = vpop.f32.mrb[47].mxu0  ;;  %8143 = vmatpush3.msra.mxu0 %v7485_v48  ;;  %8144 = vmatprep.mubr.msk.f32.mxu0 %vm231_vm5, %v4574_v49 }
0x12cf   :  { %8147 = vmatprep.subr.mxu0 %v7487_v55 }
0x12d0   :  { %v4939_v60 = vpop.f32.mrb[52].mxu1 }
0x12d1   :  { %v5012_v62 = vpop.f32.mrb[48].mxu0  ;;  %v8126_v25 = vpop.f32.mrb[53].mxu1 }
0x12d2   :  { %v8131_v59 = vpop.f32.mrb[49].mxu0 }
0x12d4   :  { %v5085_v26 = vpop.f32.mrb[54].mxu1 }
0x12d5   :  { %v8136_v63 = vpop.f32.mrb[55].mxu1  ;;  %8145 = vmatmul.mubr.msk.f32.vlgmr.msra.gmra.mrb[50].mxu0 %vm231_vm5, %v4647_v50 }
0x12d6   :  { %8148 = vmatpush3.msra.mxu0 %v7487_v55  ;;  %8149 = vmatprep.mubr.msk.f32.mxu0 %vm231_vm5, %v4866_v56 }
0x12d7   :  { %8152 = vmatprep.subr.mxu0 %v7488_v61 }
0x12dd   :  { %8150 = vmatmul.mubr.msk.f32.vlgmr.msra.gmra.mrb[50].mxu0 %vm231_vm5, %v4939_v60 }
0x12de   :  { %8153 = vmatpush3.msra.mxu0 %v7488_v61  ;;  %8154 = vmatprep.mubr.msk.f32.mxu0 %vm231_vm5, %v5012_v62 }
0x12df   :  { %8177 = vmatprep.subr.mxu0 %v8560_v11 }
0x12e5   :  { %8155 = vmatmul.mubr.msk.f32.vlgmr.msra.gmra.mrb[50].mxu0 %vm231_vm5, %v5085_v26 }
0x12e6   :  { %8178 = vmatpush3.xpose.msk.msra.mxu0 %vm231_vm5, %v8966_v31  ;;  %8179 = vmatprep.mubr.msk.f32.mxu0 %vm8561_vm4, %v8560_v11 }
0x12e7   :  { %8187 = vmatprep.subr.mxu0 %v8560_v11 }
0x13b8   :  { %v8156_v1 = vpop.f32.mrb[50].mxu0 }
0x13b9   :  { %v5424_v2 = vadd.f32 %v8156_v1, %v7522_v0  ;;  %v5406_v3 = vpop.f32.mrb[51].mxu0 }
0x13ba   :  { %v5423_v13 = vadd.f32 %v7522_v0, %v5406_v3 }
0x13bb   :  { %v5430_v14 = vadd.f32 %v5424_v2, %v9159_v35 }
0x13bc   :  { %v5429_v4 = vadd.f32 %v5423_v13, %v9161_v36 }
0x13bd   :  { %v5434_v5 = vsel %vm1836_vm6, %v5430_v14, 0.0 }
0x13be   :  { %5435 = vadd.xlane.f32.xlu0 %v5434_v5  ;;  %v5431_v30 = vsel %vm1836_vm6, %v5429_v4, 0.0 }
0x13bf   :  { %5432 = vadd.xlane.f32.xlu1 %v5431_v30 }
0x144b   :  { %v5436_v6 = vpop.xlane.xlu0 %5435 }
0x144c   :  { %v5438_v7 = vmul.f32 0.03125, %v5436_v6  ;;  %v5433_v8 = vpop.xlane.xlu1 %5432 }
0x144d   :  { %v5437_v9 = vmul.f32 0.03125, %v5433_v8 }
0x144e   :  { %v5440_v28 = vsub.f32 %v5430_v14, %v5438_v7 }
0x144f   :  { %v5439_v10 = vsub.f32 %v5429_v4, %v5437_v9 }
0x1450   :  { %v5442_v12 = vmul.f32 %v5440_v28, %v5440_v28 }
0x1451   :  { %v5441_v27 = vmul.f32 %v5439_v10, %v5439_v10 }
0x1452   :  { %v5446_v38 = vsel %vm1836_vm6, %v5442_v12, 0.0 }
0x1453   :  { %5447 = vadd.xlane.f32.xlu0 %v5446_v38  ;;  %v5443_v35 = vsel %vm1836_vm6, %v5441_v27, 0.0 }
0x1454   :  { %5444 = vadd.xlane.f32.xlu1 %v5443_v35 }
0x14e0   :  { %v5448_v36 = vpop.xlane.xlu0 %5447 }
0x14e1   :  { %v5450_v17 = vmul.f32 0.03125, %v5448_v36  ;;  %v5445_v32 = vpop.xlane.xlu1 %5444 }
0x14e2   :  { %v5449_v18 = vmul.f32 0.03125, %v5445_v32 }
0x14e3   :  { %v5452_v21 = vadd.f32 1e-05, %v5450_v17 }
0x14e4   :  { %v5451_v22 = vadd.f32 1e-05, %v5449_v18 }
0x14e5   :  { %8489 = vrsqrt.f32 %v5452_v21 }
0x14e6   :  { %8491 = vrsqrt.f32 %v5451_v22 }
0x14ef   :  { %v8490_v37 = vpop.eup %8489 }
0x14f0   :  { %v8492_v33 = vpop.eup %8491  ;;  %v5456_v43 = vmul.f32 %v8490_v37, %v5440_v28 }
0x14f1   :  { %v5455_v44 = vmul.f32 %v8492_v33, %v5439_v10 }
0x14f2   :  { %v5464_v34 = vmul.f32 %v7525_v23, %v5456_v43 }
0x14f3   :  { %v5463_v39 = vmul.f32 %v7525_v23, %v5455_v44 }
0x14f4   :  { %v9353_v47 = vadd.f32 %v7526_v45, %v5464_v34 }
0x14f5   :  { %v9355_v41 = vadd.f32 %v7526_v45, %v5463_v39 }
0x14f6   :  { %5477 = vrot.lane.b32.xlu0 %v9353_v47, %s8563_s26 }
0x14f7   :  { %5475 = vrot.lane.b32.xlu1 %v9355_v41, %s8563_s26  ;;  %8160 = vmatmul.mubr.msk.f32.vlgmr.msra.gmra.mrb[56].mxu1 %vm231_vm5, %v9355_v41 }
0x14f8   :  { %8163 = vmatpush3.xpose.msk.msra.mxu1 %vm231_vm5, %v8534_v42  ;;  %8164 = vmatprep.mubr.msk.f32.mxu1 %vm8561_vm4, %v8560_v11 }
0x14f9   :  { %8167 = vmatprep.subr.mxu1 %v8560_v11 }
0x14fa   :  { %5483 = vrot.lane.b32.xlu0 %v9355_v41, %s8564_s27 }
0x14fb   :  { %5479 = vrot.lane.b32.xlu1 %v9355_v41, %s8562_s3  ;;  %8165 = vmatmul.mubr.msk.f32.vlgmr.msra.gmra.mrb[58].mxu1 %vm231_vm5, %v9353_v47 }
0x14fc   :  { %8168 = vmatpush3.xpose.msk.msra.mxu1 %vm231_vm5, %v8937_v15  ;;  %8169 = vmatprep.mubr.msk.f32.mxu1 %vm8561_vm4, %v8560_v11 }
0x14fd   :  { %8172 = vmatprep.subr.mxu1 %v8560_v11 }
0x14ff   :  { %5481 = vrot.lane.b32.xlu1 %v9353_v47, %s8562_s3 }
0x1503   :  { %5485 = vrot.lane.b32.xlu1 %v9353_v47, %s8564_s27 }
0x1568   :  { %v5478_v49 = vpop.permute.xlu0 %5477 }
0x1569   :  { %v5476_v48 = vpop.permute.xlu1 %5475 }
0x156a   :  { %8170 = vmatmul.mubr.msk.f32.vlgmr.msra.gmra.mrb[60].mxu1 %vm231_vm5, %v5476_v48 }
0x156b   :  { %8173 = vmatpush3.xpose.msk.msra.mxu1 %vm231_vm5, %v8956_v16  ;;  %8174 = vmatprep.mubr.msk.f32.mxu1 %vm8561_vm4, %v8560_v11 }
0x156c   :  { %8182 = vmatprep.subr.mxu1 %v8560_v11  ;;  %v5484_v50 = vpop.permute.xlu0 %5483 }
0x156d   :  { %v5480_v46 = vpop.permute.xlu1 %5479 }
0x156e   :  { %8175 = vmatmul.mubr.msk.f32.vlgmr.msra.gmra.mrb[62].mxu1 %vm231_vm5, %v5478_v49  ;;  %8180 = vmatmul.mubr.msk.f32.vlgmr.msra.gmra.mrb[52].mxu0 %vm231_vm5, %v5480_v46 }
0x156f   :  { %8183 = vmatpush3.xpose.msk.msra.mxu1 %vm231_vm5, %v8963_v29  ;;  %8188 = vmatpush3.xpose.msk.msra.mxu0 %vm231_vm5, %v8985_v20 }
0x1570   :  { %8189 = vmatprep.mubr.msk.f32.mxu0 %vm8561_vm4, %v8560_v11  ;;  %8184 = vmatprep.mubr.msk.f32.mxu1 %vm8561_vm4, %v8560_v11 }
0x1571   :  { %v5482_v52 = vpop.permute.xlu1 %5481  ;;  %8192 = vmatprep.subr.mxu1 %v8560_v11  ;;  %8197 = vmatprep.subr.mxu0 %v8560_v11 }
0x1572   :  { %8185 = vmatmul.mubr.msk.f32.vlgmr.msra.gmra.mrb[64].mxu1 %vm231_vm5, %v5482_v52  ;;  %8190 = vmatmul.mubr.msk.f32.vlgmr.msra.gmra.mrb[54].mxu0 %vm231_vm5, %v5484_v50 }
0x1573   :  { %8193 = vmatpush3.xpose.msk.msra.mxu1 %vm231_vm5, %v8983_v19  ;;  %8194 = vmatprep.mubr.msk.f32.mxu1 %vm8561_vm4, %v8560_v11 }
0x1574   :  { %8198 = vmatpush3.msra.mxu0 %v9307_v40  ;;  %8199 = vmatprep.mubr.msk.f32.mxu0 %vm8561_vm4, %v8560_v11 }
0x1575   :  { %v5486_v53 = vpop.permute.xlu1 %5485  ;;  %8207 = vmatprep.subr.mxu0 %v8560_v11  ;;  %8202 = vmatprep.subr.mxu1 %v8560_v11 }
0x1576   :  { %8195 = vmatmul.mubr.msk.f32.vlgmr.msra.gmra.mrb[66].mxu1 %vm231_vm5, %v5486_v53 }
0x1577   :  { %8203 = vmatpush3.msra.mxu1 %v8534_v42  ;;  %8204 = vmatprep.mubr.msk.f32.mxu1 %vm8561_vm4, %v8560_v11 }
0x1578   :  { %8212 = vmatprep.subr.mxu1 %v8560_v11 }
0x15ca   :  { %v5562_v51 = vpop.f32.mrb[56].mxu1 }
0x15cb   :  { %v6070_v54 = vmul.f32 0.35355338, %v5562_v51  ;;  %v8161_v55 = vpop.f32.mrb[57].mxu1 }
0x15cd   :  { %v6078_v40 = vadd.f32 %v6070_v54, %v9006_v24 }
0x15ce   :  { %v5634_v56 = vpop.f32.mrb[58].mxu1 }
0x15cf   :  { %v6071_v57 = vmul.f32 0.35355338, %v5634_v56  ;;  %v8166_v58 = vpop.f32.mrb[59].mxu1  ;;  %v6086_v60 = vsel %vm231_vm5, %v6078_v40, -inf }
0x15d0   :  { %6087 = vmax.xlane.f32.xlu0 %v6086_v60 }
0x15d1   :  { %v6079_v62 = vadd.f32 %v6071_v57, %v9006_v24 }
0x15d3   :  { %v6089_v25 = vsel %vm231_vm5, %v6079_v62, -inf }
0x15d4   :  { %6090 = vmax.xlane.f32.xlu1 %v6089_v25 }
0x163d   :  { %v5706_v59 = vpop.f32.mrb[60].mxu1 }
0x163e   :  { %v6072_v26 = vmul.f32 0.35355338, %v5706_v59  ;;  %v8171_v61 = vpop.f32.mrb[61].mxu1 }
0x1640   :  { %v6080_v63 = vadd.f32 %v6072_v26, %v9006_v24 }
0x1641   :  { %v5778_v0 = vpop.f32.mrb[62].mxu1  ;;  %v5850_v1 = vpop.f32.mrb[52].mxu0 }
0x1642   :  { %v6073_v2 = vmul.f32 0.35355338, %v5778_v0  ;;  %v6074_v3 = vmul.f32 0.35355338, %v5850_v1  ;;  %v8176_v13 = vpop.f32.mrb[63].mxu1  ;;  %v8181_v14 = vpop.f32.mrb[53].mxu0 }
0x1643   :  { %v6092_v4 = vsel %vm231_vm5, %v6080_v63, -inf }
0x1644   :  { %v6081_v5 = vadd.f32 %v6073_v2, %v9006_v24  ;;  %v6082_v30 = vadd.f32 %v6074_v3, %v9006_v24  ;;  %6093 = vmax.xlane.f32.xlu0 %v6092_v4 }
0x1645   :  { %v5922_v6 = vpop.f32.mrb[64].mxu1  ;;  %v5994_v7 = vpop.f32.mrb[54].mxu0 }
0x1646   :  { %v6075_v8 = vmul.f32 0.35355338, %v5922_v6  ;;  %v6076_v9 = vmul.f32 0.35355338, %v5994_v7  ;;  %v8186_v28 = vpop.f32.mrb[65].mxu1  ;;  %v8191_v10 = vpop.f32.mrb[55].mxu0 }
0x1647   :  { %v6098_v12 = vsel %vm231_vm5, %v6082_v30, -inf  ;;  %v6095_v27 = vsel %vm231_vm5, %v6081_v5, -inf }
0x1648   :  { %v6083_v38 = vadd.f32 %v6075_v8, %v9006_v24  ;;  %v6084_v35 = vadd.f32 %v6076_v9, %v9006_v24  ;;  %6099 = vmax.xlane.f32.xlu1 %v6098_v12  ;;  %6096 = vmax.xlane.f32.xlu0 %v6095_v27 }
0x1649   :  { %v6066_v36 = vpop.f32.mrb[66].mxu1 }
0x164a   :  { %v6077_v17 = vmul.f32 0.35355338, %v6066_v36  ;;  %v8196_v32 = vpop.f32.mrb[67].mxu1  ;;  %v6104_v18 = vsel %vm231_vm5, %v6084_v35, -inf  ;;  %v6101_v21 = vsel %vm231_vm5, %v6083_v38, -inf }
0x164c   :  { %v6085_v22 = vadd.f32 %v6077_v17, %v9006_v24  ;;  %6105 = vmax.xlane.f32.xlu1 %v6104_v18  ;;  %6102 = vmax.xlane.f32.xlu0 %v6101_v21 }
0x164e   :  { %v6107_v37 = vsel %vm231_vm5, %v6085_v22, -inf }
0x1650   :  { %6108 = vmax.xlane.f32.xlu0 %v6107_v37 }
0x165d   :  { %v6088_v23 = vpop.xlane.xlu0 %6087 }
0x165e   :  { %v6110_v33 = vsub.f32 %v6078_v40, %v6088_v23 }
0x1660   :  { %v6118_v43 = vmul.f32 1.442695, %v6110_v33 }
0x1661   :  { %v6091_v44 = vpop.xlane.xlu1 %6090 }
0x1662   :  { %8493 = vpow2.f32 %v6118_v43  ;;  %v6111_v45 = vsub.f32 %v6079_v62, %v6091_v44 }
0x1664   :  { %v6120_v34 = vmul.f32 1.442695, %v6111_v45 }
0x1666   :  { %8495 = vpow2.f32 %v6120_v34  ;;  %v7527_v34 = vld [vmem:[%s9585_s8 + $0x20] sm:$0xff] }
0x166c   :  { %v8494_v39 = vpop.eup %8493 }
0x166d   :  { %v6134_v42 = vsel %vm231_vm5, %v8494_v39, 0.0 }
0x166e   :  { %6135 = vadd.xlane.f32.xlu1 %v6134_v42 }
0x1670   :  { %v8496_v48 = vpop.eup %8495 }
0x1671   :  { %v6137_v24 = vsel %vm231_vm5, %v8496_v48, 0.0 }
0x1672   :  { %6138 = vadd.xlane.f32.xlu0 %v6137_v24 }
0x16d1   :  { %v6094_v49 = vpop.xlane.xlu0 %6093 }
0x16d2   :  { %v6112_v46 = vsub.f32 %v6080_v63, %v6094_v49 }
0x16d4   :  { %v6122_v50 = vmul.f32 1.442695, %v6112_v46 }
0x16d5   :  { %v6100_v52 = vpop.xlane.xlu1 %6099  ;;  %v6097_v53 = vpop.xlane.xlu0 %6096 }
0x16d6   :  { %8497 = vpow2.f32 %v6122_v50  ;;  %v6114_v51 = vsub.f32 %v6082_v30, %v6100_v52  ;;  %v6113_v54 = vsub.f32 %v6081_v5, %v6097_v53  ;;  %v7529_v52 = vld [vmem:[%s9585_s8 + $0x30] sm:$0xff] }
0x16d8   :  { %v6126_v55 = vmul.f32 1.442695, %v6114_v51  ;;  %v6124_v40 = vmul.f32 1.442695, %v6113_v54 }
0x16d9   :  { %v6106_v56 = vpop.xlane.xlu1 %6105  ;;  %v6103_v57 = vpop.xlane.xlu0 %6102 }
0x16da   :  { %8499 = vpow2.f32 %v6126_v55  ;;  %v6116_v58 = vsub.f32 %v6084_v35, %v6106_v56  ;;  %v6115_v60 = vsub.f32 %v6083_v38, %v6103_v57  ;;  %v7530_v57 = vld [vmem:[%s9585_s8 + $0x38] sm:$0xff] }
0x16db   :  { %8501 = vpow2.f32 %v6124_v40 }
0x16dc   :  { %v6130_v62 = vmul.f32 1.442695, %v6116_v58  ;;  %v6128_v25 = vmul.f32 1.442695, %v6115_v60  ;;  %v7564_v60 = vld [vmem:[%s9586_s9 + $0x1] ss:$0 sm:$0xff] }
0x16dd   :  { %v6109_v59 = vpop.xlane.xlu0 %6108 }
0x16de   :  { %8503 = vpow2.f32 %v6130_v62  ;;  %v6117_v26 = vsub.f32 %v6085_v22, %v6109_v59 }
0x16df   :  { %8505 = vpow2.f32 %v6128_v25 }
0x16e0   :  { %v8498_v61 = vpop.eup %8497  ;;  %v6132_v63 = vmul.f32 1.442695, %v6117_v26 }
0x16e1   :  { %v6140_v0 = vsel %vm231_vm5, %v8498_v61, 0.0 }
0x16e2   :  { %8507 = vpow2.f32 %v6132_v63  ;;  %6141 = vadd.xlane.f32.xlu1 %v6140_v0 }
0x16e4   :  { %v8500_v1 = vpop.eup %8499 }
0x16e5   :  { %v8502_v2 = vpop.eup %8501  ;;  %v6146_v3 = vsel %vm231_vm5, %v8500_v1, 0.0 }
0x16e6   :  { %6147 = vadd.xlane.f32.xlu1 %v6146_v3  ;;  %v6143_v13 = vsel %vm231_vm5, %v8502_v2, 0.0 }
0x16e7   :  { %6144 = vadd.xlane.f32.xlu0 %v6143_v13 }
0x16e8   :  { %v8504_v14 = vpop.eup %8503 }
0x16e9   :  { %v8506_v4 = vpop.eup %8505  ;;  %v6152_v5 = vsel %vm231_vm5, %v8504_v14, 0.0 }
0x16ea   :  { %6153 = vadd.xlane.f32.xlu1 %v6152_v5  ;;  %v6149_v30 = vsel %vm231_vm5, %v8506_v4, 0.0 }
0x16eb   :  { %6150 = vadd.xlane.f32.xlu0 %v6149_v30 }
0x16ec   :  { %v8508_v6 = vpop.eup %8507 }
0x16ed   :  { %v6155_v7 = vsel %vm231_vm5, %v8508_v6, 0.0 }
0x16ef   :  { %6156 = vadd.xlane.f32.xlu0 %v6155_v7 }
0x16fb   :  { %v6136_v8 = vpop.xlane.xlu1 %6135 }
0x16fc   :  { %8509 = vrcp.f32 %v6136_v8  ;;  %v7570_v8 = vld [vmem:[%s9587_s10 + $0x28] sm:$0xff] }
0x16ff   :  { %v6139_v9 = vpop.xlane.xlu0 %6138 }
0x1700   :  { %8511 = vrcp.f32 %v6139_v9 }
0x1706   :  { %v8510_v28 = vpop.eup %8509 }
0x1707   :  { %v6166_v10 = vmul.f32 %v8510_v28, %v8494_v39  ;;  %v7571_v28 = vld [vmem:[%s9587_s10 + $0x30] sm:$0xff] }
0x1709   :  { %8200 = vmatmul.mubr.msk.f32.vlgmr.msra.gmra.mrb[56].mxu0 %vm231_vm5, %v6166_v10  ;;  %v7572_v10 = vld [vmem:[%s9587_s10 + $0x38] sm:$0xff] }
0x170a   :  { %v8512_v12 = vpop.eup %8511  ;;  %8208 = vmatpush3.msra.mxu0 %v8937_v15  ;;  %8209 = vmatprep.mubr.msk.f32.mxu0 %vm8561_vm4, %v8560_v11 }
0x170b   :  { %v6167_v27 = vmul.f32 %v8512_v12, %v8496_v48  ;;  %8217 = vmatprep.subr.mxu0 %v8560_v11  ;;  %v8327_v12 = vpack.c.bf16 %v7572_v10, %v7571_v28  ;;  %v7591_v28 = vld [vmem:[%s9595_s18 + $0x1] ss:$0 sm:$0xff] }
0x170d   :  { %8205 = vmatmul.mubr.msk.f32.vlgmr.msra.gmra.mrb[68].mxu1 %vm231_vm5, %v6167_v27  ;;  %v7577_v27 = vld [vmem:[%s9589_s12 + $0x40] sm:$0xff] }
0x170e   :  { %8213 = vmatpush3.msra.mxu1 %v8956_v16  ;;  %8214 = vmatprep.mubr.msk.f32.mxu1 %vm8561_vm4, %v8560_v11 }
0x170f   :  { %8222 = vmatprep.subr.mxu1 %v8560_v11 }
0x176f   :  { %v6142_v38 = vpop.xlane.xlu1 %6141 }
0x1770   :  { %8513 = vrcp.f32 %v6142_v38  ;;  %v7578_v38 = vld [vmem:[%s9589_s12 + $0x48] sm:$0xff] }
0x1773   :  { %v6148_v35 = vpop.xlane.xlu1 %6147 }
0x1774   :  { %8515 = vrcp.f32 %v6148_v35  ;;  %v6145_v15 = vpop.xlane.xlu0 %6144  ;;  %v8331_v35 = vpack.c.bf16 %v7578_v38, %v7577_v27  ;;  %v7592_v38 = vld [vmem:[%s9596_s19 + $0x1] ss:$0 sm:$0xff] }
0x1775   :  { %8517 = vrcp.f32 %v6145_v15 }
0x1777   :  { %v6154_v36 = vpop.xlane.xlu1 %6153 }
0x1778   :  { %8519 = vrcp.f32 %v6154_v36  ;;  %v6151_v17 = vpop.xlane.xlu0 %6150 }
0x1779   :  { %8521 = vrcp.f32 %v6151_v17 }
0x177a   :  { %v8514_v32 = vpop.eup %8513 }
0x177b   :  { %v6168_v18 = vmul.f32 %v8514_v32, %v8498_v61 }
0x177c   :  { %v6157_v21 = vpop.xlane.xlu0 %6156 }
0x177d   :  { %8523 = vrcp.f32 %v6157_v21  ;;  %8210 = vmatmul.mubr.msk.f32.vlgmr.msra.gmra.mrb[58].mxu0 %vm231_vm5, %v6168_v18 }
0x177e   :  { %v8516_v16 = vpop.eup %8515  ;;  %8218 = vmatpush3.msra.mxu0 %v8966_v31  ;;  %8219 = vmatprep.mubr.msk.f32.mxu0 %vm8561_vm4, %v8560_v11 }
0x177f   :  { %v8518_v22 = vpop.eup %8517  ;;  %v6170_v37 = vmul.f32 %v8516_v16, %v8500_v1  ;;  %8227 = vmatprep.subr.mxu0 %v8560_v11 }
0x1780   :  { %v6169_v23 = vmul.f32 %v8518_v22, %v8502_v2  ;;  %v7567_v22 = vld [vmem:[%s9593_s16 + $0x1] ss:$0 sm:$0xff] }
0x1781   :  { %8220 = vmatmul.mubr.msk.f32.vlgmr.msra.gmra.mrb[60].mxu0 %vm231_vm5, %v6170_v37 }
0x1782   :  { %v8520_v33 = vpop.eup %8519  ;;  %8215 = vmatmul.mubr.msk.f32.vlgmr.msra.gmra.mrb[70].mxu1 %vm231_vm5, %v6169_v23  ;;  %8228 = vmatpush3.msra.mxu0 %v8985_v20  ;;  %v7528_v20 = vld [vmem:[%s9585_s8 + $0x28] sm:$0xff] }
0x1783   :  { %v8522_v43 = vpop.eup %8521  ;;  %v6172_v44 = vmul.f32 %v8520_v33, %v8504_v14  ;;  %8223 = vmatpush3.msra.mxu1 %v8963_v29  ;;  %8224 = vmatprep.mubr.msk.f32.mxu1 %vm8561_vm4, %v8560_v11 }
0x1784   :  { %v6171_v31 = vmul.f32 %v8522_v43, %v8506_v4  ;;  %8229 = vmatprep.mubr.msk.f32.mxu0 %vm8561_vm4, %v8560_v11  ;;  %8232 = vmatprep.subr.mxu1 %v8560_v11  ;;  %v7568_v43 = vld [vmem:[%s9594_s17 + $0x1] ss:$0 sm:$0xff] }
0x1785   :  { %8230 = vmatmul.mubr.msk.f32.vlgmr.msra.gmra.mrb[62].mxu0 %vm231_vm5, %v6172_v44  ;;  %8237 = vmatprep.subr.mxu0 %v7528_v20 }
0x1786   :  { %8225 = vmatmul.mubr.msk.f32.vlgmr.msra.gmra.mrb[72].mxu1 %vm231_vm5, %v6171_v31  ;;  %8238 = vmatpush3.msra.mxu0 %v7528_v20 }
0x1787   :  { %v8524_v45 = vpop.eup %8523  ;;  %8233 = vmatpush3.msra.mxu1 %v8983_v19  ;;  %8234 = vmatprep.mubr.msk.f32.mxu1 %vm8561_vm4, %v8560_v11 }
0x1788   :  { %v6173_v29 = vmul.f32 %v8524_v45, %v8508_v6  ;;  %8242 = vmatprep.subr.mxu0 %v7527_v34  ;;  %v7579_v45 = vld [vmem:[%s9589_s12 + $0x50] sm:$0xff] }
0x178a   :  { %8235 = vmatmul.mubr.msk.f32.vlgmr.msra.gmra.mrb[74].mxu1 %vm231_vm5, %v6173_v29  ;;  %v7580_v29 = vld [vmem:[%s9589_s12 + $0x58] sm:$0xff] }
0x17dc   :  { %v6243_v39 = vpop.f32.mrb[56].mxu0 }
0x17dd   :  { %v8201_v42 = vpop.f32.mrb[57].mxu0 }
0x17de   :  { %v7581_v42 = vld [vmem:[%s9589_s12 + $0x60] sm:$0xff] }
0x17e0   :  { %v6316_v19 = vpop.f32.mrb[68].mxu1 }
0x17e1   :  { %v8206_v48 = vpop.f32.mrb[69].mxu1 }
0x1850   :  { %v6389_v24 = vpop.f32.mrb[58].mxu0 }
0x1851   :  { %v8211_v11 = vpop.f32.mrb[59].mxu0  ;;  %8239 = vmatprep.mubr.msk.f32.mxu0 %vm231_vm5, %v6389_v24  ;;  %v7583_v24 = vld [vmem:[%s9589_s12 + $0x70] sm:$0xff] }
0x1852   :  { %v7584_v11 = vld [vmem:[%s9589_s12 + $0x78] sm:$0xff] }
0x1854   :  { %v6535_v49 = vpop.f32.mrb[60].mxu0 }
0x1855   :  { %v6462_v46 = vpop.f32.mrb[70].mxu1  ;;  %v8221_v50 = vpop.f32.mrb[61].mxu0 }
0x1856   :  { %v8216_v53 = vpop.f32.mrb[71].mxu1  ;;  %8240 = vmatmul.mubr.msk.f32.vlgmr.msra.gmra.mrb[64].mxu0 %vm231_vm5, %v6462_v46  ;;  %v7574_v46 = vld [vmem:[%s9588_s11 + $0x1] ss:$0 sm:$0xff] }
0x1857   :  { %8243 = vmatpush3.msra.mxu0 %v7527_v34  ;;  %8244 = vmatprep.mubr.msk.f32.mxu0 %vm231_vm5, %v6243_v39  ;;  %v8335_v39 = vpack.c.bf16 %v7580_v29, %v7579_v45 }
0x1858   :  { %v6681_v51 = vpop.f32.mrb[62].mxu0  ;;  %8247 = vmatprep.subr.mxu0 %v7529_v52 }
0x1859   :  { %v6608_v54 = vpop.f32.mrb[72].mxu1  ;;  %v8231_v55 = vpop.f32.mrb[63].mxu0 }
0x185a   :  { %v8226_v40 = vpop.f32.mrb[73].mxu1 }
0x185b   :  { %v7586_v40 = vld [vmem:[%s9613_s28 + $0x1] ss:$0 sm:$0xff] }
0x185d   :  { %v6754_v56 = vpop.f32.mrb[74].mxu1 }
0x185e   :  { %v8236_v58 = vpop.f32.mrb[75].mxu1  ;;  %8245 = vmatmul.mubr.msk.f32.vlgmr.msra.gmra.mrb[64].mxu0 %vm231_vm5, %v6316_v19  ;;  %v7582_v19 = vld [vmem:[%s9589_s12 + $0x68] sm:$0xff] }
0x185f   :  { %8248 = vmatpush3.msra.mxu0 %v7529_v52  ;;  %8249 = vmatprep.mubr.msk.f32.mxu0 %vm231_vm5, %v6535_v49  ;;  %v8339_v48 = vpack.c.bf16 %v7582_v19, %v7581_v42  ;;  %v8343_v49 = vpack.c.bf16 %v7584_v11, %v7583_v24 }
0x1860   :  { %8252 = vmatprep.subr.mxu0 %v7530_v57 }
0x1866   :  { %8250 = vmatmul.mubr.msk.f32.vlgmr.msra.gmra.mrb[64].mxu0 %vm231_vm5, %v6608_v54 }
0x1867   :  { %8253 = vmatpush3.msra.mxu0 %v7530_v57  ;;  %8254 = vmatprep.mubr.msk.f32.mxu0 %vm231_vm5, %v6681_v51 }
0x186e   :  { %8255 = vmatmul.mubr.msk.f32.vlgmr.msra.gmra.mrb[64].mxu0 %vm231_vm5, %v6754_v56 }
0x1941   :  { %v8256_v62 = vpop.f32.mrb[64].mxu0 }
0x1942   :  { %v7093_v25 = vadd.f32 %v8256_v62, %v7564_v60  ;;  %v7075_v59 = vpop.f32.mrb[65].mxu0 }
0x1943   :  { %v7092_v26 = vadd.f32 %v7564_v60, %v7075_v59 }
0x1944   :  { %v7099_v61 = vadd.f32 %v7093_v25, %v9353_v47 }
0x1945   :  { %v7098_v63 = vadd.f32 %v7092_v26, %v9355_v41  ;;  %v7569_v41 = vld [vmem:[%s9587_s10 + $0x20] sm:$0xff] }
0x1946   :  { %v7103_v0 = vsel %vm1836_vm6, %v7099_v61, 0.0  ;;  %v8323_v9 = vpack.c.bf16 %v7570_v8, %v7569_v41 }
0x1947   :  { %7104 = vadd.xlane.f32.xlu0 %v7103_v0  ;;  %v7100_v1 = vsel %vm1836_vm6, %v7098_v63, 0.0 }
0x1948   :  { %7101 = vadd.xlane.f32.xlu1 %v7100_v1  ;;  %8324 = vmatprep.subr.bf16.mxu1 %v8323_v9 }
0x1949   :  { %8326 = vmatpush3.bf16.msra.mxu1 %v8323_v9 }
0x194a   :  { %8328 = vmatprep.subr.bf16.mxu1 %v8327_v12 }
0x194d   :  { %8330 = vmatpush3.bf16.msra.mxu1 %v8327_v12 }
0x194e   :  { %8332 = vmatprep.subr.bf16.mxu1 %v8331_v35 }
0x19d4   :  { %v7105_v2 = vpop.xlane.xlu0 %7104 }
0x19d5   :  { %v7107_v3 = vmul.f32 0.03125, %v7105_v2  ;;  %v7102_v13 = vpop.xlane.xlu1 %7101 }
0x19d6   :  { %v7106_v14 = vmul.f32 0.03125, %v7102_v13 }
0x19d7   :  { %v7109_v4 = vsub.f32 %v7099_v61, %v7107_v3 }
0x19d8   :  { %v7108_v5 = vsub.f32 %v7098_v63, %v7106_v14 }
0x19d9   :  { %v7111_v30 = vmul.f32 %v7109_v4, %v7109_v4 }
0x19da   :  { %v7110_v6 = vmul.f32 %v7108_v5, %v7108_v5 }
0x19db   :  { %v7115_v7 = vsel %vm1836_vm6, %v7111_v30, 0.0 }
0x19dc   :  { %7116 = vadd.xlane.f32.xlu0 %v7115_v7  ;;  %v7112_v47 = vsel %vm1836_vm6, %v7110_v6, 0.0 }
0x19dd   :  { %7113 = vadd.xlane.f32.xlu1 %v7112_v47 }
0x1a69   :  { %v7117_v15 = vpop.xlane.xlu0 %7116 }
0x1a6a   :  { %v7119_v36 = vmul.f32 0.03125, %v7117_v15  ;;  %v7114_v17 = vpop.xlane.xlu1 %7113 }
0x1a6b   :  { %v7118_v32 = vmul.f32 0.03125, %v7114_v17 }
0x1a6c   :  { %v7121_v18 = vadd.f32 1e-05, %v7119_v36 }
0x1a6d   :  { %v7120_v21 = vadd.f32 1e-05, %v7118_v32 }
0x1a6e   :  { %8525 = vrsqrt.f32 %v7121_v18 }
0x1a6f   :  { %8527 = vrsqrt.f32 %v7120_v21 }
0x1a78   :  { %v8526_v16 = vpop.eup %8525 }
0x1a79   :  { %v8528_v37 = vpop.eup %8527  ;;  %v7125_v23 = vmul.f32 %v8526_v16, %v7109_v4 }
0x1a7a   :  { %v7124_v33 = vmul.f32 %v8528_v37, %v7108_v5 }
0x1a7b   :  { %v7133_v44 = vmul.f32 %v7567_v22, %v7125_v23 }
0x1a7c   :  { %v7132_v31 = vmul.f32 %v7567_v22, %v7124_v33 }
0x1a7d   :  { %v7141_v34 = vadd.f32 %v7568_v43, %v7133_v44 }
0x1a7e   :  { %v7140_v20 = vadd.f32 %v7568_v43, %v7132_v31 }
0x1a80   :  { %8265 = vmatprep.mubr.msk.f32.mxu1 %vm1836_vm6, %v7140_v20 }
0x1a81   :  { %8266 = vmatmul.mubr.msk.f32.vlgmr.msra.gmra.mrb[76].mxu1 %vm1836_vm6, %v7141_v34 }
0x1a82   :  { %8334 = vmatpush3.bf16.msra.mxu1 %v8331_v35 }
0x1a83   :  { %8336 = vmatprep.subr.bf16.mxu1 %v8335_v39 }
0x1a86   :  { %8338 = vmatpush3.bf16.msra.mxu1 %v8335_v39 }
0x1a87   :  { %8340 = vmatprep.subr.bf16.mxu1 %v8339_v48 }
0x1a8a   :  { %8342 = vmatpush3.bf16.msra.mxu1 %v8339_v48 }
0x1a8b   :  { %8344 = vmatprep.subr.bf16.mxu1 %v8343_v49 }
0x1a8e   :  { %8346 = vmatpush3.bf16.msra.mxu1 %v8343_v49 }
0x1b54   :  { %v8267_v50 = vpop.f32.mrb[76].mxu1 }
0x1b55   :  { %v7233_v52 = vadd.f32 %v8267_v50, %v7574_v46  ;;  %v7227_v53 = vpop.f32.mrb[77].mxu1 }
0x1b56   :  { %v7228_v51 = vadd.f32 %v7574_v46, %v7227_v53 }
0x1b57   :  { %v7237_v55 = vmax.f32 %v7233_v52, 0.0 }
0x1b58   :  { %v7236_v54 = vmax.f32 %v7228_v51, 0.0 }
0x1b5a   :  { %8284 = vmatprep.mubr.msk.f32.mxu1 %vm3670_vm7, %v7236_v54 }
0x1b5b   :  { %8285 = vmatmul.mubr.msk.f32.vlgmr.msra.gmra.mrb[78].mxu1 %vm3670_vm7, %v7237_v55 }
0x1c2e   :  { %v8286_v56 = vpop.f32.mrb[78].mxu1 }
0x1c2f   :  { %v7333_v57 = vadd.f32 %v8286_v56, %v7586_v40  ;;  %v7327_v58 = vpop.f32.mrb[79].mxu1 }
0x1c30   :  { %v7328_v60 = vadd.f32 %v7586_v40, %v7327_v58 }
0x1c31   :  { %v7341_v62 = vadd.f32 %v7333_v57, %v7141_v34 }
0x1c32   :  { %v7340_v25 = vadd.f32 %v7328_v60, %v7140_v20 }
0x1c33   :  { %v7345_v59 = vsel %vm1836_vm6, %v7341_v62, 0.0 }
0x1c34   :  { %7346 = vadd.xlane.f32.xlu0 %v7345_v59  ;;  %v7342_v26 = vsel %vm1836_vm6, %v7340_v25, 0.0 }
0x1c35   :  { %7343 = vadd.xlane.f32.xlu1 %v7342_v26 }
0x1cc1   :  { %v7347_v61 = vpop.xlane.xlu0 %7346 }
0x1cc2   :  { %v7349_v63 = vmul.f32 0.03125, %v7347_v61  ;;  %v7344_v0 = vpop.xlane.xlu1 %7343 }
0x1cc3   :  { %v7348_v1 = vmul.f32 0.03125, %v7344_v0 }
0x1cc4   :  { %v7351_v2 = vsub.f32 %v7341_v62, %v7349_v63 }
0x1cc5   :  { %v7350_v3 = vsub.f32 %v7340_v25, %v7348_v1 }
0x1cc6   :  { %v7353_v13 = vmul.f32 %v7351_v2, %v7351_v2 }
0x1cc7   :  { %v7352_v14 = vmul.f32 %v7350_v3, %v7350_v3 }
0x1cc8   :  { %v7357_v4 = vsel %vm1836_vm6, %v7353_v13, 0.0 }
0x1cc9   :  { %7358 = vadd.xlane.f32.xlu0 %v7357_v4  ;;  %v7354_v5 = vsel %vm1836_vm6, %v7352_v14, 0.0 }
0x1cca   :  { %7355 = vadd.xlane.f32.xlu1 %v7354_v5 }
0x1d56   :  { %v7359_v30 = vpop.xlane.xlu0 %7358 }
0x1d57   :  { %v7361_v6 = vmul.f32 0.03125, %v7359_v30  ;;  %v7356_v7 = vpop.xlane.xlu1 %7355 }
0x1d58   :  { %v7360_v47 = vmul.f32 0.03125, %v7356_v7 }
0x1d59   :  { %v7363_v41 = vadd.f32 1e-05, %v7361_v6 }
0x1d5a   :  { %v7362_v8 = vadd.f32 1e-05, %v7360_v47 }
0x1d5b   :  { %8529 = vrsqrt.f32 %v7363_v41 }
0x1d5c   :  { %8531 = vrsqrt.f32 %v7362_v8 }
0x1d65   :  { %v8530_v9 = vpop.eup %8529 }
0x1d66   :  { %v8532_v10 = vpop.eup %8531  ;;  %v7367_v12 = vmul.f32 %v8530_v9, %v7351_v2 }
0x1d67   :  { %v7366_v27 = vmul.f32 %v8532_v10, %v7350_v3 }
0x1d68   :  { %v7375_v35 = vmul.f32 %v7591_v28, %v7367_v12 }
0x1d69   :  { %v7374_v15 = vmul.f32 %v7591_v28, %v7366_v27 }
0x1d6a   :  { %v7383_v36 = vadd.f32 %v7592_v38, %v7375_v35 }
0x1d6b   :  { %v7382_v17 = vadd.f32 %v7592_v38, %v7374_v15 }
0x1d6c   :  { %7385 = vst.msk [vmem:[#allocation2 + $0x8] sm:$0xff] %vm1836_vm6, %v7383_v36 }
0x1d6d   :  { %7384 = vst.msk [vmem:[#allocation2] sm:$0xff] %vm1836_vm6, %v7382_v17 }
0x1d6e   :  { %8546 = shalt.err (!%p8543_p4)
}
0x1d6f   :  { %s8547_s24 = scalar_lea.hbm %s9597_s20, 256 }
0x1d70   :  { %p8548_p5 = scmp.ne.s32.totalorder %s9597_s20, %s8547_s24  ;;  %p8551_p6 = scmp.lt.u32.totalorder %s8547_s24, %s9597_s20 }
0x1d72   :  { %p8553_p7 = pnand %p8551_p6, %p8548_p5 }
0x1d74   :  { %8556 = shalt.err (!%p8553_p7)
}
0x1d75   :  { %s8566_s27 = smov 128   ;;  %s8567_s29 = smov 8  }
0x1d76   :  { %7397 = dma.vmem_to_hbm [thread:$0]  %s7392_s22, 256, %s9597_s20, [#allocation3], %s8566_s27, %s8566_s27, %s8567_s29  }
0x1d77   :  { %8557 = dma.done.wait [#allocation3], 256  }
0x1d78   :  { %8558 = vsyncadd [#allocation3], 4294967040 }
0x1d79   :  { %7401 = vsyncpa [#allocation3], 1 }

</bundles_post_ra>
